<compile_context>
chip_gen: v7x
topology: tpu7x:2x2x1
jax: 0.10.0
libtpu: 0.0.40
codegen_flags: <defaults>
</compile_context>

<pallas_src>
import math

import jax
import jax.numpy as jnp
from jax import lax
from jax.experimental import pallas as pl
from jax.experimental.pallas import tpu as pltpu

# ----------------------------- small config ---------------------------------
B = 2                 # batch
C_IN = 1              # channels (module default channels=1)
H_IMG = 16            # analog of 64
W_IMG = 30            # analog of 900 (pads to 32, analog of 904)
PATCH = (8, 8)
DIM = 32              # analog of 256
DEPTH = 2             # analog of 6
HEADS = 4
DIM_HEAD = 8          # analog of default 64 (inner_dim = heads*dim_head = DIM)
MLP_DIM = 64          # analog of 1024
K_TOP = 4             # analog of k=100 (must be <= num_patches)
ENC_HEADS = 4         # TransformerEncoderLayer nhead
ENC_FF = 64           # analog of 512
CLUSTER = 8           # NetVLAD cluster_size, analog of 64
VLAD_OUT = 32         # NetVLAD output_dim, analog of 256

LN_EPS = 1e-5
# bf16 MXU operands with f32 accumulation (native fast path on all chips).
MXU_DTYPE = jnp.bfloat16

_VMEM = pl.BlockSpec(memory_space=pltpu.MemorySpace.VMEM)


# ----------------------- in-kernel math helpers ------------------------------
def _mxdot(a, b):
    return jnp.dot(a.astype(MXU_DTYPE), b.astype(MXU_DTYPE),
                   preferred_element_type=jnp.float32)


def _mxdot_nt(a, b):
    # a @ b.T (contract last dims), no transposed operand materialized.
    return lax.dot_general(a.astype(MXU_DTYPE), b.astype(MXU_DTYPE),
                           (((1,), (1,)), ((), ())),
                           preferred_element_type=jnp.float32)


def _ln(x, g, b, eps=LN_EPS):
    mu = jnp.mean(x, axis=-1, keepdims=True)
    xc = x - mu
    var = jnp.mean(xc * xc, axis=-1, keepdims=True)
    return xc * lax.rsqrt(var + eps) * g + b


def _softmax(x):
    # Stable softmax with the denominator reciprocal on the EUP.
    m = jnp.max(x, axis=-1, keepdims=True)
    e = jnp.exp(x - m)
    return e * pl.reciprocal(jnp.sum(e, axis=-1, keepdims=True), approx=True)


def _erf(x):
    # Abramowitz & Stegun 7.1.26 (max abs err 1.5e-7): matches PyTorch's exact
    # erf-GELU to f32 working precision with VPU/EUP-friendly ops only.
    a = jnp.abs(x)
    t = 1.0 / (1.0 + 0.3275911 * a)
    poly = ((((1.061405429 * t - 1.453152027) * t + 1.421413741) * t
             - 0.284496736) * t + 0.254829592) * t
    y = 1.0 - poly * jnp.exp(-(a * a))
    return jnp.where(x >= 0.0, y, -y)


def _gelu_exact(x):
    return 0.5 * x * (1.0 + _erf(x * 0.7071067811865476))


def _l2n_rows(x, eps=1e-12):
    # x / max(||x||_2, eps) over the last (lane) axis, via rsqrt.
    ss = jnp.sum(x * x, axis=-1, keepdims=True)
    return x * lax.rsqrt(jnp.maximum(ss, eps * eps))


def _mha(x, wqkv, bqkv, wo, bo, heads, dim_head):
    """All-head self-attention on one (S, D) VMEM slab.

    One wide QKV matmul; per-head scores/softmax/PV; head outputs are
    lane-concatenated ONCE so the output projection is a single K=inner
    matmul (no per-head out-proj matmuls, no add chain).
    """
    inner = heads * dim_head
    scale = dim_head ** -0.5
    qkv = _mxdot(x, wqkv)                                      # (S, 3*inner)
    if bqkv is not None:
        qkv = qkv + bqkv
    # TODO(synk): at production dim_head=64 / S~905, move to a head-batched
    # dot_general ((H, S, dh) layout) + flash-style K/V tiling; the unaligned
    # lane slices below are only acceptable at this toy size.
    outs = []
    for i in range(heads):
        lo = i * dim_head
        q = qkv[:, lo:lo + dim_head]
        k = qkv[:, inner + lo:inner + lo + dim_head]
        v = qkv[:, 2 * inner + lo:2 * inner + lo + dim_head]
        s = _mxdot_nt(q, k) * scale                            # (S, S)
        outs.append(_mxdot(_softmax(s), v))                    # (S, dh)
    o = jnp.concatenate(outs, axis=-1)                         # (S, inner)
    return _mxdot(o, wo) + bo                                  # ONE K=inner proj


# ----------------------------- Pallas kernels --------------------------------
def _vit_kernel(patches_ref, pe_ln1g, pe_ln1b, pe_w, pe_b, pe_ln2g, pe_ln2b,
                cls_ref, pos_ref,
                ln1g, ln1b, wqkv, wo, bo, ln2g, ln2b, w1, b1, w2, b2,
                fng, fnb, o_ref):
    n = patches_ref.shape[1]
    d = pl.program_id(1)

    @pl.when(d == 0)
    def _init():
        # Patch embedding: LN(patch_dim) -> Linear -> LN(DIM); pos-emb added;
        # cls token appended as the LAST row (all patch-row stores 8-aligned).
        p = patches_ref[0]                                     # (N, PD)
        h0 = _ln(p, pe_ln1g[...], pe_ln1b[...])
        h0 = _mxdot(h0, pe_w[...]) + pe_b[...]
        h0 = _ln(h0, pe_ln2g[...], pe_ln2b[...])               # (N, D)
        o_ref[0, 0:n, :] = h0 + pos_ref[0:n, :]
        o_ref[0, n:n + 1, :] = cls_ref[...] + pos_ref[n:n + 1, :]

    # One pre-norm transformer block per depth step; the (S, D) slab is the
    # output block (constant index over depth) and never leaves VMEM.
    x = o_ref[0]                                               # (S, D)
    h = _ln(x, ln1g[0], ln1b[0])
    x = x + _mha(h, wqkv[0], None, wo[0], bo[0], HEADS, DIM_HEAD)
    h = _ln(x, ln2g[0], ln2b[0])
    ff = _mxdot(h, w1[0]) + b1[0]
    ff = _gelu_exact(ff)                                       # exact erf GELU
    ff = _mxdot(ff, w2[0]) + b2[0]
    x = x + ff
    o_ref[0] = x

    @pl.when(d == pl.num_programs(1) - 1)
    def _final():
        o_ref[0] = _ln(x, fng[...], fnb[...])                  # fused final LN


def _enc_vlad_kernel(vit_ref, enc_ref, wi, bi, wout, bout, ln1g, ln1b,
                     fw1, fb1, fw2, fb2, ln2g, ln2b,
                     wca, wce, cw, cb, cw2t, o_ref):
    # --- PyTorch TransformerEncoderLayer (post-norm, relu, dropout=0) -------
    x = enc_ref[0]                                             # (k, D)
    dh = DIM // ENC_HEADS
    sa = _mha(x, wi[...], bi[...], wout[...], bout[...], ENC_HEADS, dh)
    x = _ln(x + sa, ln1g[...], ln1b[...])
    ff = jnp.maximum(_mxdot(x, fw1[...]) + fb1[...], 0.0)
    ff = _mxdot(ff, fw2[...]) + fb2[...]
    e = _ln(x + ff, ln2g[...], ln2b[...])                      # stays in VMEM

    # --- concat + convLast2(1x1) + ReLU + normalize --------------------------
    a = vit_ref[0]                                             # (k, D) first-k ViT tokens
    # concat([a, e], ch) @ Wconv  ==  a @ Wconv[:D] + e @ Wconv[D:]
    h = _mxdot(a, wca[...]) + _mxdot(e, wce[...])              # (k, 2D)
    h = jnp.maximum(h, 0.0)                                    # intended self.relu
    h = _l2n_rows(h)                                           # F.normalize(dim=1)

    # --- NetVLADLoupe (gating handled in the batched head kernel) ------------
    act = _softmax(_mxdot(h, cw[...]) + cb[...])               # (k, C)
    ones_s = jnp.ones((h.shape[0], 1), jnp.float32)
    a_sum = lax.dot_general(act, ones_s, (((0,), (0,)), ((), ())),
                            preferred_element_type=jnp.float32)  # (C, 1)
    vlad = lax.dot_general(act.astype(MXU_DTYPE), h.astype(MXU_DTYPE),
                           (((0,), (0,)), ((), ())),
                           preferred_element_type=jnp.float32)   # (C, F)
    vlad = vlad - a_sum * cw2t[...]
    vlad = _l2n_rows(vlad)                                     # intra-norm over F
    # L2-normalize the flattened (C*F,) descriptor without reshaping.
    tot = jnp.sum(jnp.sum(vlad * vlad, axis=-1, keepdims=True),
                  axis=0, keepdims=True)                       # (1, 1)
    vlad = vlad * lax.rsqrt(jnp.maximum(tot, 1e-24))
    o_ref[0] = vlad                                            # (C, F), lane-dense


def _vlad_head_kernel(v_ref, h1, bng, bnb, bnm, bnv, gw, gb, o_ref):
    # hidden1 (one K=C*F contraction, M=B) + BN1d (eval) + gating + L2-norm.
    v = v_ref[...]                                             # (B, C*F)
    hid = _mxdot(v, h1[...])                                   # (B, OUT)
    hid = (hid - bnm[...]) * lax.rsqrt(bnv[...] + 1e-5) * bng[...] + bnb[...]
    gates = jax.nn.sigmoid(_mxdot(hid, gw[...]) + gb[...])     # context gating
    o_ref[...] = _l2n_rows(hid * gates)                        # final F.normalize


# --------------------------- pallas_call wrappers -----------------------------
def pl_vit(patches, p):
    b, n, pd = patches.shape
    s = n + 1
    # pos rows reordered to the in-kernel (tokens..., cls) row order.
    pos = jnp.concatenate([p["pos_emb"][1:], p["pos_emb"][:1]], axis=0)
    consts = (p["patch_ln1_g"], p["patch_ln1_b"], p["patch_w"], p["patch_b"],
              p["patch_ln2_g"], p["patch_ln2_b"], p["cls_token"], pos)
    stacked = (p["ln1_g"], p["ln1_b"], p["wqkv"], p["wo"], p["bo"],
               p["ln2_g"], p["ln2_b"], p["w1"], p["b1"], p["w2"], p["b2"])
    finals = (p["final_ln_g"], p["final_ln_b"])

    def cspec(a):                       # constant across the whole grid
        z = (0,) * a.ndim
        return pl.BlockSpec(tuple(a.shape), lambda i, j, z=z: z)

    def dspec(a):                       # per-layer slice of the DEPTH stack
        z = (0,) * (a.ndim - 1)
        return pl.BlockSpec((1,) + tuple(a.shape[1:]),
                            lambda i, j, z=z: (j,) + z)

    # TODO(synk): at production scale (S~905, DIM=256) flash-tile the attention,
    # set vmem_limit_bytes, pre-cast weights to bf16 host-side and single-buffer
    # the constant-weight BlockSpecs (pipeline_mode=pl.Buffered(1)).
    out = pl.pallas_call(
        _vit_kernel,
        out_shape=jax.ShapeDtypeStruct((b, s, DIM), jnp.float32),
        grid=(b, DEPTH),
        in_specs=([pl.BlockSpec((1, n, pd), lambda i, j: (i, 0, 0))]
                  + [cspec(a) for a in consts]
                  + [dspec(a) for a in stacked]
                  + [cspec(a) for a in finals]),
        out_specs=pl.BlockSpec((1, s, DIM), lambda i, j: (i, 0, 0)),
        compiler_params=pltpu.CompilerParams(
            dimension_semantics=("parallel", "arbitrary")),
    )(patches, *consts, *stacked, *finals)
    return out[:, :n, :]                # drop the (last) cls row -> (B, N, DIM)


def pl_encoder_vlad(vit_k, enc_in, params):
    b, k, d = vit_k.shape
    e, nv = params["enc"], params["netvlad"]
    f = 2 * d
    # Split the 1x1-conv weight so the channel concat never materializes.
    wca = params["conv2_w"][:d, :]
    wce = params["conv2_w"][d:, :]
    cw2t = nv["cluster_w2"].T            # (C, F)
    args = (e["in_proj_w"], e["in_proj_b"], e["out_proj_w"], e["out_proj_b"],
            e["ln1_g"], e["ln1_b"], e["ff_w1"], e["ff_b1"], e["ff_w2"],
            e["ff_b2"], e["ln2_g"], e["ln2_b"], wca, wce,
            nv["cluster_w"], nv["cluster_b"], cw2t)

    def cspec(a):
        z = (0,) * a.ndim
        return pl.BlockSpec(tuple(a.shape), lambda i, z=z: z)

    bsp = pl.BlockSpec((1, k, d), lambda i: (i, 0, 0))
    return pl.pallas_call(
        _enc_vlad_kernel,
        out_shape=jax.ShapeDtypeStruct((b, CLUSTER, f), jnp.float32),
        grid=(b,),
        in_specs=[bsp, bsp] + [cspec(a) for a in args],
        out_specs=pl.BlockSpec((1, CLUSTER, f), lambda i: (i, 0, 0)),
        compiler_params=pltpu.CompilerParams(
            dimension_semantics=("parallel",)),
    )(vit_k, enc_in, *args)


def pl_vlad_head(vlad_flat, params):
    nv = params["netvlad"]
    f = 2 * DIM
    # hidden1_w is stored torch-style (F*C, OUT) with flat index f*C + c;
    # permute once to our (C, F)-major flattening (index c*F + f).
    h1 = (nv["hidden1_w"].reshape(f, CLUSTER, VLAD_OUT)
          .transpose(1, 0, 2).reshape(CLUSTER * f, VLAD_OUT))
    args = (h1, nv["bn2_g"], nv["bn2_b"], nv["bn2_m"], nv["bn2_v"],
            nv["gating_w"], nv["gating_b"])
    return pl.pallas_call(
        _vlad_head_kernel,
        out_shape=jax.ShapeDtypeStruct((vlad_flat.shape[0], VLAD_OUT),
                                       jnp.float32),
        in_specs=[_VMEM] * (1 + len(args)),
        out_specs=_VMEM,
    )(vlad_flat, *args)


# ------------------------------ full forward ----------------------------------
def overlap_vit_forward(x_nchw, params):
    w = x_nchw.shape[3]
    target_w = (w + 7) // 8 * 8
    # circle_pad_to_multiple_of_8: despite the name, the reference pads the
    # width with zeros on the right (F.pad mode='constant', value=0).
    x = jnp.pad(x_nchw, ((0, 0), (0, 0), (0, 0), (0, target_w - w)))

    b, c, hh, ww = x.shape
    ph, pw = PATCH
    gh, gw = hh // ph, ww // pw
    n = gh * gw
    # Rearrange 'b c (h p1) (w p2) -> b (h w) (p1 p2 c)'  (tiny XLA glue)
    patches = (x.reshape(b, c, gh, ph, gw, pw)
               .transpose(0, 2, 4, 3, 5, 1)
               .reshape(b, n, ph * pw * c))

    tokens = pl_vit(patches, params["vit"])                     # (B, N, DIM)

    k = K_TOP
    # torch.topk(out_l, k, dim=1): per-channel top-k over the token axis.
    # TODO(synk): top-k/sort has no Pallas primitive; kept as lax.top_k glue
    # (tie-breaking may differ from torch.topk on exactly-equal values).
    topk_vals = lax.top_k(tokens.transpose(0, 2, 1), k)[0]      # (B, DIM, k)
    enc_in = topk_vals.transpose(0, 2, 1)                       # (B, k, DIM)

    vlad = pl_encoder_vlad(tokens[:, :k, :], enc_in, params)    # (B, C, 2*DIM)
    vlad_flat = vlad.reshape(vlad.shape[0], CLUSTER * 2 * DIM)  # free reshape
    return pl_vlad_head(vlad_flat, params)                      # (B, VLAD_OUT)


# ------------------------------ parameter init --------------------------------
def init_params(key):
    keys = iter(jax.random.split(key, 64))

    def nrm(shape, scale=0.02):
        return scale * jax.random.normal(next(keys), shape, jnp.float32)

    ones = lambda *s: jnp.ones(s, jnp.float32)
    zeros = lambda *s: jnp.zeros(s, jnp.float32)

    patch_dim = PATCH[0] * PATCH[1] * C_IN
    n_patches = (H_IMG // PATCH[0]) * (((W_IMG + 7) // 8 * 8) // PATCH[1])
    seq = n_patches + 1
    inner = HEADS * DIM_HEAD

    vit = dict(
        patch_ln1_g=ones(1, patch_dim), patch_ln1_b=zeros(1, patch_dim),
        # weights stored as (in, out); transpose of torch nn.Linear.weight
        patch_w=nrm((patch_dim, DIM)), patch_b=nrm((1, DIM)),
        patch_ln2_g=ones(1, DIM), patch_ln2_b=zeros(1, DIM),
        cls_token=nrm((1, DIM), 1.0),
        pos_emb=nrm((seq, DIM), 1.0),          # row 0 = cls position (torch order)
        final_ln_g=ones(1, DIM), final_ln_b=zeros(1, DIM),
        # per-layer weights stacked on a leading DEPTH axis (depth-fused kernel)
        ln1_g=ones(DEPTH, 1, DIM), ln1_b=zeros(DEPTH, 1, DIM),
        wqkv=nrm((DEPTH, DIM, 3 * inner)),
        wo=nrm((DEPTH, inner, DIM)), bo=nrm((DEPTH, 1, DIM)),
        ln2_g=ones(DEPTH, 1, DIM), ln2_b=zeros(DEPTH, 1, DIM),
        w1=nrm((DEPTH, DIM, MLP_DIM)), b1=nrm((DEPTH, 1, MLP_DIM)),
        w2=nrm((DEPTH, MLP_DIM, DIM)), b2=nrm((DEPTH, 1, DIM)),
    )

    enc = dict(
        in_proj_w=nrm((DIM, 3 * DIM)), in_proj_b=nrm((1, 3 * DIM)),
        out_proj_w=nrm((DIM, DIM)), out_proj_b=nrm((1, DIM)),
        ln1_g=ones(1, DIM), ln1_b=zeros(1, DIM),
        ff_w1=nrm((DIM, ENC_FF)), ff_b1=nrm((1, ENC_FF)),
        ff_w2=nrm((ENC_FF, DIM)), ff_b2=nrm((1, DIM)),
        ln2_g=ones(1, DIM), ln2_b=zeros(1, DIM),
    )

    feat = 2 * DIM  # NetVLAD feature_size matched to its actual input channels
    netvlad = dict(
        cluster_w=nrm((feat, CLUSTER), 1.0 / math.sqrt(feat)),
        cluster_b=nrm((1, CLUSTER), 1.0 / math.sqrt(feat)),
        cluster_w2=nrm((feat, CLUSTER), 1.0 / math.sqrt(feat)),  # torch (1, F, C)
        hidden1_w=nrm((feat * CLUSTER, VLAD_OUT), 1.0 / math.sqrt(feat)),
        # BatchNorm1d(output_dim), eval mode; running stats / affine loadable
        # from a checkpoint instead of the fresh-init values below.
        bn2_g=ones(1, VLAD_OUT), bn2_b=zeros(1, VLAD_OUT),
        bn2_m=zeros(1, VLAD_OUT), bn2_v=ones(1, VLAD_OUT),
        gating_w=nrm((VLAD_OUT, VLAD_OUT), 1.0 / math.sqrt(VLAD_OUT)),
        gating_b=nrm((1, VLAD_OUT), 1.0 / math.sqrt(VLAD_OUT)),
    )

    # 1x1 conv weight stored as (in_ch, out_ch); a real PyTorch Conv2d weight
    # (out, in, 1, 1) must be imported as W[:, :, 0, 0].T
    conv2_w = nrm((2 * DIM, 2 * DIM))

    return dict(vit=vit, enc=enc, conv2_w=conv2_w, netvlad=netvlad)


# ------------------------------------ main -------------------------------------
if __name__ == "__main__":
    key = jax.random.PRNGKey(0)
    pkey, xkey = jax.random.split(key)
    params = init_params(pkey)
    x = jax.random.normal(xkey, (B, C_IN, H_IMG, W_IMG), jnp.float32)

    fwd = jax.jit(overlap_vit_forward)
    out = fwd(x, params)
    out = jax.block_until_ready(out)

    assert out.shape == (B, VLAD_OUT), out.shape
    assert bool(jnp.all(jnp.isfinite(out)))
    # output rows are L2-normalized
    assert bool(jnp.allclose(jnp.linalg.norm(out, axis=-1), 1.0, atol=1e-4))
    print("KERNEL_OK")
</pallas_src>

<mosaic_0001>
module attributes {stable_mosaic.version = 11 : i64} {
  func.func @_vit_kernel(%arg0: i32, %arg1: i32, %arg2: memref<1x8x64xf32, #tpu.memory_space<vmem>>, %arg3: memref<1x64xf32, #tpu.memory_space<vmem>>, %arg4: memref<1x64xf32, #tpu.memory_space<vmem>>, %arg5: memref<64x32xf32, #tpu.memory_space<vmem>>, %arg6: memref<1x32xf32, #tpu.memory_space<vmem>>, %arg7: memref<1x32xf32, #tpu.memory_space<vmem>>, %arg8: memref<1x32xf32, #tpu.memory_space<vmem>>, %arg9: memref<1x32xf32, #tpu.memory_space<vmem>>, %arg10: memref<9x32xf32, #tpu.memory_space<vmem>>, %arg11: memref<1x1x32xf32, #tpu.memory_space<vmem>>, %arg12: memref<1x1x32xf32, #tpu.memory_space<vmem>>, %arg13: memref<1x32x96xf32, #tpu.memory_space<vmem>>, %arg14: memref<1x32x32xf32, #tpu.memory_space<vmem>>, %arg15: memref<1x1x32xf32, #tpu.memory_space<vmem>>, %arg16: memref<1x1x32xf32, #tpu.memory_space<vmem>>, %arg17: memref<1x1x32xf32, #tpu.memory_space<vmem>>, %arg18: memref<1x32x64xf32, #tpu.memory_space<vmem>>, %arg19: memref<1x1x64xf32, #tpu.memory_space<vmem>>, %arg20: memref<1x64x32xf32, #tpu.memory_space<vmem>>, %arg21: memref<1x1x32xf32, #tpu.memory_space<vmem>>, %arg22: memref<1x32xf32, #tpu.memory_space<vmem>>, %arg23: memref<1x32xf32, #tpu.memory_space<vmem>>, %arg24: memref<1x9x32xf32, #tpu.memory_space<vmem>>) attributes {dimension_semantics = [#tpu.dimension_semantics<parallel>, #tpu.dimension_semantics<arbitrary>], iteration_bounds = array<i64: 2, 2>, scalar_prefetch = 0 : i64, scratch_operands = 0 : i64, tpu.core_type = #tpu.core_type<tc>, window_params = [{transform_indices = @transform_0, window_bounds = array<i64: 1, 8, 64>}, {pipeline_mode = #tpu.pipeline_mode<synchronous>, transform_indices = @transform_1, window_bounds = array<i64: 1, 64>}, {pipeline_mode = #tpu.pipeline_mode<synchronous>, transform_indices = @transform_2, window_bounds = array<i64: 1, 64>}, {pipeline_mode = #tpu.pipeline_mode<synchronous>, transform_indices = @transform_3, window_bounds = array<i64: 64, 32>}, {pipeline_mode = #tpu.pipeline_mode<synchronous>, transform_indices = @transform_4, window_bounds = array<i64: 1, 32>}, {pipeline_mode = #tpu.pipeline_mode<synchronous>, transform_indices = @transform_5, window_bounds = array<i64: 1, 32>}, {pipeline_mode = #tpu.pipeline_mode<synchronous>, transform_indices = @transform_6, window_bounds = array<i64: 1, 32>}, {pipeline_mode = #tpu.pipeline_mode<synchronous>, transform_indices = @transform_7, window_bounds = array<i64: 1, 32>}, {pipeline_mode = #tpu.pipeline_mode<synchronous>, transform_indices = @transform_8, window_bounds = array<i64: 9, 32>}, {transform_indices = @transform_9, window_bounds = array<i64: 1, 1, 32>}, {transform_indices = @transform_10, window_bounds = array<i64: 1, 1, 32>}, {transform_indices = @transform_11, window_bounds = array<i64: 1, 32, 96>}, {transform_indices = @transform_12, window_bounds = array<i64: 1, 32, 32>}, {transform_indices = @transform_13, window_bounds = array<i64: 1, 1, 32>}, {transform_indices = @transform_14, window_bounds = array<i64: 1, 1, 32>}, {transform_indices = @transform_15, window_bounds = array<i64: 1, 1, 32>}, {transform_indices = @transform_16, window_bounds = array<i64: 1, 32, 64>}, {transform_indices = @transform_17, window_bounds = array<i64: 1, 1, 64>}, {transform_indices = @transform_18, window_bounds = array<i64: 1, 64, 32>}, {transform_indices = @transform_19, window_bounds = array<i64: 1, 1, 32>}, {pipeline_mode = #tpu.pipeline_mode<synchronous>, transform_indices = @transform_20, window_bounds = array<i64: 1, 32>}, {pipeline_mode = #tpu.pipeline_mode<synchronous>, transform_indices = @transform_21, window_bounds = array<i64: 1, 32>}, {transform_indices = @transform_22, window_bounds = array<i64: 1, 9, 32>}]} {
    %c0_i32 = arith.constant 0 : i32
    %0 = arith.cmpi eq, %arg1, %c0_i32 : i32
    %1 = arith.extui %0 : i1 to i32
    %c0_i32_0 = arith.constant 0 : i32
    %2 = arith.cmpi ne, %1, %c0_i32_0 : i32
    scf.if %2 {
      %c0_88 = arith.constant 0 : index
      %c0_89 = arith.constant 0 : index
      %c0_90 = arith.constant 0 : index
      %218 = vector.load %arg2[%c0_88, %c0_89, %c0_90] : memref<1x8x64xf32, #tpu.memory_space<vmem>>, vector<1x8x64xf32>
      %219 = vector.shape_cast %218 : vector<1x8x64xf32> to vector<8x64xf32>
      %c0_91 = arith.constant 0 : index
      %c0_92 = arith.constant 0 : index
      %220 = vector.load %arg3[%c0_91, %c0_92] : memref<1x64xf32, #tpu.memory_space<vmem>>, vector<1x64xf32>
      %c0_93 = arith.constant 0 : index
      %c0_94 = arith.constant 0 : index
      %221 = vector.load %arg4[%c0_93, %c0_94] : memref<1x64xf32, #tpu.memory_space<vmem>>, vector<1x64xf32>
      %cst_95 = arith.constant dense<0.000000e+00> : vector<8xf32>
      %222 = vector.multi_reduction <add>, %219, %cst_95 [1] : vector<8x64xf32> to vector<8xf32>
      %223 = vector.shape_cast %222 : vector<8xf32> to vector<8x1xf32>
      %cst_96 = arith.constant 6.400000e+01 : f32
      %224 = vector.broadcast %cst_96 : f32 to vector<8x1xf32>
      %225 = arith.divf %223, %224 : vector<8x1xf32>
      %226 = vector.broadcast %225 : vector<8x1xf32> to vector<8x64xf32>
      %227 = arith.subf %219, %226 : vector<8x64xf32>
      %228 = arith.mulf %227, %227 : vector<8x64xf32>
      %cst_97 = arith.constant dense<0.000000e+00> : vector<8xf32>
      %229 = vector.multi_reduction <add>, %228, %cst_97 [1] : vector<8x64xf32> to vector<8xf32>
      %230 = vector.shape_cast %229 : vector<8xf32> to vector<8x1xf32>
      %cst_98 = arith.constant 6.400000e+01 : f32
      %231 = vector.broadcast %cst_98 : f32 to vector<8x1xf32>
      %232 = arith.divf %230, %231 : vector<8x1xf32>
      %cst_99 = arith.constant 9.99999974E-6 : f32
      %233 = vector.broadcast %cst_99 : f32 to vector<8x1xf32>
      %234 = arith.addf %232, %233 : vector<8x1xf32>
      %235 = math.rsqrt %234 : vector<8x1xf32>
      %236 = vector.broadcast %235 : vector<8x1xf32> to vector<8x64xf32>
      %237 = arith.mulf %227, %236 : vector<8x64xf32>
      %238 = vector.broadcast %220 : vector<1x64xf32> to vector<8x64xf32>
      %239 = arith.mulf %237, %238 : vector<8x64xf32>
      %240 = vector.broadcast %221 : vector<1x64xf32> to vector<8x64xf32>
      %241 = arith.addf %239, %240 : vector<8x64xf32>
      %c0_100 = arith.constant 0 : index
      %c0_101 = arith.constant 0 : index
      %242 = vector.load %arg5[%c0_100, %c0_101] : memref<64x32xf32, #tpu.memory_space<vmem>>, vector<64x32xf32>
      %243 = arith.truncf %241 : vector<8x64xf32> to vector<8x64xbf16>
      %244 = arith.truncf %242 : vector<64x32xf32> to vector<64x32xbf16>
      %cst_102 = arith.constant dense<0.000000e+00> : vector<8x32xf32>
      %245 = tpu.matmul %243, %244, %cst_102 {dimension_numbers = #tpu.dot_dimension_numbers<[1], [0], [0], [1], [0, 0, 1, 1], [], []>} : vector<8x64xbf16>, vector<64x32xbf16>, vector<8x32xf32> -> vector<8x32xf32>
      %c0_103 = arith.constant 0 : index
      %c0_104 = arith.constant 0 : index
      %246 = vector.load %arg6[%c0_103, %c0_104] : memref<1x32xf32, #tpu.memory_space<vmem>>, vector<1x32xf32>
      %247 = vector.broadcast %246 : vector<1x32xf32> to vector<8x32xf32>
      %248 = arith.addf %245, %247 : vector<8x32xf32>
      %c0_105 = arith.constant 0 : index
      %c0_106 = arith.constant 0 : index
      %249 = vector.load %arg7[%c0_105, %c0_106] : memref<1x32xf32, #tpu.memory_space<vmem>>, vector<1x32xf32>
      %c0_107 = arith.constant 0 : index
      %c0_108 = arith.constant 0 : index
      %250 = vector.load %arg8[%c0_107, %c0_108] : memref<1x32xf32, #tpu.memory_space<vmem>>, vector<1x32xf32>
      %cst_109 = arith.constant dense<0.000000e+00> : vector<8xf32>
      %251 = vector.multi_reduction <add>, %248, %cst_109 [1] : vector<8x32xf32> to vector<8xf32>
      %252 = vector.shape_cast %251 : vector<8xf32> to vector<8x1xf32>
      %cst_110 = arith.constant 3.200000e+01 : f32
      %253 = vector.broadcast %cst_110 : f32 to vector<8x1xf32>
      %254 = arith.divf %252, %253 : vector<8x1xf32>
      %255 = vector.broadcast %254 : vector<8x1xf32> to vector<8x32xf32>
      %256 = arith.subf %248, %255 : vector<8x32xf32>
      %257 = arith.mulf %256, %256 : vector<8x32xf32>
      %cst_111 = arith.constant dense<0.000000e+00> : vector<8xf32>
      %258 = vector.multi_reduction <add>, %257, %cst_111 [1] : vector<8x32xf32> to vector<8xf32>
      %259 = vector.shape_cast %258 : vector<8xf32> to vector<8x1xf32>
      %cst_112 = arith.constant 3.200000e+01 : f32
      %260 = vector.broadcast %cst_112 : f32 to vector<8x1xf32>
      %261 = arith.divf %259, %260 : vector<8x1xf32>
      %cst_113 = arith.constant 9.99999974E-6 : f32
      %262 = vector.broadcast %cst_113 : f32 to vector<8x1xf32>
      %263 = arith.addf %261, %262 : vector<8x1xf32>
      %264 = math.rsqrt %263 : vector<8x1xf32>
      %265 = vector.broadcast %264 : vector<8x1xf32> to vector<8x32xf32>
      %266 = arith.mulf %256, %265 : vector<8x32xf32>
      %267 = vector.broadcast %249 : vector<1x32xf32> to vector<8x32xf32>
      %268 = arith.mulf %266, %267 : vector<8x32xf32>
      %269 = vector.broadcast %250 : vector<1x32xf32> to vector<8x32xf32>
      %270 = arith.addf %268, %269 : vector<8x32xf32>
      %c0_114 = arith.constant 0 : index
      %c0_115 = arith.constant 0 : index
      %271 = vector.load %arg10[%c0_114, %c0_115] : memref<9x32xf32, #tpu.memory_space<vmem>>, vector<8x32xf32>
      %272 = arith.addf %270, %271 : vector<8x32xf32>
      %c0_116 = arith.constant 0 : index
      %c0_117 = arith.constant 0 : index
      %c0_118 = arith.constant 0 : index
      %273 = vector.load %arg24[%c0_116, %c0_117, %c0_118] : memref<1x9x32xf32, #tpu.memory_space<vmem>>, vector<1x8x32xf32>
      %274 = vector.shape_cast %273 : vector<1x8x32xf32> to vector<8x32xf32>
      %275 = vector.shape_cast %272 : vector<8x32xf32> to vector<1x8x32xf32>
      tpu.vector_store %arg24[%c0_116, %c0_117, %c0_118], %275 {strides = array<i32>} : memref<1x9x32xf32, #tpu.memory_space<vmem>>, vector<1x8x32xf32>,
      %c0_119 = arith.constant 0 : index
      %c0_120 = arith.constant 0 : index
      %276 = vector.load %arg9[%c0_119, %c0_120] : memref<1x32xf32, #tpu.memory_space<vmem>>, vector<1x32xf32>
      %c8 = arith.constant 8 : index
      %c0_121 = arith.constant 0 : index
      %277 = vector.load %arg10[%c8, %c0_121] : memref<9x32xf32, #tpu.memory_space<vmem>>, vector<1x32xf32>
      %278 = arith.addf %276, %277 : vector<1x32xf32>
      %c0_122 = arith.constant 0 : index
      %c8_123 = arith.constant 8 : index
      %c0_124 = arith.constant 0 : index
      %279 = vector.load %arg24[%c0_122, %c8_123, %c0_124] : memref<1x9x32xf32, #tpu.memory_space<vmem>>, vector<1x1x32xf32>
      %280 = vector.shape_cast %279 : vector<1x1x32xf32> to vector<1x32xf32>
      %281 = vector.shape_cast %278 : vector<1x32xf32> to vector<1x1x32xf32>
      tpu.vector_store %arg24[%c0_122, %c8_123, %c0_124], %281 {strides = array<i32>} : memref<1x9x32xf32, #tpu.memory_space<vmem>>, vector<1x1x32xf32>,
    } else {
    }
    %c0 = arith.constant 0 : index
    %c0_1 = arith.constant 0 : index
    %c0_2 = arith.constant 0 : index
    %3 = vector.load %arg24[%c0, %c0_1, %c0_2] : memref<1x9x32xf32, #tpu.memory_space<vmem>>, vector<1x9x32xf32>
    %4 = vector.shape_cast %3 : vector<1x9x32xf32> to vector<9x32xf32>
    %c0_3 = arith.constant 0 : index
    %c0_4 = arith.constant 0 : index
    %c0_5 = arith.constant 0 : index
    %5 = vector.load %arg11[%c0_3, %c0_4, %c0_5] : memref<1x1x32xf32, #tpu.memory_space<vmem>>, vector<1x1x32xf32>
    %6 = vector.shape_cast %5 : vector<1x1x32xf32> to vector<1x32xf32>
    %c0_6 = arith.constant 0 : index
    %c0_7 = arith.constant 0 : index
    %c0_8 = arith.constant 0 : index
    %7 = vector.load %arg12[%c0_6, %c0_7, %c0_8] : memref<1x1x32xf32, #tpu.memory_space<vmem>>, vector<1x1x32xf32>
    %8 = vector.shape_cast %7 : vector<1x1x32xf32> to vector<1x32xf32>
    %cst = arith.constant dense<0.000000e+00> : vector<9xf32>
    %9 = vector.multi_reduction <add>, %4, %cst [1] : vector<9x32xf32> to vector<9xf32>
    %10 = vector.shape_cast %9 : vector<9xf32> to vector<9x1xf32>
    %cst_9 = arith.constant 3.200000e+01 : f32
    %11 = vector.broadcast %cst_9 : f32 to vector<9x1xf32>
    %12 = arith.divf %10, %11 : vector<9x1xf32>
    %13 = vector.broadcast %12 : vector<9x1xf32> to vector<9x32xf32>
    %14 = arith.subf %4, %13 : vector<9x32xf32>
    %15 = arith.mulf %14, %14 : vector<9x32xf32>
    %cst_10 = arith.constant dense<0.000000e+00> : vector<9xf32>
    %16 = vector.multi_reduction <add>, %15, %cst_10 [1] : vector<9x32xf32> to vector<9xf32>
    %17 = vector.shape_cast %16 : vector<9xf32> to vector<9x1xf32>
    %cst_11 = arith.constant 3.200000e+01 : f32
    %18 = vector.broadcast %cst_11 : f32 to vector<9x1xf32>
    %19 = arith.divf %17, %18 : vector<9x1xf32>
    %cst_12 = arith.constant 9.99999974E-6 : f32
    %20 = vector.broadcast %cst_12 : f32 to vector<9x1xf32>
    %21 = arith.addf %19, %20 : vector<9x1xf32>
    %22 = math.rsqrt %21 : vector<9x1xf32>
    %23 = vector.broadcast %22 : vector<9x1xf32> to vector<9x32xf32>
    %24 = arith.mulf %14, %23 : vector<9x32xf32>
    %25 = vector.broadcast %6 : vector<1x32xf32> to vector<9x32xf32>
    %26 = arith.mulf %24, %25 : vector<9x32xf32>
    %27 = vector.broadcast %8 : vector<1x32xf32> to vector<9x32xf32>
    %28 = arith.addf %26, %27 : vector<9x32xf32>
    %c0_13 = arith.constant 0 : index
    %c0_14 = arith.constant 0 : index
    %c0_15 = arith.constant 0 : index
    %29 = vector.load %arg13[%c0_13, %c0_14, %c0_15] : memref<1x32x96xf32, #tpu.memory_space<vmem>>, vector<1x32x96xf32>
    %30 = vector.shape_cast %29 : vector<1x32x96xf32> to vector<32x96xf32>
    %c0_16 = arith.constant 0 : index
    %c0_17 = arith.constant 0 : index
    %c0_18 = arith.constant 0 : index
    %31 = vector.load %arg14[%c0_16, %c0_17, %c0_18] : memref<1x32x32xf32, #tpu.memory_space<vmem>>, vector<1x32x32xf32>
    %32 = vector.shape_cast %31 : vector<1x32x32xf32> to vector<32x32xf32>
    %c0_19 = arith.constant 0 : index
    %c0_20 = arith.constant 0 : index
    %c0_21 = arith.constant 0 : index
    %33 = vector.load %arg15[%c0_19, %c0_20, %c0_21] : memref<1x1x32xf32, #tpu.memory_space<vmem>>, vector<1x1x32xf32>
    %34 = vector.shape_cast %33 : vector<1x1x32xf32> to vector<1x32xf32>
    %35 = arith.truncf %28 : vector<9x32xf32> to vector<9x32xbf16>
    %36 = arith.truncf %30 : vector<32x96xf32> to vector<32x96xbf16>
    %cst_22 = arith.constant dense<0.000000e+00> : vector<9x96xf32>
    %37 = tpu.matmul %35, %36, %cst_22 {dimension_numbers = #tpu.dot_dimension_numbers<[1], [0], [0], [1], [0, 0, 1, 1], [], []>} : vector<9x32xbf16>, vector<32x96xbf16>, vector<9x96xf32> -> vector<9x96xf32>
    %38 = vector.extract_strided_slice %37 {offsets = [0, 0], sizes = [9, 8], strides = [1, 1]} : vector<9x96xf32> to vector<9x8xf32>
    %39 = vector.extract_strided_slice %37 {offsets = [0, 32], sizes = [9, 8], strides = [1, 1]} : vector<9x96xf32> to vector<9x8xf32>
    %40 = vector.extract_strided_slice %37 {offsets = [0, 64], sizes = [9, 8], strides = [1, 1]} : vector<9x96xf32> to vector<9x8xf32>
    %41 = arith.truncf %38 : vector<9x8xf32> to vector<9x8xbf16>
    %42 = arith.truncf %39 : vector<9x8xf32> to vector<9x8xbf16>
    %cst_23 = arith.constant dense<0.000000e+00> : vector<9x9xf32>
    %43 = tpu.matmul %41, %42, %cst_23 {dimension_numbers = #tpu.dot_dimension_numbers<[1], [1], [0], [0], [0, 0, 1, 0], [], []>} : vector<9x8xbf16>, vector<9x8xbf16>, vector<9x9xf32> -> vector<9x9xf32>
    %cst_24 = arith.constant 0.353553385 : f32
    %44 = vector.broadcast %cst_24 : f32 to vector<9x9xf32>
    %45 = arith.mulf %43, %44 : vector<9x9xf32>
    %cst_25 = arith.constant dense<0xFF800000> : vector<9xf32>
    %46 = vector.multi_reduction <maximumf>, %45, %cst_25 [1] : vector<9x9xf32> to vector<9xf32>
    %47 = vector.shape_cast %46 : vector<9xf32> to vector<9x1xf32>
    %48 = vector.broadcast %47 : vector<9x1xf32> to vector<9x9xf32>
    %49 = arith.subf %45, %48 : vector<9x9xf32>
    %50 = math.exp %49 : vector<9x9xf32>
    %cst_26 = arith.constant dense<0.000000e+00> : vector<9xf32>
    %51 = vector.multi_reduction <add>, %50, %cst_26 [1] : vector<9x9xf32> to vector<9xf32>
    %52 = vector.shape_cast %51 : vector<9xf32> to vector<9x1xf32>
    %53 = tpu.reciprocal %52 {approx = true} : vector<9x1xf32> -> vector<9x1xf32>
    %54 = vector.broadcast %53 : vector<9x1xf32> to vector<9x9xf32>
    %55 = arith.mulf %50, %54 : vector<9x9xf32>
    %56 = arith.truncf %55 : vector<9x9xf32> to vector<9x9xbf16>
    %57 = arith.truncf %40 : vector<9x8xf32> to vector<9x8xbf16>
    %cst_27 = arith.constant dense<0.000000e+00> : vector<9x8xf32>
    %58 = tpu.matmul %56, %57, %cst_27 {dimension_numbers = #tpu.dot_dimension_numbers<[1], [0], [0], [1], [0, 0, 1, 1], [], []>} : vector<9x9xbf16>, vector<9x8xbf16>, vector<9x8xf32> -> vector<9x8xf32>
    %59 = vector.extract_strided_slice %37 {offsets = [0, 8], sizes = [9, 8], strides = [1, 1]} : vector<9x96xf32> to vector<9x8xf32>
    %60 = vector.extract_strided_slice %37 {offsets = [0, 40], sizes = [9, 8], strides = [1, 1]} : vector<9x96xf32> to vector<9x8xf32>
    %61 = vector.extract_strided_slice %37 {offsets = [0, 72], sizes = [9, 8], strides = [1, 1]} : vector<9x96xf32> to vector<9x8xf32>
    %62 = arith.truncf %59 : vector<9x8xf32> to vector<9x8xbf16>
    %63 = arith.truncf %60 : vector<9x8xf32> to vector<9x8xbf16>
    %cst_28 = arith.constant dense<0.000000e+00> : vector<9x9xf32>
    %64 = tpu.matmul %62, %63, %cst_28 {dimension_numbers = #tpu.dot_dimension_numbers<[1], [1], [0], [0], [0, 0, 1, 0], [], []>} : vector<9x8xbf16>, vector<9x8xbf16>, vector<9x9xf32> -> vector<9x9xf32>
    %cst_29 = arith.constant 0.353553385 : f32
    %65 = vector.broadcast %cst_29 : f32 to vector<9x9xf32>
    %66 = arith.mulf %64, %65 : vector<9x9xf32>
    %cst_30 = arith.constant dense<0xFF800000> : vector<9xf32>
    %67 = vector.multi_reduction <maximumf>, %66, %cst_30 [1] : vector<9x9xf32> to vector<9xf32>
    %68 = vector.shape_cast %67 : vector<9xf32> to vector<9x1xf32>
    %69 = vector.broadcast %68 : vector<9x1xf32> to vector<9x9xf32>
    %70 = arith.subf %66, %69 : vector<9x9xf32>
    %71 = math.exp %70 : vector<9x9xf32>
    %cst_31 = arith.constant dense<0.000000e+00> : vector<9xf32>
    %72 = vector.multi_reduction <add>, %71, %cst_31 [1] : vector<9x9xf32> to vector<9xf32>
    %73 = vector.shape_cast %72 : vector<9xf32> to vector<9x1xf32>
    %74 = tpu.reciprocal %73 {approx = true} : vector<9x1xf32> -> vector<9x1xf32>
    %75 = vector.broadcast %74 : vector<9x1xf32> to vector<9x9xf32>
    %76 = arith.mulf %71, %75 : vector<9x9xf32>
    %77 = arith.truncf %76 : vector<9x9xf32> to vector<9x9xbf16>
    %78 = arith.truncf %61 : vector<9x8xf32> to vector<9x8xbf16>
    %cst_32 = arith.constant dense<0.000000e+00> : vector<9x8xf32>
    %79 = tpu.matmul %77, %78, %cst_32 {dimension_numbers = #tpu.dot_dimension_numbers<[1], [0], [0], [1], [0, 0, 1, 1], [], []>} : vector<9x9xbf16>, vector<9x8xbf16>, vector<9x8xf32> -> vector<9x8xf32>
    %80 = vector.extract_strided_slice %37 {offsets = [0, 16], sizes = [9, 8], strides = [1, 1]} : vector<9x96xf32> to vector<9x8xf32>
    %81 = vector.extract_strided_slice %37 {offsets = [0, 48], sizes = [9, 8], strides = [1, 1]} : vector<9x96xf32> to vector<9x8xf32>
    %82 = vector.extract_strided_slice %37 {offsets = [0, 80], sizes = [9, 8], strides = [1, 1]} : vector<9x96xf32> to vector<9x8xf32>
    %83 = arith.truncf %80 : vector<9x8xf32> to vector<9x8xbf16>
    %84 = arith.truncf %81 : vector<9x8xf32> to vector<9x8xbf16>
    %cst_33 = arith.constant dense<0.000000e+00> : vector<9x9xf32>
    %85 = tpu.matmul %83, %84, %cst_33 {dimension_numbers = #tpu.dot_dimension_numbers<[1], [1], [0], [0], [0, 0, 1, 0], [], []>} : vector<9x8xbf16>, vector<9x8xbf16>, vector<9x9xf32> -> vector<9x9xf32>
    %cst_34 = arith.constant 0.353553385 : f32
    %86 = vector.broadcast %cst_34 : f32 to vector<9x9xf32>
    %87 = arith.mulf %85, %86 : vector<9x9xf32>
    %cst_35 = arith.constant dense<0xFF800000> : vector<9xf32>
    %88 = vector.multi_reduction <maximumf>, %87, %cst_35 [1] : vector<9x9xf32> to vector<9xf32>
    %89 = vector.shape_cast %88 : vector<9xf32> to vector<9x1xf32>
    %90 = vector.broadcast %89 : vector<9x1xf32> to vector<9x9xf32>
    %91 = arith.subf %87, %90 : vector<9x9xf32>
    %92 = math.exp %91 : vector<9x9xf32>
    %cst_36 = arith.constant dense<0.000000e+00> : vector<9xf32>
    %93 = vector.multi_reduction <add>, %92, %cst_36 [1] : vector<9x9xf32> to vector<9xf32>
    %94 = vector.shape_cast %93 : vector<9xf32> to vector<9x1xf32>
    %95 = tpu.reciprocal %94 {approx = true} : vector<9x1xf32> -> vector<9x1xf32>
    %96 = vector.broadcast %95 : vector<9x1xf32> to vector<9x9xf32>
    %97 = arith.mulf %92, %96 : vector<9x9xf32>
    %98 = arith.truncf %97 : vector<9x9xf32> to vector<9x9xbf16>
    %99 = arith.truncf %82 : vector<9x8xf32> to vector<9x8xbf16>
    %cst_37 = arith.constant dense<0.000000e+00> : vector<9x8xf32>
    %100 = tpu.matmul %98, %99, %cst_37 {dimension_numbers = #tpu.dot_dimension_numbers<[1], [0], [0], [1], [0, 0, 1, 1], [], []>} : vector<9x9xbf16>, vector<9x8xbf16>, vector<9x8xf32> -> vector<9x8xf32>
    %101 = vector.extract_strided_slice %37 {offsets = [0, 24], sizes = [9, 8], strides = [1, 1]} : vector<9x96xf32> to vector<9x8xf32>
    %102 = vector.extract_strided_slice %37 {offsets = [0, 56], sizes = [9, 8], strides = [1, 1]} : vector<9x96xf32> to vector<9x8xf32>
    %103 = vector.extract_strided_slice %37 {offsets = [0, 88], sizes = [9, 8], strides = [1, 1]} : vector<9x96xf32> to vector<9x8xf32>
    %104 = arith.truncf %101 : vector<9x8xf32> to vector<9x8xbf16>
    %105 = arith.truncf %102 : vector<9x8xf32> to vector<9x8xbf16>
    %cst_38 = arith.constant dense<0.000000e+00> : vector<9x9xf32>
    %106 = tpu.matmul %104, %105, %cst_38 {dimension_numbers = #tpu.dot_dimension_numbers<[1], [1], [0], [0], [0, 0, 1, 0], [], []>} : vector<9x8xbf16>, vector<9x8xbf16>, vector<9x9xf32> -> vector<9x9xf32>
    %cst_39 = arith.constant 0.353553385 : f32
    %107 = vector.broadcast %cst_39 : f32 to vector<9x9xf32>
    %108 = arith.mulf %106, %107 : vector<9x9xf32>
    %cst_40 = arith.constant dense<0xFF800000> : vector<9xf32>
    %109 = vector.multi_reduction <maximumf>, %108, %cst_40 [1] : vector<9x9xf32> to vector<9xf32>
    %110 = vector.shape_cast %109 : vector<9xf32> to vector<9x1xf32>
    %111 = vector.broadcast %110 : vector<9x1xf32> to vector<9x9xf32>
    %112 = arith.subf %108, %111 : vector<9x9xf32>
    %113 = math.exp %112 : vector<9x9xf32>
    %cst_41 = arith.constant dense<0.000000e+00> : vector<9xf32>
    %114 = vector.multi_reduction <add>, %113, %cst_41 [1] : vector<9x9xf32> to vector<9xf32>
    %115 = vector.shape_cast %114 : vector<9xf32> to vector<9x1xf32>
    %116 = tpu.reciprocal %115 {approx = true} : vector<9x1xf32> -> vector<9x1xf32>
    %117 = vector.broadcast %116 : vector<9x1xf32> to vector<9x9xf32>
    %118 = arith.mulf %113, %117 : vector<9x9xf32>
    %119 = arith.truncf %118 : vector<9x9xf32> to vector<9x9xbf16>
    %120 = arith.truncf %103 : vector<9x8xf32> to vector<9x8xbf16>
    %cst_42 = arith.constant dense<0.000000e+00> : vector<9x8xf32>
    %121 = tpu.matmul %119, %120, %cst_42 {dimension_numbers = #tpu.dot_dimension_numbers<[1], [0], [0], [1], [0, 0, 1, 1], [], []>} : vector<9x9xbf16>, vector<9x8xbf16>, vector<9x8xf32> -> vector<9x8xf32>
    %122 = tpu.concatenate %58, %79, %100, %121 in 1 : vector<9x8xf32>, vector<9x8xf32>, vector<9x8xf32>, vector<9x8xf32> -> vector<9x32xf32>
    %123 = arith.truncf %122 : vector<9x32xf32> to vector<9x32xbf16>
    %124 = arith.truncf %32 : vector<32x32xf32> to vector<32x32xbf16>
    %cst_43 = arith.constant dense<0.000000e+00> : vector<9x32xf32>
    %125 = tpu.matmul %123, %124, %cst_43 {dimension_numbers = #tpu.dot_dimension_numbers<[1], [0], [0], [1], [0, 0, 1, 1], [], []>} : vector<9x32xbf16>, vector<32x32xbf16>, vector<9x32xf32> -> vector<9x32xf32>
    %126 = vector.broadcast %34 : vector<1x32xf32> to vector<9x32xf32>
    %127 = arith.addf %125, %126 : vector<9x32xf32>
    %128 = arith.addf %4, %127 : vector<9x32xf32>
    %c0_44 = arith.constant 0 : index
    %c0_45 = arith.constant 0 : index
    %c0_46 = arith.constant 0 : index
    %129 = vector.load %arg16[%c0_44, %c0_45, %c0_46] : memref<1x1x32xf32, #tpu.memory_space<vmem>>, vector<1x1x32xf32>
    %130 = vector.shape_cast %129 : vector<1x1x32xf32> to vector<1x32xf32>
    %c0_47 = arith.constant 0 : index
    %c0_48 = arith.constant 0 : index
    %c0_49 = arith.constant 0 : index
    %131 = vector.load %arg17[%c0_47, %c0_48, %c0_49] : memref<1x1x32xf32, #tpu.memory_space<vmem>>, vector<1x1x32xf32>
    %132 = vector.shape_cast %131 : vector<1x1x32xf32> to vector<1x32xf32>
    %cst_50 = arith.constant dense<0.000000e+00> : vector<9xf32>
    %133 = vector.multi_reduction <add>, %128, %cst_50 [1] : vector<9x32xf32> to vector<9xf32>
    %134 = vector.shape_cast %133 : vector<9xf32> to vector<9x1xf32>
    %cst_51 = arith.constant 3.200000e+01 : f32
    %135 = vector.broadcast %cst_51 : f32 to vector<9x1xf32>
    %136 = arith.divf %134, %135 : vector<9x1xf32>
    %137 = vector.broadcast %136 : vector<9x1xf32> to vector<9x32xf32>
    %138 = arith.subf %128, %137 : vector<9x32xf32>
    %139 = arith.mulf %138, %138 : vector<9x32xf32>
    %cst_52 = arith.constant dense<0.000000e+00> : vector<9xf32>
    %140 = vector.multi_reduction <add>, %139, %cst_52 [1] : vector<9x32xf32> to vector<9xf32>
    %141 = vector.shape_cast %140 : vector<9xf32> to vector<9x1xf32>
    %cst_53 = arith.constant 3.200000e+01 : f32
    %142 = vector.broadcast %cst_53 : f32 to vector<9x1xf32>
    %143 = arith.divf %141, %142 : vector<9x1xf32>
    %cst_54 = arith.constant 9.99999974E-6 : f32
    %144 = vector.broadcast %cst_54 : f32 to vector<9x1xf32>
    %145 = arith.addf %143, %144 : vector<9x1xf32>
    %146 = math.rsqrt %145 : vector<9x1xf32>
    %147 = vector.broadcast %146 : vector<9x1xf32> to vector<9x32xf32>
    %148 = arith.mulf %138, %147 : vector<9x32xf32>
    %149 = vector.broadcast %130 : vector<1x32xf32> to vector<9x32xf32>
    %150 = arith.mulf %148, %149 : vector<9x32xf32>
    %151 = vector.broadcast %132 : vector<1x32xf32> to vector<9x32xf32>
    %152 = arith.addf %150, %151 : vector<9x32xf32>
    %c0_55 = arith.constant 0 : index
    %c0_56 = arith.constant 0 : index
    %c0_57 = arith.constant 0 : index
    %153 = vector.load %arg18[%c0_55, %c0_56, %c0_57] : memref<1x32x64xf32, #tpu.memory_space<vmem>>, vector<1x32x64xf32>
    %154 = vector.shape_cast %153 : vector<1x32x64xf32> to vector<32x64xf32>
    %155 = arith.truncf %152 : vector<9x32xf32> to vector<9x32xbf16>
    %156 = arith.truncf %154 : vector<32x64xf32> to vector<32x64xbf16>
    %cst_58 = arith.constant dense<0.000000e+00> : vector<9x64xf32>
    %157 = tpu.matmul %155, %156, %cst_58 {dimension_numbers = #tpu.dot_dimension_numbers<[1], [0], [0], [1], [0, 0, 1, 1], [], []>} : vector<9x32xbf16>, vector<32x64xbf16>, vector<9x64xf32> -> vector<9x64xf32>
    %c0_59 = arith.constant 0 : index
    %c0_60 = arith.constant 0 : index
    %c0_61 = arith.constant 0 : index
    %158 = vector.load %arg19[%c0_59, %c0_60, %c0_61] : memref<1x1x64xf32, #tpu.memory_space<vmem>>, vector<1x1x64xf32>
    %159 = vector.shape_cast %158 : vector<1x1x64xf32> to vector<1x64xf32>
    %160 = vector.broadcast %159 : vector<1x64xf32> to vector<9x64xf32>
    %161 = arith.addf %157, %160 : vector<9x64xf32>
    %cst_62 = arith.constant 5.000000e-01 : f32
    %162 = vector.broadcast %cst_62 : f32 to vector<9x64xf32>
    %163 = arith.mulf %162, %161 : vector<9x64xf32>
    %cst_63 = arith.constant 0.707106769 : f32
    %164 = vector.broadcast %cst_63 : f32 to vector<9x64xf32>
    %165 = arith.mulf %161, %164 : vector<9x64xf32>
    %166 = math.absf %165 : vector<9x64xf32>
    %cst_64 = arith.constant 0.327591091 : f32
    %167 = vector.broadcast %cst_64 : f32 to vector<9x64xf32>
    %168 = arith.mulf %167, %166 : vector<9x64xf32>
    %cst_65 = arith.constant 1.000000e+00 : f32
    %169 = vector.broadcast %cst_65 : f32 to vector<9x64xf32>
    %170 = arith.addf %169, %168 : vector<9x64xf32>
    %cst_66 = arith.constant 1.000000e+00 : f32
    %171 = vector.broadcast %cst_66 : f32 to vector<9x64xf32>
    %172 = arith.divf %171, %170 : vector<9x64xf32>
    %cst_67 = arith.constant 1.06140542 : f32
    %173 = vector.broadcast %cst_67 : f32 to vector<9x64xf32>
    %174 = arith.mulf %173, %172 : vector<9x64xf32>
    %cst_68 = arith.constant 1.45315206 : f32
    %175 = vector.broadcast %cst_68 : f32 to vector<9x64xf32>
    %176 = arith.subf %174, %175 : vector<9x64xf32>
    %177 = arith.mulf %176, %172 : vector<9x64xf32>
    %cst_69 = arith.constant 1.42141378 : f32
    %178 = vector.broadcast %cst_69 : f32 to vector<9x64xf32>
    %179 = arith.addf %177, %178 : vector<9x64xf32>
    %180 = arith.mulf %179, %172 : vector<9x64xf32>
    %cst_70 = arith.constant 0.284496725 : f32
    %181 = vector.broadcast %cst_70 : f32 to vector<9x64xf32>
    %182 = arith.subf %180, %181 : vector<9x64xf32>
    %183 = arith.mulf %182, %172 : vector<9x64xf32>
    %cst_71 = arith.constant 0.254829586 : f32
    %184 = vector.broadcast %cst_71 : f32 to vector<9x64xf32>
    %185 = arith.addf %183, %184 : vector<9x64xf32>
    %186 = arith.mulf %185, %172 : vector<9x64xf32>
    %187 = arith.mulf %166, %166 : vector<9x64xf32>
    %cst_72 = arith.constant 0.000000e+00 : f32
    %188 = vector.broadcast %cst_72 : f32 to vector<9x64xf32>
    %189 = arith.subf %188, %187 : vector<9x64xf32>
    %190 = math.exp %189 : vector<9x64xf32>
    %191 = arith.mulf %186, %190 : vector<9x64xf32>
    %cst_73 = arith.constant 1.000000e+00 : f32
    %192 = vector.broadcast %cst_73 : f32 to vector<9x64xf32>
    %193 = arith.subf %192, %191 : vector<9x64xf32>
    %cst_74 = arith.constant 0.000000e+00 : f32
    %194 = vector.broadcast %cst_74 : f32 to vector<9x64xf32>
    %195 = arith.cmpf oge, %165, %194 : vector<9x64xf32>
    %cst_75 = arith.constant 0.000000e+00 : f32
    %196 = vector.broadcast %cst_75 : f32 to vector<9x64xf32>
    %197 = arith.subf %196, %193 : vector<9x64xf32>
    %198 = arith.select %195, %193, %197 : vector<9x64xi1>, vector<9x64xf32>
    %cst_76 = arith.constant 1.000000e+00 : f32
    %199 = vector.broadcast %cst_76 : f32 to vector<9x64xf32>
    %200 = arith.addf %199, %198 : vector<9x64xf32>
    %201 = arith.mulf %163, %200 : vector<9x64xf32>
    %c0_77 = arith.constant 0 : index
    %c0_78 = arith.constant 0 : index
    %c0_79 = arith.constant 0 : index
    %202 = vector.load %arg20[%c0_77, %c0_78, %c0_79] : memref<1x64x32xf32, #tpu.memory_space<vmem>>, vector<1x64x32xf32>
    %203 = vector.shape_cast %202 : vector<1x64x32xf32> to vector<64x32xf32>
    %204 = arith.truncf %201 : vector<9x64xf32> to vector<9x64xbf16>
    %205 = arith.truncf %203 : vector<64x32xf32> to vector<64x32xbf16>
    %cst_80 = arith.constant dense<0.000000e+00> : vector<9x32xf32>
    %206 = tpu.matmul %204, %205, %cst_80 {dimension_numbers = #tpu.dot_dimension_numbers<[1], [0], [0], [1], [0, 0, 1, 1], [], []>} : vector<9x64xbf16>, vector<64x32xbf16>, vector<9x32xf32> -> vector<9x32xf32>
    %c0_81 = arith.constant 0 : index
    %c0_82 = arith.constant 0 : index
    %c0_83 = arith.constant 0 : index
    %207 = vector.load %arg21[%c0_81, %c0_82, %c0_83] : memref<1x1x32xf32, #tpu.memory_space<vmem>>, vector<1x1x32xf32>
    %208 = vector.shape_cast %207 : vector<1x1x32xf32> to vector<1x32xf32>
    %209 = vector.broadcast %208 : vector<1x32xf32> to vector<9x32xf32>
    %210 = arith.addf %206, %209 : vector<9x32xf32>
    %211 = arith.addf %128, %210 : vector<9x32xf32>
    %c0_84 = arith.constant 0 : index
    %c0_85 = arith.constant 0 : index
    %c0_86 = arith.constant 0 : index
    %212 = vector.load %arg24[%c0_84, %c0_85, %c0_86] : memref<1x9x32xf32, #tpu.memory_space<vmem>>, vector<1x9x32xf32>
    %213 = vector.shape_cast %212 : vector<1x9x32xf32> to vector<9x32xf32>
    %214 = vector.shape_cast %211 : vector<9x32xf32> to vector<1x9x32xf32>
    tpu.vector_store %arg24[%c0_84, %c0_85, %c0_86], %214 {strides = array<i32>} : memref<1x9x32xf32, #tpu.memory_space<vmem>>, vector<1x9x32xf32>,
    %c1_i32 = arith.constant 1 : i32
    %215 = arith.cmpi eq, %arg1, %c1_i32 : i32
    %216 = arith.extui %215 : i1 to i32
    %c0_i32_87 = arith.constant 0 : i32
    %217 = arith.cmpi ne, %216, %c0_i32_87 : i32
    scf.if %217 {
      %c0_88 = arith.constant 0 : index
      %c0_89 = arith.constant 0 : index
      %218 = vector.load %arg22[%c0_88, %c0_89] : memref<1x32xf32, #tpu.memory_space<vmem>>, vector<1x32xf32>
      %c0_90 = arith.constant 0 : index
      %c0_91 = arith.constant 0 : index
      %219 = vector.load %arg23[%c0_90, %c0_91] : memref<1x32xf32, #tpu.memory_space<vmem>>, vector<1x32xf32>
      %cst_92 = arith.constant dense<0.000000e+00> : vector<9xf32>
      %220 = vector.multi_reduction <add>, %211, %cst_92 [1] : vector<9x32xf32> to vector<9xf32>
      %221 = vector.shape_cast %220 : vector<9xf32> to vector<9x1xf32>
      %cst_93 = arith.constant 3.200000e+01 : f32
      %222 = vector.broadcast %cst_93 : f32 to vector<9x1xf32>
      %223 = arith.divf %221, %222 : vector<9x1xf32>
      %224 = vector.broadcast %223 : vector<9x1xf32> to vector<9x32xf32>
      %225 = arith.subf %211, %224 : vector<9x32xf32>
      %226 = arith.mulf %225, %225 : vector<9x32xf32>
      %cst_94 = arith.constant dense<0.000000e+00> : vector<9xf32>
      %227 = vector.multi_reduction <add>, %226, %cst_94 [1] : vector<9x32xf32> to vector<9xf32>
      %228 = vector.shape_cast %227 : vector<9xf32> to vector<9x1xf32>
      %cst_95 = arith.constant 3.200000e+01 : f32
      %229 = vector.broadcast %cst_95 : f32 to vector<9x1xf32>
      %230 = arith.divf %228, %229 : vector<9x1xf32>
      %cst_96 = arith.constant 9.99999974E-6 : f32
      %231 = vector.broadcast %cst_96 : f32 to vector<9x1xf32>
      %232 = arith.addf %230, %231 : vector<9x1xf32>
      %233 = math.rsqrt %232 : vector<9x1xf32>
      %234 = vector.broadcast %233 : vector<9x1xf32> to vector<9x32xf32>
      %235 = arith.mulf %225, %234 : vector<9x32xf32>
      %236 = vector.broadcast %218 : vector<1x32xf32> to vector<9x32xf32>
      %237 = arith.mulf %235, %236 : vector<9x32xf32>
      %238 = vector.broadcast %219 : vector<1x32xf32> to vector<9x32xf32>
      %239 = arith.addf %237, %238 : vector<9x32xf32>
      %c0_97 = arith.constant 0 : index
      %c0_98 = arith.constant 0 : index
      %c0_99 = arith.constant 0 : index
      %240 = vector.load %arg24[%c0_97, %c0_98, %c0_99] : memref<1x9x32xf32, #tpu.memory_space<vmem>>, vector<1x9x32xf32>
      %241 = vector.shape_cast %240 : vector<1x9x32xf32> to vector<9x32xf32>
      %242 = vector.shape_cast %239 : vector<9x32xf32> to vector<1x9x32xf32>
      tpu.vector_store %arg24[%c0_97, %c0_98, %c0_99], %242 {strides = array<i32>} : memref<1x9x32xf32, #tpu.memory_space<vmem>>, vector<1x9x32xf32>,
    } else {
    }
    return
  }
  func.func @transform_0(%arg0: i32, %arg1: i32) -> (i32, i32, i32) {
    %c0_i32 = arith.constant 0 : i32
    %c0_i32_0 = arith.constant 0 : i32
    %c0_i32_1 = arith.constant 0 : i32
    return %arg0, %c0_i32, %c0_i32_0 : i32, i32, i32
  }
  func.func @transform_1(%arg0: i32, %arg1: i32) -> (i32, i32) {
    %c0_i32 = arith.constant 0 : i32
    %c0_i32_0 = arith.constant 0 : i32
    %c0_i32_1 = arith.constant 0 : i32
    return %c0_i32, %c0_i32_0 : i32, i32
  }
  func.func @transform_2(%arg0: i32, %arg1: i32) -> (i32, i32) {
    %c0_i32 = arith.constant 0 : i32
    %c0_i32_0 = arith.constant 0 : i32
    %c0_i32_1 = arith.constant 0 : i32
    return %c0_i32, %c0_i32_0 : i32, i32
  }
  func.func @transform_3(%arg0: i32, %arg1: i32) -> (i32, i32) {
    %c0_i32 = arith.constant 0 : i32
    %c0_i32_0 = arith.constant 0 : i32
    %c0_i32_1 = arith.constant 0 : i32
    return %c0_i32, %c0_i32_0 : i32, i32
  }
  func.func @transform_4(%arg0: i32, %arg1: i32) -> (i32, i32) {
    %c0_i32 = arith.constant 0 : i32
    %c0_i32_0 = arith.constant 0 : i32
    %c0_i32_1 = arith.constant 0 : i32
    return %c0_i32, %c0_i32_0 : i32, i32
  }
  func.func @transform_5(%arg0: i32, %arg1: i32) -> (i32, i32) {
    %c0_i32 = arith.constant 0 : i32
    %c0_i32_0 = arith.constant 0 : i32
    %c0_i32_1 = arith.constant 0 : i32
    return %c0_i32, %c0_i32_0 : i32, i32
  }
  func.func @transform_6(%arg0: i32, %arg1: i32) -> (i32, i32) {
    %c0_i32 = arith.constant 0 : i32
    %c0_i32_0 = arith.constant 0 : i32
    %c0_i32_1 = arith.constant 0 : i32
    return %c0_i32, %c0_i32_0 : i32, i32
  }
  func.func @transform_7(%arg0: i32, %arg1: i32) -> (i32, i32) {
    %c0_i32 = arith.constant 0 : i32
    %c0_i32_0 = arith.constant 0 : i32
    %c0_i32_1 = arith.constant 0 : i32
    return %c0_i32, %c0_i32_0 : i32, i32
  }
  func.func @transform_8(%arg0: i32, %arg1: i32) -> (i32, i32) {
    %c0_i32 = arith.constant 0 : i32
    %c0_i32_0 = arith.constant 0 : i32
    %c0_i32_1 = arith.constant 0 : i32
    return %c0_i32, %c0_i32_0 : i32, i32
  }
  func.func @transform_9(%arg0: i32, %arg1: i32) -> (i32, i32, i32) {
    %c0_i32 = arith.constant 0 : i32
    %c0_i32_0 = arith.constant 0 : i32
    %c0_i32_1 = arith.constant 0 : i32
    return %arg1, %c0_i32, %c0_i32_0 : i32, i32, i32
  }
  func.func @transform_10(%arg0: i32, %arg1: i32) -> (i32, i32, i32) {
    %c0_i32 = arith.constant 0 : i32
    %c0_i32_0 = arith.constant 0 : i32
    %c0_i32_1 = arith.constant 0 : i32
    return %arg1, %c0_i32, %c0_i32_0 : i32, i32, i32
  }
  func.func @transform_11(%arg0: i32, %arg1: i32) -> (i32, i32, i32) {
    %c0_i32 = arith.constant 0 : i32
    %c0_i32_0 = arith.constant 0 : i32
    %c0_i32_1 = arith.constant 0 : i32
    return %arg1, %c0_i32, %c0_i32_0 : i32, i32, i32
  }
  func.func @transform_12(%arg0: i32, %arg1: i32) -> (i32, i32, i32) {
    %c0_i32 = arith.constant 0 : i32
    %c0_i32_0 = arith.constant 0 : i32
    %c0_i32_1 = arith.constant 0 : i32
    return %arg1, %c0_i32, %c0_i32_0 : i32, i32, i32
  }
  func.func @transform_13(%arg0: i32, %arg1: i32) -> (i32, i32, i32) {
    %c0_i32 = arith.constant 0 : i32
    %c0_i32_0 = arith.constant 0 : i32
    %c0_i32_1 = arith.constant 0 : i32
    return %arg1, %c0_i32, %c0_i32_0 : i32, i32, i32
  }
  func.func @transform_14(%arg0: i32, %arg1: i32) -> (i32, i32, i32) {
    %c0_i32 = arith.constant 0 : i32
    %c0_i32_0 = arith.constant 0 : i32
    %c0_i32_1 = arith.constant 0 : i32
    return %arg1, %c0_i32, %c0_i32_0 : i32, i32, i32
  }
  func.func @transform_15(%arg0: i32, %arg1: i32) -> (i32, i32, i32) {
    %c0_i32 = arith.constant 0 : i32
    %c0_i32_0 = arith.constant 0 : i32
    %c0_i32_1 = arith.constant 0 : i32
    return %arg1, %c0_i32, %c0_i32_0 : i32, i32, i32
  }
  func.func @transform_16(%arg0: i32, %arg1: i32) -> (i32, i32, i32) {
    %c0_i32 = arith.constant 0 : i32
    %c0_i32_0 = arith.constant 0 : i32
    %c0_i32_1 = arith.constant 0 : i32
    return %arg1, %c0_i32, %c0_i32_0 : i32, i32, i32
  }
  func.func @transform_17(%arg0: i32, %arg1: i32) -> (i32, i32, i32) {
    %c0_i32 = arith.constant 0 : i32
    %c0_i32_0 = arith.constant 0 : i32
    %c0_i32_1 = arith.constant 0 : i32
    return %arg1, %c0_i32, %c0_i32_0 : i32, i32, i32
  }
  func.func @transform_18(%arg0: i32, %arg1: i32) -> (i32, i32, i32) {
    %c0_i32 = arith.constant 0 : i32
    %c0_i32_0 = arith.constant 0 : i32
    %c0_i32_1 = arith.constant 0 : i32
    return %arg1, %c0_i32, %c0_i32_0 : i32, i32, i32
  }
  func.func @transform_19(%arg0: i32, %arg1: i32) -> (i32, i32, i32) {
    %c0_i32 = arith.constant 0 : i32
    %c0_i32_0 = arith.constant 0 : i32
    %c0_i32_1 = arith.constant 0 : i32
    return %arg1, %c0_i32, %c0_i32_0 : i32, i32, i32
  }
  func.func @transform_20(%arg0: i32, %arg1: i32) -> (i32, i32) {
    %c0_i32 = arith.constant 0 : i32
    %c0_i32_0 = arith.constant 0 : i32
    %c0_i32_1 = arith.constant 0 : i32
    return %c0_i32, %c0_i32_0 : i32, i32
  }
  func.func @transform_21(%arg0: i32, %arg1: i32) -> (i32, i32) {
    %c0_i32 = arith.constant 0 : i32
    %c0_i32_0 = arith.constant 0 : i32
    %c0_i32_1 = arith.constant 0 : i32
    return %c0_i32, %c0_i32_0 : i32, i32
  }
  func.func @transform_22(%arg0: i32, %arg1: i32) -> (i32, i32, i32) {
    %c0_i32 = arith.constant 0 : i32
    %c0_i32_0 = arith.constant 0 : i32
    %c0_i32_1 = arith.constant 0 : i32
    return %arg0, %c0_i32, %c0_i32_0 : i32, i32, i32
  }
}

module attributes {stable_mosaic.version = 11 : i64} {
  func.func @_vlad_head_kernel(%arg0: memref<2x512xf32, #tpu.memory_space<vmem>>, %arg1: memref<512x32xf32, #tpu.memory_space<vmem>>, %arg2: memref<1x32xf32, #tpu.memory_space<vmem>>, %arg3: memref<1x32xf32, #tpu.memory_space<vmem>>, %arg4: memref<1x32xf32, #tpu.memory_space<vmem>>, %arg5: memref<1x32xf32, #tpu.memory_space<vmem>>, %arg6: memref<32x32xf32, #tpu.memory_space<vmem>>, %arg7: memref<1x32xf32, #tpu.memory_space<vmem>>, %arg8: memref<2x32xf32, #tpu.memory_space<vmem>>) attributes {dimension_semantics = [], scalar_prefetch = 0 : i64, scratch_operands = 0 : i64, tpu.core_type = #tpu.core_type<tc>} {
    %c0 = arith.constant 0 : index
    %c0_0 = arith.constant 0 : index
    %0 = vector.load %arg0[%c0, %c0_0] : memref<2x512xf32, #tpu.memory_space<vmem>>, vector<2x512xf32>
    %c0_1 = arith.constant 0 : index
    %c0_2 = arith.constant 0 : index
    %1 = vector.load %arg1[%c0_1, %c0_2] : memref<512x32xf32, #tpu.memory_space<vmem>>, vector<512x32xf32>
    %2 = arith.truncf %0 : vector<2x512xf32> to vector<2x512xbf16>
    %3 = arith.truncf %1 : vector<512x32xf32> to vector<512x32xbf16>
    %cst = arith.constant dense<0.000000e+00> : vector<2x32xf32>
    %4 = tpu.matmul %2, %3, %cst {dimension_numbers = #tpu.dot_dimension_numbers<[1], [0], [0], [1], [0, 0, 1, 1], [], []>} : vector<2x512xbf16>, vector<512x32xbf16>, vector<2x32xf32> -> vector<2x32xf32>
    %c0_3 = arith.constant 0 : index
    %c0_4 = arith.constant 0 : index
    %5 = vector.load %arg4[%c0_3, %c0_4] : memref<1x32xf32, #tpu.memory_space<vmem>>, vector<1x32xf32>
    %6 = vector.broadcast %5 : vector<1x32xf32> to vector<2x32xf32>
    %7 = arith.subf %4, %6 : vector<2x32xf32>
    %c0_5 = arith.constant 0 : index
    %c0_6 = arith.constant 0 : index
    %8 = vector.load %arg5[%c0_5, %c0_6] : memref<1x32xf32, #tpu.memory_space<vmem>>, vector<1x32xf32>
    %cst_7 = arith.constant 9.99999974E-6 : f32
    %9 = vector.broadcast %cst_7 : f32 to vector<1x32xf32>
    %10 = arith.addf %8, %9 : vector<1x32xf32>
    %11 = math.rsqrt %10 : vector<1x32xf32>
    %12 = vector.broadcast %11 : vector<1x32xf32> to vector<2x32xf32>
    %13 = arith.mulf %7, %12 : vector<2x32xf32>
    %c0_8 = arith.constant 0 : index
    %c0_9 = arith.constant 0 : index
    %14 = vector.load %arg2[%c0_8, %c0_9] : memref<1x32xf32, #tpu.memory_space<vmem>>, vector<1x32xf32>
    %15 = vector.broadcast %14 : vector<1x32xf32> to vector<2x32xf32>
    %16 = arith.mulf %13, %15 : vector<2x32xf32>
    %c0_10 = arith.constant 0 : index
    %c0_11 = arith.constant 0 : index
    %17 = vector.load %arg3[%c0_10, %c0_11] : memref<1x32xf32, #tpu.memory_space<vmem>>, vector<1x32xf32>
    %18 = vector.broadcast %17 : vector<1x32xf32> to vector<2x32xf32>
    %19 = arith.addf %16, %18 : vector<2x32xf32>
    %c0_12 = arith.constant 0 : index
    %c0_13 = arith.constant 0 : index
    %20 = vector.load %arg6[%c0_12, %c0_13] : memref<32x32xf32, #tpu.memory_space<vmem>>, vector<32x32xf32>
    %21 = arith.truncf %19 : vector<2x32xf32> to vector<2x32xbf16>
    %22 = arith.truncf %20 : vector<32x32xf32> to vector<32x32xbf16>
    %cst_14 = arith.constant dense<0.000000e+00> : vector<2x32xf32>
    %23 = tpu.matmul %21, %22, %cst_14 {dimension_numbers = #tpu.dot_dimension_numbers<[1], [0], [0], [1], [0, 0, 1, 1], [], []>} : vector<2x32xbf16>, vector<32x32xbf16>, vector<2x32xf32> -> vector<2x32xf32>
    %c0_15 = arith.constant 0 : index
    %c0_16 = arith.constant 0 : index
    %24 = vector.load %arg7[%c0_15, %c0_16] : memref<1x32xf32, #tpu.memory_space<vmem>>, vector<1x32xf32>
    %25 = vector.broadcast %24 : vector<1x32xf32> to vector<2x32xf32>
    %26 = arith.addf %23, %25 : vector<2x32xf32>
    %27 = arith.negf %26 : vector<2x32xf32>
    %28 = math.exp %27 : vector<2x32xf32>
    %cst_17 = arith.constant 1.000000e+00 : f32
    %29 = vector.broadcast %cst_17 : f32 to vector<2x32xf32>
    %30 = arith.addf %29, %28 : vector<2x32xf32>
    %31 = arith.divf %29, %30 : vector<2x32xf32>
    %32 = arith.mulf %19, %31 : vector<2x32xf32>
    %33 = arith.mulf %32, %32 : vector<2x32xf32>
    %cst_18 = arith.constant dense<0.000000e+00> : vector<2xf32>
    %34 = vector.multi_reduction <add>, %33, %cst_18 [1] : vector<2x32xf32> to vector<2xf32>
    %35 = vector.shape_cast %34 : vector<2xf32> to vector<2x1xf32>
    %cst_19 = arith.constant 1.000000e-24 : f32
    %36 = vector.broadcast %cst_19 : f32 to vector<2x1xf32>
    %37 = arith.maximumf %35, %36 : vector<2x1xf32>
    %38 = math.rsqrt %37 : vector<2x1xf32>
    %39 = vector.broadcast %38 : vector<2x1xf32> to vector<2x32xf32>
    %40 = arith.mulf %32, %39 : vector<2x32xf32>
    %c0_20 = arith.constant 0 : index
    %c0_21 = arith.constant 0 : index
    %41 = vector.load %arg8[%c0_20, %c0_21] : memref<2x32xf32, #tpu.memory_space<vmem>>, vector<2x32xf32>
    tpu.vector_store %arg8[%c0_20, %c0_21], %40 {strides = array<i32>} : memref<2x32xf32, #tpu.memory_space<vmem>>, vector<2x32xf32>,
    return
  }
}

module attributes {stable_mosaic.version = 11 : i64} {
  func.func @_enc_vlad_kernel(%arg0: i32, %arg1: memref<1x4x32xf32, #tpu.memory_space<vmem>>, %arg2: memref<1x4x32xf32, #tpu.memory_space<vmem>>, %arg3: memref<32x96xf32, #tpu.memory_space<vmem>>, %arg4: memref<1x96xf32, #tpu.memory_space<vmem>>, %arg5: memref<32x32xf32, #tpu.memory_space<vmem>>, %arg6: memref<1x32xf32, #tpu.memory_space<vmem>>, %arg7: memref<1x32xf32, #tpu.memory_space<vmem>>, %arg8: memref<1x32xf32, #tpu.memory_space<vmem>>, %arg9: memref<32x64xf32, #tpu.memory_space<vmem>>, %arg10: memref<1x64xf32, #tpu.memory_space<vmem>>, %arg11: memref<64x32xf32, #tpu.memory_space<vmem>>, %arg12: memref<1x32xf32, #tpu.memory_space<vmem>>, %arg13: memref<1x32xf32, #tpu.memory_space<vmem>>, %arg14: memref<1x32xf32, #tpu.memory_space<vmem>>, %arg15: memref<32x64xf32, #tpu.memory_space<vmem>>, %arg16: memref<32x64xf32, #tpu.memory_space<vmem>>, %arg17: memref<64x8xf32, #tpu.memory_space<vmem>>, %arg18: memref<1x8xf32, #tpu.memory_space<vmem>>, %arg19: memref<8x64xf32, #tpu.memory_space<vmem>>, %arg20: memref<1x8x64xf32, #tpu.memory_space<vmem>>) attributes {dimension_semantics = [#tpu.dimension_semantics<parallel>], iteration_bounds = array<i64: 2>, scalar_prefetch = 0 : i64, scratch_operands = 0 : i64, tpu.core_type = #tpu.core_type<tc>, window_params = [{transform_indices = @transform_0, window_bounds = array<i64: 1, 4, 32>}, {transform_indices = @transform_1, window_bounds = array<i64: 1, 4, 32>}, {pipeline_mode = #tpu.pipeline_mode<synchronous>, transform_indices = @transform_2, window_bounds = array<i64: 32, 96>}, {pipeline_mode = #tpu.pipeline_mode<synchronous>, transform_indices = @transform_3, window_bounds = array<i64: 1, 96>}, {pipeline_mode = #tpu.pipeline_mode<synchronous>, transform_indices = @transform_4, window_bounds = array<i64: 32, 32>}, {pipeline_mode = #tpu.pipeline_mode<synchronous>, transform_indices = @transform_5, window_bounds = array<i64: 1, 32>}, {pipeline_mode = #tpu.pipeline_mode<synchronous>, transform_indices = @transform_6, window_bounds = array<i64: 1, 32>}, {pipeline_mode = #tpu.pipeline_mode<synchronous>, transform_indices = @transform_7, window_bounds = array<i64: 1, 32>}, {pipeline_mode = #tpu.pipeline_mode<synchronous>, transform_indices = @transform_8, window_bounds = array<i64: 32, 64>}, {pipeline_mode = #tpu.pipeline_mode<synchronous>, transform_indices = @transform_9, window_bounds = array<i64: 1, 64>}, {pipeline_mode = #tpu.pipeline_mode<synchronous>, transform_indices = @transform_10, window_bounds = array<i64: 64, 32>}, {pipeline_mode = #tpu.pipeline_mode<synchronous>, transform_indices = @transform_11, window_bounds = array<i64: 1, 32>}, {pipeline_mode = #tpu.pipeline_mode<synchronous>, transform_indices = @transform_12, window_bounds = array<i64: 1, 32>}, {pipeline_mode = #tpu.pipeline_mode<synchronous>, transform_indices = @transform_13, window_bounds = array<i64: 1, 32>}, {pipeline_mode = #tpu.pipeline_mode<synchronous>, transform_indices = @transform_14, window_bounds = array<i64: 32, 64>}, {pipeline_mode = #tpu.pipeline_mode<synchronous>, transform_indices = @transform_15, window_bounds = array<i64: 32, 64>}, {pipeline_mode = #tpu.pipeline_mode<synchronous>, transform_indices = @transform_16, window_bounds = array<i64: 64, 8>}, {pipeline_mode = #tpu.pipeline_mode<synchronous>, transform_indices = @transform_17, window_bounds = array<i64: 1, 8>}, {pipeline_mode = #tpu.pipeline_mode<synchronous>, transform_indices = @transform_18, window_bounds = array<i64: 8, 64>}, {transform_indices = @transform_19, window_bounds = array<i64: 1, 8, 64>}]} {
    %c0 = arith.constant 0 : index
    %c0_0 = arith.constant 0 : index
    %c0_1 = arith.constant 0 : index
    %0 = vector.load %arg2[%c0, %c0_0, %c0_1] : memref<1x4x32xf32, #tpu.memory_space<vmem>>, vector<1x4x32xf32>
    %1 = vector.shape_cast %0 : vector<1x4x32xf32> to vector<4x32xf32>
    %c0_2 = arith.constant 0 : index
    %c0_3 = arith.constant 0 : index
    %2 = vector.load %arg3[%c0_2, %c0_3] : memref<32x96xf32, #tpu.memory_space<vmem>>, vector<32x96xf32>
    %c0_4 = arith.constant 0 : index
    %c0_5 = arith.constant 0 : index
    %3 = vector.load %arg4[%c0_4, %c0_5] : memref<1x96xf32, #tpu.memory_space<vmem>>, vector<1x96xf32>
    %c0_6 = arith.constant 0 : index
    %c0_7 = arith.constant 0 : index
    %4 = vector.load %arg5[%c0_6, %c0_7] : memref<32x32xf32, #tpu.memory_space<vmem>>, vector<32x32xf32>
    %c0_8 = arith.constant 0 : index
    %c0_9 = arith.constant 0 : index
    %5 = vector.load %arg6[%c0_8, %c0_9] : memref<1x32xf32, #tpu.memory_space<vmem>>, vector<1x32xf32>
    %6 = arith.truncf %1 : vector<4x32xf32> to vector<4x32xbf16>
    %7 = arith.truncf %2 : vector<32x96xf32> to vector<32x96xbf16>
    %cst = arith.constant dense<0.000000e+00> : vector<4x96xf32>
    %8 = tpu.matmul %6, %7, %cst {dimension_numbers = #tpu.dot_dimension_numbers<[1], [0], [0], [1], [0, 0, 1, 1], [], []>} : vector<4x32xbf16>, vector<32x96xbf16>, vector<4x96xf32> -> vector<4x96xf32>
    %9 = vector.broadcast %3 : vector<1x96xf32> to vector<4x96xf32>
    %10 = arith.addf %8, %9 : vector<4x96xf32>
    %11 = vector.extract_strided_slice %10 {offsets = [0, 0], sizes = [4, 8], strides = [1, 1]} : vector<4x96xf32> to vector<4x8xf32>
    %12 = vector.extract_strided_slice %10 {offsets = [0, 32], sizes = [4, 8], strides = [1, 1]} : vector<4x96xf32> to vector<4x8xf32>
    %13 = vector.extract_strided_slice %10 {offsets = [0, 64], sizes = [4, 8], strides = [1, 1]} : vector<4x96xf32> to vector<4x8xf32>
    %14 = arith.truncf %11 : vector<4x8xf32> to vector<4x8xbf16>
    %15 = arith.truncf %12 : vector<4x8xf32> to vector<4x8xbf16>
    %cst_10 = arith.constant dense<0.000000e+00> : vector<4x4xf32>
    %16 = tpu.matmul %14, %15, %cst_10 {dimension_numbers = #tpu.dot_dimension_numbers<[1], [1], [0], [0], [0, 0, 1, 0], [], []>} : vector<4x8xbf16>, vector<4x8xbf16>, vector<4x4xf32> -> vector<4x4xf32>
    %cst_11 = arith.constant 0.353553385 : f32
    %17 = vector.broadcast %cst_11 : f32 to vector<4x4xf32>
    %18 = arith.mulf %16, %17 : vector<4x4xf32>
    %cst_12 = arith.constant dense<0xFF800000> : vector<4xf32>
    %19 = vector.multi_reduction <maximumf>, %18, %cst_12 [1] : vector<4x4xf32> to vector<4xf32>
    %20 = vector.shape_cast %19 : vector<4xf32> to vector<4x1xf32>
    %21 = vector.broadcast %20 : vector<4x1xf32> to vector<4x4xf32>
    %22 = arith.subf %18, %21 : vector<4x4xf32>
    %23 = math.exp %22 : vector<4x4xf32>
    %cst_13 = arith.constant dense<0.000000e+00> : vector<4xf32>
    %24 = vector.multi_reduction <add>, %23, %cst_13 [1] : vector<4x4xf32> to vector<4xf32>
    %25 = vector.shape_cast %24 : vector<4xf32> to vector<4x1xf32>
    %26 = tpu.reciprocal %25 {approx = true} : vector<4x1xf32> -> vector<4x1xf32>
    %27 = vector.broadcast %26 : vector<4x1xf32> to vector<4x4xf32>
    %28 = arith.mulf %23, %27 : vector<4x4xf32>
    %29 = arith.truncf %28 : vector<4x4xf32> to vector<4x4xbf16>
    %30 = arith.truncf %13 : vector<4x8xf32> to vector<4x8xbf16>
    %cst_14 = arith.constant dense<0.000000e+00> : vector<4x8xf32>
    %31 = tpu.matmul %29, %30, %cst_14 {dimension_numbers = #tpu.dot_dimension_numbers<[1], [0], [0], [1], [0, 0, 1, 1], [], []>} : vector<4x4xbf16>, vector<4x8xbf16>, vector<4x8xf32> -> vector<4x8xf32>
    %32 = vector.extract_strided_slice %10 {offsets = [0, 8], sizes = [4, 8], strides = [1, 1]} : vector<4x96xf32> to vector<4x8xf32>
    %33 = vector.extract_strided_slice %10 {offsets = [0, 40], sizes = [4, 8], strides = [1, 1]} : vector<4x96xf32> to vector<4x8xf32>
    %34 = vector.extract_strided_slice %10 {offsets = [0, 72], sizes = [4, 8], strides = [1, 1]} : vector<4x96xf32> to vector<4x8xf32>
    %35 = arith.truncf %32 : vector<4x8xf32> to vector<4x8xbf16>
    %36 = arith.truncf %33 : vector<4x8xf32> to vector<4x8xbf16>
    %cst_15 = arith.constant dense<0.000000e+00> : vector<4x4xf32>
    %37 = tpu.matmul %35, %36, %cst_15 {dimension_numbers = #tpu.dot_dimension_numbers<[1], [1], [0], [0], [0, 0, 1, 0], [], []>} : vector<4x8xbf16>, vector<4x8xbf16>, vector<4x4xf32> -> vector<4x4xf32>
    %cst_16 = arith.constant 0.353553385 : f32
    %38 = vector.broadcast %cst_16 : f32 to vector<4x4xf32>
    %39 = arith.mulf %37, %38 : vector<4x4xf32>
    %cst_17 = arith.constant dense<0xFF800000> : vector<4xf32>
    %40 = vector.multi_reduction <maximumf>, %39, %cst_17 [1] : vector<4x4xf32> to vector<4xf32>
    %41 = vector.shape_cast %40 : vector<4xf32> to vector<4x1xf32>
    %42 = vector.broadcast %41 : vector<4x1xf32> to vector<4x4xf32>
    %43 = arith.subf %39, %42 : vector<4x4xf32>
    %44 = math.exp %43 : vector<4x4xf32>
    %cst_18 = arith.constant dense<0.000000e+00> : vector<4xf32>
    %45 = vector.multi_reduction <add>, %44, %cst_18 [1] : vector<4x4xf32> to vector<4xf32>
    %46 = vector.shape_cast %45 : vector<4xf32> to vector<4x1xf32>
    %47 = tpu.reciprocal %46 {approx = true} : vector<4x1xf32> -> vector<4x1xf32>
    %48 = vector.broadcast %47 : vector<4x1xf32> to vector<4x4xf32>
    %49 = arith.mulf %44, %48 : vector<4x4xf32>
    %50 = arith.truncf %49 : vector<4x4xf32> to vector<4x4xbf16>
    %51 = arith.truncf %34 : vector<4x8xf32> to vector<4x8xbf16>
    %cst_19 = arith.constant dense<0.000000e+00> : vector<4x8xf32>
    %52 = tpu.matmul %50, %51, %cst_19 {dimension_numbers = #tpu.dot_dimension_numbers<[1], [0], [0], [1], [0, 0, 1, 1], [], []>} : vector<4x4xbf16>, vector<4x8xbf16>, vector<4x8xf32> -> vector<4x8xf32>
    %53 = vector.extract_strided_slice %10 {offsets = [0, 16], sizes = [4, 8], strides = [1, 1]} : vector<4x96xf32> to vector<4x8xf32>
    %54 = vector.extract_strided_slice %10 {offsets = [0, 48], sizes = [4, 8], strides = [1, 1]} : vector<4x96xf32> to vector<4x8xf32>
    %55 = vector.extract_strided_slice %10 {offsets = [0, 80], sizes = [4, 8], strides = [1, 1]} : vector<4x96xf32> to vector<4x8xf32>
    %56 = arith.truncf %53 : vector<4x8xf32> to vector<4x8xbf16>
    %57 = arith.truncf %54 : vector<4x8xf32> to vector<4x8xbf16>
    %cst_20 = arith.constant dense<0.000000e+00> : vector<4x4xf32>
    %58 = tpu.matmul %56, %57, %cst_20 {dimension_numbers = #tpu.dot_dimension_numbers<[1], [1], [0], [0], [0, 0, 1, 0], [], []>} : vector<4x8xbf16>, vector<4x8xbf16>, vector<4x4xf32> -> vector<4x4xf32>
    %cst_21 = arith.constant 0.353553385 : f32
    %59 = vector.broadcast %cst_21 : f32 to vector<4x4xf32>
    %60 = arith.mulf %58, %59 : vector<4x4xf32>
    %cst_22 = arith.constant dense<0xFF800000> : vector<4xf32>
    %61 = vector.multi_reduction <maximumf>, %60, %cst_22 [1] : vector<4x4xf32> to vector<4xf32>
    %62 = vector.shape_cast %61 : vector<4xf32> to vector<4x1xf32>
    %63 = vector.broadcast %62 : vector<4x1xf32> to vector<4x4xf32>
    %64 = arith.subf %60, %63 : vector<4x4xf32>
    %65 = math.exp %64 : vector<4x4xf32>
    %cst_23 = arith.constant dense<0.000000e+00> : vector<4xf32>
    %66 = vector.multi_reduction <add>, %65, %cst_23 [1] : vector<4x4xf32> to vector<4xf32>
    %67 = vector.shape_cast %66 : vector<4xf32> to vector<4x1xf32>
    %68 = tpu.reciprocal %67 {approx = true} : vector<4x1xf32> -> vector<4x1xf32>
    %69 = vector.broadcast %68 : vector<4x1xf32> to vector<4x4xf32>
    %70 = arith.mulf %65, %69 : vector<4x4xf32>
    %71 = arith.truncf %70 : vector<4x4xf32> to vector<4x4xbf16>
    %72 = arith.truncf %55 : vector<4x8xf32> to vector<4x8xbf16>
    %cst_24 = arith.constant dense<0.000000e+00> : vector<4x8xf32>
    %73 = tpu.matmul %71, %72, %cst_24 {dimension_numbers = #tpu.dot_dimension_numbers<[1], [0], [0], [1], [0, 0, 1, 1], [], []>} : vector<4x4xbf16>, vector<4x8xbf16>, vector<4x8xf32> -> vector<4x8xf32>
    %74 = vector.extract_strided_slice %10 {offsets = [0, 24], sizes = [4, 8], strides = [1, 1]} : vector<4x96xf32> to vector<4x8xf32>
    %75 = vector.extract_strided_slice %10 {offsets = [0, 56], sizes = [4, 8], strides = [1, 1]} : vector<4x96xf32> to vector<4x8xf32>
    %76 = vector.extract_strided_slice %10 {offsets = [0, 88], sizes = [4, 8], strides = [1, 1]} : vector<4x96xf32> to vector<4x8xf32>
    %77 = arith.truncf %74 : vector<4x8xf32> to vector<4x8xbf16>
    %78 = arith.truncf %75 : vector<4x8xf32> to vector<4x8xbf16>
    %cst_25 = arith.constant dense<0.000000e+00> : vector<4x4xf32>
    %79 = tpu.matmul %77, %78, %cst_25 {dimension_numbers = #tpu.dot_dimension_numbers<[1], [1], [0], [0], [0, 0, 1, 0], [], []>} : vector<4x8xbf16>, vector<4x8xbf16>, vector<4x4xf32> -> vector<4x4xf32>
    %cst_26 = arith.constant 0.353553385 : f32
    %80 = vector.broadcast %cst_26 : f32 to vector<4x4xf32>
    %81 = arith.mulf %79, %80 : vector<4x4xf32>
    %cst_27 = arith.constant dense<0xFF800000> : vector<4xf32>
    %82 = vector.multi_reduction <maximumf>, %81, %cst_27 [1] : vector<4x4xf32> to vector<4xf32>
    %83 = vector.shape_cast %82 : vector<4xf32> to vector<4x1xf32>
    %84 = vector.broadcast %83 : vector<4x1xf32> to vector<4x4xf32>
    %85 = arith.subf %81, %84 : vector<4x4xf32>
    %86 = math.exp %85 : vector<4x4xf32>
    %cst_28 = arith.constant dense<0.000000e+00> : vector<4xf32>
    %87 = vector.multi_reduction <add>, %86, %cst_28 [1] : vector<4x4xf32> to vector<4xf32>
    %88 = vector.shape_cast %87 : vector<4xf32> to vector<4x1xf32>
    %89 = tpu.reciprocal %88 {approx = true} : vector<4x1xf32> -> vector<4x1xf32>
    %90 = vector.broadcast %89 : vector<4x1xf32> to vector<4x4xf32>
    %91 = arith.mulf %86, %90 : vector<4x4xf32>
    %92 = arith.truncf %91 : vector<4x4xf32> to vector<4x4xbf16>
    %93 = arith.truncf %76 : vector<4x8xf32> to vector<4x8xbf16>
    %cst_29 = arith.constant dense<0.000000e+00> : vector<4x8xf32>
    %94 = tpu.matmul %92, %93, %cst_29 {dimension_numbers = #tpu.dot_dimension_numbers<[1], [0], [0], [1], [0, 0, 1, 1], [], []>} : vector<4x4xbf16>, vector<4x8xbf16>, vector<4x8xf32> -> vector<4x8xf32>
    %95 = tpu.concatenate %31, %52, %73, %94 in 1 : vector<4x8xf32>, vector<4x8xf32>, vector<4x8xf32>, vector<4x8xf32> -> vector<4x32xf32>
    %96 = arith.truncf %95 : vector<4x32xf32> to vector<4x32xbf16>
    %97 = arith.truncf %4 : vector<32x32xf32> to vector<32x32xbf16>
    %cst_30 = arith.constant dense<0.000000e+00> : vector<4x32xf32>
    %98 = tpu.matmul %96, %97, %cst_30 {dimension_numbers = #tpu.dot_dimension_numbers<[1], [0], [0], [1], [0, 0, 1, 1], [], []>} : vector<4x32xbf16>, vector<32x32xbf16>, vector<4x32xf32> -> vector<4x32xf32>
    %99 = vector.broadcast %5 : vector<1x32xf32> to vector<4x32xf32>
    %100 = arith.addf %98, %99 : vector<4x32xf32>
    %101 = arith.addf %1, %100 : vector<4x32xf32>
    %c0_31 = arith.constant 0 : index
    %c0_32 = arith.constant 0 : index
    %102 = vector.load %arg7[%c0_31, %c0_32] : memref<1x32xf32, #tpu.memory_space<vmem>>, vector<1x32xf32>
    %c0_33 = arith.constant 0 : index
    %c0_34 = arith.constant 0 : index
    %103 = vector.load %arg8[%c0_33, %c0_34] : memref<1x32xf32, #tpu.memory_space<vmem>>, vector<1x32xf32>
    %cst_35 = arith.constant dense<0.000000e+00> : vector<4xf32>
    %104 = vector.multi_reduction <add>, %101, %cst_35 [1] : vector<4x32xf32> to vector<4xf32>
    %105 = vector.shape_cast %104 : vector<4xf32> to vector<4x1xf32>
    %cst_36 = arith.constant 3.200000e+01 : f32
    %106 = vector.broadcast %cst_36 : f32 to vector<4x1xf32>
    %107 = arith.divf %105, %106 : vector<4x1xf32>
    %108 = vector.broadcast %107 : vector<4x1xf32> to vector<4x32xf32>
    %109 = arith.subf %101, %108 : vector<4x32xf32>
    %110 = arith.mulf %109, %109 : vector<4x32xf32>
    %cst_37 = arith.constant dense<0.000000e+00> : vector<4xf32>
    %111 = vector.multi_reduction <add>, %110, %cst_37 [1] : vector<4x32xf32> to vector<4xf32>
    %112 = vector.shape_cast %111 : vector<4xf32> to vector<4x1xf32>
    %cst_38 = arith.constant 3.200000e+01 : f32
    %113 = vector.broadcast %cst_38 : f32 to vector<4x1xf32>
    %114 = arith.divf %112, %113 : vector<4x1xf32>
    %cst_39 = arith.constant 9.99999974E-6 : f32
    %115 = vector.broadcast %cst_39 : f32 to vector<4x1xf32>
    %116 = arith.addf %114, %115 : vector<4x1xf32>
    %117 = math.rsqrt %116 : vector<4x1xf32>
    %118 = vector.broadcast %117 : vector<4x1xf32> to vector<4x32xf32>
    %119 = arith.mulf %109, %118 : vector<4x32xf32>
    %120 = vector.broadcast %102 : vector<1x32xf32> to vector<4x32xf32>
    %121 = arith.mulf %119, %120 : vector<4x32xf32>
    %122 = vector.broadcast %103 : vector<1x32xf32> to vector<4x32xf32>
    %123 = arith.addf %121, %122 : vector<4x32xf32>
    %c0_40 = arith.constant 0 : index
    %c0_41 = arith.constant 0 : index
    %124 = vector.load %arg9[%c0_40, %c0_41] : memref<32x64xf32, #tpu.memory_space<vmem>>, vector<32x64xf32>
    %125 = arith.truncf %123 : vector<4x32xf32> to vector<4x32xbf16>
    %126 = arith.truncf %124 : vector<32x64xf32> to vector<32x64xbf16>
    %cst_42 = arith.constant dense<0.000000e+00> : vector<4x64xf32>
    %127 = tpu.matmul %125, %126, %cst_42 {dimension_numbers = #tpu.dot_dimension_numbers<[1], [0], [0], [1], [0, 0, 1, 1], [], []>} : vector<4x32xbf16>, vector<32x64xbf16>, vector<4x64xf32> -> vector<4x64xf32>
    %c0_43 = arith.constant 0 : index
    %c0_44 = arith.constant 0 : index
    %128 = vector.load %arg10[%c0_43, %c0_44] : memref<1x64xf32, #tpu.memory_space<vmem>>, vector<1x64xf32>
    %129 = vector.broadcast %128 : vector<1x64xf32> to vector<4x64xf32>
    %130 = arith.addf %127, %129 : vector<4x64xf32>
    %cst_45 = arith.constant 0.000000e+00 : f32
    %131 = vector.broadcast %cst_45 : f32 to vector<4x64xf32>
    %132 = arith.maximumf %130, %131 : vector<4x64xf32>
    %c0_46 = arith.constant 0 : index
    %c0_47 = arith.constant 0 : index
    %133 = vector.load %arg11[%c0_46, %c0_47] : memref<64x32xf32, #tpu.memory_space<vmem>>, vector<64x32xf32>
    %134 = arith.truncf %132 : vector<4x64xf32> to vector<4x64xbf16>
    %135 = arith.truncf %133 : vector<64x32xf32> to vector<64x32xbf16>
    %cst_48 = arith.constant dense<0.000000e+00> : vector<4x32xf32>
    %136 = tpu.matmul %134, %135, %cst_48 {dimension_numbers = #tpu.dot_dimension_numbers<[1], [0], [0], [1], [0, 0, 1, 1], [], []>} : vector<4x64xbf16>, vector<64x32xbf16>, vector<4x32xf32> -> vector<4x32xf32>
    %c0_49 = arith.constant 0 : index
    %c0_50 = arith.constant 0 : index
    %137 = vector.load %arg12[%c0_49, %c0_50] : memref<1x32xf32, #tpu.memory_space<vmem>>, vector<1x32xf32>
    %138 = vector.broadcast %137 : vector<1x32xf32> to vector<4x32xf32>
    %139 = arith.addf %136, %138 : vector<4x32xf32>
    %140 = arith.addf %123, %139 : vector<4x32xf32>
    %c0_51 = arith.constant 0 : index
    %c0_52 = arith.constant 0 : index
    %141 = vector.load %arg13[%c0_51, %c0_52] : memref<1x32xf32, #tpu.memory_space<vmem>>, vector<1x32xf32>
    %c0_53 = arith.constant 0 : index
    %c0_54 = arith.constant 0 : index
    %142 = vector.load %arg14[%c0_53, %c0_54] : memref<1x32xf32, #tpu.memory_space<vmem>>, vector<1x32xf32>
    %cst_55 = arith.constant dense<0.000000e+00> : vector<4xf32>
    %143 = vector.multi_reduction <add>, %140, %cst_55 [1] : vector<4x32xf32> to vector<4xf32>
    %144 = vector.shape_cast %143 : vector<4xf32> to vector<4x1xf32>
    %cst_56 = arith.constant 3.200000e+01 : f32
    %145 = vector.broadcast %cst_56 : f32 to vector<4x1xf32>
    %146 = arith.divf %144, %145 : vector<4x1xf32>
    %147 = vector.broadcast %146 : vector<4x1xf32> to vector<4x32xf32>
    %148 = arith.subf %140, %147 : vector<4x32xf32>
    %149 = arith.mulf %148, %148 : vector<4x32xf32>
    %cst_57 = arith.constant dense<0.000000e+00> : vector<4xf32>
    %150 = vector.multi_reduction <add>, %149, %cst_57 [1] : vector<4x32xf32> to vector<4xf32>
    %151 = vector.shape_cast %150 : vector<4xf32> to vector<4x1xf32>
    %cst_58 = arith.constant 3.200000e+01 : f32
    %152 = vector.broadcast %cst_58 : f32 to vector<4x1xf32>
    %153 = arith.divf %151, %152 : vector<4x1xf32>
    %cst_59 = arith.constant 9.99999974E-6 : f32
    %154 = vector.broadcast %cst_59 : f32 to vector<4x1xf32>
    %155 = arith.addf %153, %154 : vector<4x1xf32>
    %156 = math.rsqrt %155 : vector<4x1xf32>
    %157 = vector.broadcast %156 : vector<4x1xf32> to vector<4x32xf32>
    %158 = arith.mulf %148, %157 : vector<4x32xf32>
    %159 = vector.broadcast %141 : vector<1x32xf32> to vector<4x32xf32>
    %160 = arith.mulf %158, %159 : vector<4x32xf32>
    %161 = vector.broadcast %142 : vector<1x32xf32> to vector<4x32xf32>
    %162 = arith.addf %160, %161 : vector<4x32xf32>
    %c0_60 = arith.constant 0 : index
    %c0_61 = arith.constant 0 : index
    %c0_62 = arith.constant 0 : index
    %163 = vector.load %arg1[%c0_60, %c0_61, %c0_62] : memref<1x4x32xf32, #tpu.memory_space<vmem>>, vector<1x4x32xf32>
    %164 = vector.shape_cast %163 : vector<1x4x32xf32> to vector<4x32xf32>
    %c0_63 = arith.constant 0 : index
    %c0_64 = arith.constant 0 : index
    %165 = vector.load %arg15[%c0_63, %c0_64] : memref<32x64xf32, #tpu.memory_space<vmem>>, vector<32x64xf32>
    %166 = arith.truncf %164 : vector<4x32xf32> to vector<4x32xbf16>
    %167 = arith.truncf %165 : vector<32x64xf32> to vector<32x64xbf16>
    %cst_65 = arith.constant dense<0.000000e+00> : vector<4x64xf32>
    %168 = tpu.matmul %166, %167, %cst_65 {dimension_numbers = #tpu.dot_dimension_numbers<[1], [0], [0], [1], [0, 0, 1, 1], [], []>} : vector<4x32xbf16>, vector<32x64xbf16>, vector<4x64xf32> -> vector<4x64xf32>
    %c0_66 = arith.constant 0 : index
    %c0_67 = arith.constant 0 : index
    %169 = vector.load %arg16[%c0_66, %c0_67] : memref<32x64xf32, #tpu.memory_space<vmem>>, vector<32x64xf32>
    %170 = arith.truncf %162 : vector<4x32xf32> to vector<4x32xbf16>
    %171 = arith.truncf %169 : vector<32x64xf32> to vector<32x64xbf16>
    %cst_68 = arith.constant dense<0.000000e+00> : vector<4x64xf32>
    %172 = tpu.matmul %170, %171, %cst_68 {dimension_numbers = #tpu.dot_dimension_numbers<[1], [0], [0], [1], [0, 0, 1, 1], [], []>} : vector<4x32xbf16>, vector<32x64xbf16>, vector<4x64xf32> -> vector<4x64xf32>
    %173 = arith.addf %168, %172 : vector<4x64xf32>
    %cst_69 = arith.constant 0.000000e+00 : f32
    %174 = vector.broadcast %cst_69 : f32 to vector<4x64xf32>
    %175 = arith.maximumf %173, %174 : vector<4x64xf32>
    %176 = arith.mulf %175, %175 : vector<4x64xf32>
    %cst_70 = arith.constant dense<0.000000e+00> : vector<4xf32>
    %177 = vector.multi_reduction <add>, %176, %cst_70 [1] : vector<4x64xf32> to vector<4xf32>
    %178 = vector.shape_cast %177 : vector<4xf32> to vector<4x1xf32>
    %cst_71 = arith.constant 1.000000e-24 : f32
    %179 = vector.broadcast %cst_71 : f32 to vector<4x1xf32>
    %180 = arith.maximumf %178, %179 : vector<4x1xf32>
    %181 = math.rsqrt %180 : vector<4x1xf32>
    %182 = vector.broadcast %181 : vector<4x1xf32> to vector<4x64xf32>
    %183 = arith.mulf %175, %182 : vector<4x64xf32>
    %c0_72 = arith.constant 0 : index
    %c0_73 = arith.constant 0 : index
    %184 = vector.load %arg17[%c0_72, %c0_73] : memref<64x8xf32, #tpu.memory_space<vmem>>, vector<64x8xf32>
    %185 = arith.truncf %183 : vector<4x64xf32> to vector<4x64xbf16>
    %186 = arith.truncf %184 : vector<64x8xf32> to vector<64x8xbf16>
    %cst_74 = arith.constant dense<0.000000e+00> : vector<4x8xf32>
    %187 = tpu.matmul %185, %186, %cst_74 {dimension_numbers = #tpu.dot_dimension_numbers<[1], [0], [0], [1], [0, 0, 1, 1], [], []>} : vector<4x64xbf16>, vector<64x8xbf16>, vector<4x8xf32> -> vector<4x8xf32>
    %c0_75 = arith.constant 0 : index
    %c0_76 = arith.constant 0 : index
    %188 = vector.load %arg18[%c0_75, %c0_76] : memref<1x8xf32, #tpu.memory_space<vmem>>, vector<1x8xf32>
    %189 = vector.broadcast %188 : vector<1x8xf32> to vector<4x8xf32>
    %190 = arith.addf %187, %189 : vector<4x8xf32>
    %cst_77 = arith.constant dense<0xFF800000> : vector<4xf32>
    %191 = vector.multi_reduction <maximumf>, %190, %cst_77 [1] : vector<4x8xf32> to vector<4xf32>
    %192 = vector.shape_cast %191 : vector<4xf32> to vector<4x1xf32>
    %193 = vector.broadcast %192 : vector<4x1xf32> to vector<4x8xf32>
    %194 = arith.subf %190, %193 : vector<4x8xf32>
    %195 = math.exp %194 : vector<4x8xf32>
    %cst_78 = arith.constant dense<0.000000e+00> : vector<4xf32>
    %196 = vector.multi_reduction <add>, %195, %cst_78 [1] : vector<4x8xf32> to vector<4xf32>
    %197 = vector.shape_cast %196 : vector<4xf32> to vector<4x1xf32>
    %198 = tpu.reciprocal %197 {approx = true} : vector<4x1xf32> -> vector<4x1xf32>
    %199 = vector.broadcast %198 : vector<4x1xf32> to vector<4x8xf32>
    %200 = arith.mulf %195, %199 : vector<4x8xf32>
    %cst_79 = arith.constant 1.000000e+00 : f32
    %201 = vector.broadcast %cst_79 : f32 to vector<4x1xf32>
    %cst_80 = arith.constant dense<0.000000e+00> : vector<8x1xf32>
    %202 = tpu.matmul %200, %201, %cst_80 {dimension_numbers = #tpu.dot_dimension_numbers<[0], [0], [1], [1], [0, 1, 1, 1], [], []>} : vector<4x8xf32>, vector<4x1xf32>, vector<8x1xf32> -> vector<8x1xf32>
    %203 = arith.truncf %200 : vector<4x8xf32> to vector<4x8xbf16>
    %204 = arith.truncf %183 : vector<4x64xf32> to vector<4x64xbf16>
    %cst_81 = arith.constant dense<0.000000e+00> : vector<8x64xf32>
    %205 = tpu.matmul %203, %204, %cst_81 {dimension_numbers = #tpu.dot_dimension_numbers<[0], [0], [1], [1], [0, 1, 1, 1], [], []>} : vector<4x8xbf16>, vector<4x64xbf16>, vector<8x64xf32> -> vector<8x64xf32>
    %c0_82 = arith.constant 0 : index
    %c0_83 = arith.constant 0 : index
    %206 = vector.load %arg19[%c0_82, %c0_83] : memref<8x64xf32, #tpu.memory_space<vmem>>, vector<8x64xf32>
    %207 = vector.broadcast %202 : vector<8x1xf32> to vector<8x64xf32>
    %208 = arith.mulf %207, %206 : vector<8x64xf32>
    %209 = arith.subf %205, %208 : vector<8x64xf32>
    %210 = arith.mulf %209, %209 : vector<8x64xf32>
    %cst_84 = arith.constant dense<0.000000e+00> : vector<8xf32>
    %211 = vector.multi_reduction <add>, %210, %cst_84 [1] : vector<8x64xf32> to vector<8xf32>
    %212 = vector.shape_cast %211 : vector<8xf32> to vector<8x1xf32>
    %cst_85 = arith.constant 1.000000e-24 : f32
    %213 = vector.broadcast %cst_85 : f32 to vector<8x1xf32>
    %214 = arith.maximumf %212, %213 : vector<8x1xf32>
    %215 = math.rsqrt %214 : vector<8x1xf32>
    %216 = vector.broadcast %215 : vector<8x1xf32> to vector<8x64xf32>
    %217 = arith.mulf %209, %216 : vector<8x64xf32>
    %218 = arith.mulf %217, %217 : vector<8x64xf32>
    %cst_86 = arith.constant dense<0.000000e+00> : vector<8xf32>
    %219 = vector.multi_reduction <add>, %218, %cst_86 [1] : vector<8x64xf32> to vector<8xf32>
    %220 = vector.shape_cast %219 : vector<8xf32> to vector<8x1xf32>
    %cst_87 = arith.constant dense<0.000000e+00> : vector<1xf32>
    %221 = vector.multi_reduction <add>, %220, %cst_87 [0] : vector<8x1xf32> to vector<1xf32>
    %222 = vector.shape_cast %221 : vector<1xf32> to vector<1x1xf32>
    %cst_88 = arith.constant 1.000000e-24 : f32
    %223 = vector.broadcast %cst_88 : f32 to vector<1x1xf32>
    %224 = arith.maximumf %222, %223 : vector<1x1xf32>
    %225 = math.rsqrt %224 : vector<1x1xf32>
    %226 = vector.broadcast %225 : vector<1x1xf32> to vector<8x64xf32>
    %227 = arith.mulf %217, %226 : vector<8x64xf32>
    %c0_89 = arith.constant 0 : index
    %c0_90 = arith.constant 0 : index
    %c0_91 = arith.constant 0 : index
    %228 = vector.load %arg20[%c0_89, %c0_90, %c0_91] : memref<1x8x64xf32, #tpu.memory_space<vmem>>, vector<1x8x64xf32>
    %229 = vector.shape_cast %228 : vector<1x8x64xf32> to vector<8x64xf32>
    %230 = vector.shape_cast %227 : vector<8x64xf32> to vector<1x8x64xf32>
    tpu.vector_store %arg20[%c0_89, %c0_90, %c0_91], %230 {strides = array<i32>} : memref<1x8x64xf32, #tpu.memory_space<vmem>>, vector<1x8x64xf32>,
    return
  }
  func.func @transform_0(%arg0: i32) -> (i32, i32, i32) {
    %c0_i32 = arith.constant 0 : i32
    %c0_i32_0 = arith.constant 0 : i32
    %c0_i32_1 = arith.constant 0 : i32
    return %arg0, %c0_i32, %c0_i32_0 : i32, i32, i32
  }
  func.func @transform_1(%arg0: i32) -> (i32, i32, i32) {
    %c0_i32 = arith.constant 0 : i32
    %c0_i32_0 = arith.constant 0 : i32
    %c0_i32_1 = arith.constant 0 : i32
    return %arg0, %c0_i32, %c0_i32_0 : i32, i32, i32
  }
  func.func @transform_2(%arg0: i32) -> (i32, i32) {
    %c0_i32 = arith.constant 0 : i32
    %c0_i32_0 = arith.constant 0 : i32
    %c0_i32_1 = arith.constant 0 : i32
    return %c0_i32, %c0_i32_0 : i32, i32
  }
  func.func @transform_3(%arg0: i32) -> (i32, i32) {
    %c0_i32 = arith.constant 0 : i32
    %c0_i32_0 = arith.constant 0 : i32
    %c0_i32_1 = arith.constant 0 : i32
    return %c0_i32, %c0_i32_0 : i32, i32
  }
  func.func @transform_4(%arg0: i32) -> (i32, i32) {
    %c0_i32 = arith.constant 0 : i32
    %c0_i32_0 = arith.constant 0 : i32
    %c0_i32_1 = arith.constant 0 : i32
    return %c0_i32, %c0_i32_0 : i32, i32
  }
  func.func @transform_5(%arg0: i32) -> (i32, i32) {
    %c0_i32 = arith.constant 0 : i32
    %c0_i32_0 = arith.constant 0 : i32
    %c0_i32_1 = arith.constant 0 : i32
    return %c0_i32, %c0_i32_0 : i32, i32
  }
  func.func @transform_6(%arg0: i32) -> (i32, i32) {
    %c0_i32 = arith.constant 0 : i32
    %c0_i32_0 = arith.constant 0 : i32
    %c0_i32_1 = arith.constant 0 : i32
    return %c0_i32, %c0_i32_0 : i32, i32
  }
  func.func @transform_7(%arg0: i32) -> (i32, i32) {
    %c0_i32 = arith.constant 0 : i32
    %c0_i32_0 = arith.constant 0 : i32
    %c0_i32_1 = arith.constant 0 : i32
    return %c0_i32, %c0_i32_0 : i32, i32
  }
  func.func @transform_8(%arg0: i32) -> (i32, i32) {
    %c0_i32 = arith.constant 0 : i32
    %c0_i32_0 = arith.constant 0 : i32
    %c0_i32_1 = arith.constant 0 : i32
    return %c0_i32, %c0_i32_0 : i32, i32
  }
  func.func @transform_9(%arg0: i32) -> (i32, i32) {
    %c0_i32 = arith.constant 0 : i32
    %c0_i32_0 = arith.constant 0 : i32
    %c0_i32_1 = arith.constant 0 : i32
    return %c0_i32, %c0_i32_0 : i32, i32
  }
  func.func @transform_10(%arg0: i32) -> (i32, i32) {
    %c0_i32 = arith.constant 0 : i32
    %c0_i32_0 = arith.constant 0 : i32
    %c0_i32_1 = arith.constant 0 : i32
    return %c0_i32, %c0_i32_0 : i32, i32
  }
  func.func @transform_11(%arg0: i32) -> (i32, i32) {
    %c0_i32 = arith.constant 0 : i32
    %c0_i32_0 = arith.constant 0 : i32
    %c0_i32_1 = arith.constant 0 : i32
    return %c0_i32, %c0_i32_0 : i32, i32
  }
  func.func @transform_12(%arg0: i32) -> (i32, i32) {
    %c0_i32 = arith.constant 0 : i32
    %c0_i32_0 = arith.constant 0 : i32
    %c0_i32_1 = arith.constant 0 : i32
    return %c0_i32, %c0_i32_0 : i32, i32
  }
  func.func @transform_13(%arg0: i32) -> (i32, i32) {
    %c0_i32 = arith.constant 0 : i32
    %c0_i32_0 = arith.constant 0 : i32
    %c0_i32_1 = arith.constant 0 : i32
    return %c0_i32, %c0_i32_0 : i32, i32
  }
  func.func @transform_14(%arg0: i32) -> (i32, i32) {
    %c0_i32 = arith.constant 0 : i32
    %c0_i32_0 = arith.constant 0 : i32
    %c0_i32_1 = arith.constant 0 : i32
    return %c0_i32, %c0_i32_0 : i32, i32
  }
  func.func @transform_15(%arg0: i32) -> (i32, i32) {
    %c0_i32 = arith.constant 0 : i32
    %c0_i32_0 = arith.constant 0 : i32
    %c0_i32_1 = arith.constant 0 : i32
    return %c0_i32, %c0_i32_0 : i32, i32
  }
  func.func @transform_16(%arg0: i32) -> (i32, i32) {
    %c0_i32 = arith.constant 0 : i32
    %c0_i32_0 = arith.constant 0 : i32
    %c0_i32_1 = arith.constant 0 : i32
    return %c0_i32, %c0_i32_0 : i32, i32
  }
  func.func @transform_17(%arg0: i32) -> (i32, i32) {
    %c0_i32 = arith.constant 0 : i32
    %c0_i32_0 = arith.constant 0 : i32
    %c0_i32_1 = arith.constant 0 : i32
    return %c0_i32, %c0_i32_0 : i32, i32
  }
  func.func @transform_18(%arg0: i32) -> (i32, i32) {
    %c0_i32 = arith.constant 0 : i32
    %c0_i32_0 = arith.constant 0 : i32
    %c0_i32_1 = arith.constant 0 : i32
    return %c0_i32, %c0_i32_0 : i32, i32
  }
  func.func @transform_19(%arg0: i32) -> (i32, i32, i32) {
    %c0_i32 = arith.constant 0 : i32
    %c0_i32_0 = arith.constant 0 : i32
    %c0_i32_1 = arith.constant 0 : i32
    return %arg0, %c0_i32, %c0_i32_0 : i32, i32, i32
  }
}

</mosaic_0001>

<bundles_post_ra>
// kernel: overlap_vit_forward.5
= control target key start
LH: loop header
LB: loop body
LE: loop exit
PB: predicated region body
PF: predicated region fallthrough
CT: control target
= control target key end

     0   :  { %v454_v47 = vmov 1983009808   ;;  %v101_v49 = vlaneseq  ;;  %s741_s0 = inlined_call_operand.vmem [shape: f32[2,512], index: 0, kind: input, shape index: {}]   ;;  %s742_s1 = inlined_call_operand.vmem [shape: f32[512,32], index: 1, kind: input, shape index: {}]   ;;  %s743_s2 = inlined_call_operand.vmem [shape: f32[1,32], index: 2, kind: input, shape index: {}]   ;;  %s744_s3 = inlined_call_operand.vmem [shape: f32[1,32], index: 3, kind: input, shape index: {}]   ;;  %s745_s4 = inlined_call_operand.vmem [shape: f32[1,32], index: 4, kind: input, shape index: {}]   ;;  %s746_s5 = inlined_call_operand.vmem [shape: f32[1,32], index: 5, kind: input, shape index: {}]   ;;  %s747_s6 = inlined_call_operand.vmem [shape: f32[32,32], index: 6, kind: input, shape index: {}]   ;;  %s748_s7 = inlined_call_operand.vmem [shape: f32[1,32], index: 7, kind: input, shape index: {}]   ;;  %s749_s8 = inlined_call_operand.hbm [shape: f32[2,32], index: 8, kind: output, shape index: {}]  }
   0x1   :  { %v48_v0 = vld [vmem:[%s742_s1 + $0x80] sm:$0xff]  ;;  %v49_v1 = vld [vmem:[%s742_s1 + $0x88] sm:$0xff]  ;;  %v50_v11 = vld [vmem:[%s742_s1 + $0x90] sm:$0xff]  ;;  %v99_v48 = vunpack.c.l.s4 %v454_v47 }
   0x2   :  { %v80_v2 = vld [vmem:[%s742_s1 + $0x180] sm:$0xff]  ;;  %v130_v3 = vpack.c.bf16 %v49_v1, %v48_v0  ;;  %v81_v4 = vld [vmem:[%s742_s1 + $0x188] sm:$0xff]  ;;  %v51_v13 = vld [vmem:[%s742_s1 + $0x98] sm:$0xff]  ;;  %v629_v0 = vshrl.u32 %v101_v49, 7 }
   0x3   :  { %v32_v5 = vld [vmem:[%s742_s1] sm:$0xff]  ;;  %v33_v6 = vld [vmem:[%s742_s1 + $0x8] sm:$0xff]  ;;  %v146_v7 = vpack.c.bf16 %v81_v4, %v80_v2  ;;  %v82_v14 = vld [vmem:[%s742_s1 + $0x190] sm:$0xff]  ;;  %v131_v16 = vpack.c.bf16 %v51_v13, %v50_v11  ;;  %v100_v63 = vunpack.c.0.s8 %v99_v48 }
   0x4   :  { %v122_v8 = vpack.c.bf16 %v33_v6, %v32_v5  ;;  %v64_v9 = vld [vmem:[%s742_s1 + $0x100] sm:$0xff]  ;;  %v65_v10 = vld [vmem:[%s742_s1 + $0x108] sm:$0xff]  ;;  %362 = vmatprep.subr.bf16.mxu0 %v130_v3  ;;  %v83_v15 = vld [vmem:[%s742_s1 + $0x198] sm:$0xff] }
   0x5   :  { %v138_v12 = vpack.c.bf16 %v65_v10, %v64_v9  ;;  %384 = vmatprep.subr.bf16.mxu1 %v146_v7  ;;  %v147_v17 = vpack.c.bf16 %v83_v15, %v82_v14  ;;  %v34_v18 = vld [vmem:[%s742_s1 + $0x10] sm:$0xff]  ;;  %v35_v19 = vld [vmem:[%s742_s1 + $0x18] sm:$0xff]  ;;  %v52_v23 = vld [vmem:[%s742_s1 + $0xa0] sm:$0xff]  ;;  %v103_v13 = vsub.s32 %v100_v63, %v629_v0 }
   0x6   :  { %363 = vmatpush3.bf16.msra.mxu0 %v122_v8  ;;  %v66_v20 = vld [vmem:[%s742_s1 + $0x110] sm:$0xff]  ;;  %v123_v21 = vpack.c.bf16 %v35_v19, %v34_v18  ;;  %v67_v22 = vld [vmem:[%s742_s1 + $0x118] sm:$0xff]  ;;  %v53_v24 = vld [vmem:[%s742_s1 + $0xa8] sm:$0xff] }
   0x7   :  { %385 = vmatpush3.bf16.msra.mxu1 %v138_v12  ;;  %364 = vmatprep.subr.bf16.mxu0 %v131_v16  ;;  %v139_v25 = vpack.c.bf16 %v67_v22, %v66_v20  ;;  %v132_v26 = vpack.c.bf16 %v53_v24, %v52_v23  ;;  %v84_v27 = vld [vmem:[%s742_s1 + $0x1a0] sm:$0xff]  ;;  %v85_v28 = vld [vmem:[%s742_s1 + $0x1a8] sm:$0xff]  ;;  %v54_v35 = vld [vmem:[%s742_s1 + $0xb0] sm:$0xff] }
   0x8   :  { %386 = vmatprep.subr.bf16.mxu1 %v147_v17  ;;  %v36_v29 = vld [vmem:[%s742_s1 + $0x20] sm:$0xff]  ;;  %v148_v30 = vpack.c.bf16 %v85_v28, %v84_v27  ;;  %v37_v31 = vld [vmem:[%s742_s1 + $0x28] sm:$0xff]  ;;  %v55_v36 = vld [vmem:[%s742_s1 + $0xb8] sm:$0xff] }
   0x9   :  { %v68_v32 = vld [vmem:[%s742_s1 + $0x120] sm:$0xff]  ;;  %v69_v33 = vld [vmem:[%s742_s1 + $0x128] sm:$0xff]  ;;  %v124_v34 = vpack.c.bf16 %v37_v31, %v36_v29  ;;  %v86_v37 = vld [vmem:[%s742_s1 + $0x1b0] sm:$0xff]  ;;  %v133_v39 = vpack.c.bf16 %v55_v36, %v54_v35 }
   0xa   :  { %365 = vmatpush3.bf16.msra.mxu0 %v123_v21  ;;  %v140_v38 = vpack.c.bf16 %v69_v33, %v68_v32  ;;  %v87_v40 = vld [vmem:[%s742_s1 + $0x1b8] sm:$0xff]  ;;  %v38_v41 = vld [vmem:[%s742_s1 + $0x30] sm:$0xff]  ;;  %v56_v46 = vld [vmem:[%s742_s1 + $0xc0] sm:$0xff] }
   0xb   :  { %387 = vmatpush3.bf16.msra.mxu1 %v139_v25  ;;  %366 = vmatprep.subr.bf16.mxu0 %v132_v26  ;;  %v39_v42 = vld [vmem:[%s742_s1 + $0x38] sm:$0xff]  ;;  %v149_v43 = vpack.c.bf16 %v87_v40, %v86_v37  ;;  %v70_v44 = vld [vmem:[%s742_s1 + $0x130] sm:$0xff]  ;;  %v57_v50 = vld [vmem:[%s742_s1 + $0xc8] sm:$0xff] }
   0xc   :  { %388 = vmatprep.subr.bf16.mxu1 %v148_v30  ;;  %v71_v45 = vld [vmem:[%s742_s1 + $0x138] sm:$0xff]  ;;  %v88_v51 = vld [vmem:[%s742_s1 + $0x1c0] sm:$0xff]  ;;  %v89_v52 = vld [vmem:[%s742_s1 + $0x1c8] sm:$0xff]  ;;  %v125_v53 = vpack.c.bf16 %v39_v42, %v38_v41  ;;  %v134_v55 = vpack.c.bf16 %v57_v50, %v56_v46 }
   0xd   :  { %v141_v54 = vpack.c.bf16 %v71_v45, %v70_v44  ;;  %v40_v56 = vld [vmem:[%s742_s1 + $0x40] sm:$0xff]  ;;  %v41_v57 = vld [vmem:[%s742_s1 + $0x48] sm:$0xff]  ;;  %v150_v59 = vpack.c.bf16 %v89_v52, %v88_v51  ;;  %v58_v61 = vld [vmem:[%s742_s1 + $0xd0] sm:$0xff] }
   0xe   :  { %367 = vmatpush3.bf16.msra.mxu0 %v124_v34  ;;  %v72_v58 = vld [vmem:[%s742_s1 + $0x140] sm:$0xff]  ;;  %v73_v60 = vld [vmem:[%s742_s1 + $0x148] sm:$0xff]  ;;  %v59_v62 = vld [vmem:[%s742_s1 + $0xd8] sm:$0xff]  ;;  %v126_v3 = vpack.c.bf16 %v41_v57, %v40_v56 }
   0xf   :  { %389 = vmatpush3.bf16.msra.mxu1 %v140_v38  ;;  %368 = vmatprep.subr.bf16.mxu0 %v133_v39  ;;  %v90_v1 = vld [vmem:[%s742_s1 + $0x1d0] sm:$0xff]  ;;  %v91_v2 = vld [vmem:[%s742_s1 + $0x1d8] sm:$0xff]  ;;  %v142_v4 = vpack.c.bf16 %v73_v60, %v72_v58  ;;  %v135_v5 = vpack.c.bf16 %v59_v62, %v58_v61  ;;  %v60_v11 = vld [vmem:[%s742_s1 + $0xe0] sm:$0xff] }
  0x10   :  { %390 = vmatprep.subr.bf16.mxu1 %v149_v43  ;;  %v42_v6 = vld [vmem:[%s742_s1 + $0x50] sm:$0xff]  ;;  %v43_v7 = vld [vmem:[%s742_s1 + $0x58] sm:$0xff]  ;;  %v151_v9 = vpack.c.bf16 %v91_v2, %v90_v1  ;;  %v61_v12 = vld [vmem:[%s742_s1 + $0xe8] sm:$0xff] }
  0x11   :  { %v74_v8 = vld [vmem:[%s742_s1 + $0x150] sm:$0xff]  ;;  %v75_v10 = vld [vmem:[%s742_s1 + $0x158] sm:$0xff]  ;;  %v92_v14 = vld [vmem:[%s742_s1 + $0x1e0] sm:$0xff]  ;;  %v127_v16 = vpack.c.bf16 %v43_v7, %v42_v6  ;;  %v136_v20 = vpack.c.bf16 %v61_v12, %v60_v11 }
  0x12   :  { %369 = vmatpush3.bf16.msra.mxu0 %v125_v53  ;;  %v93_v15 = vld [vmem:[%s742_s1 + $0x1e8] sm:$0xff]  ;;  %v44_v17 = vld [vmem:[%s742_s1 + $0x60] sm:$0xff]  ;;  %v143_v19 = vpack.c.bf16 %v75_v10, %v74_v8 }
  0x13   :  { %391 = vmatpush3.bf16.msra.mxu1 %v141_v54  ;;  %370 = vmatprep.subr.bf16.mxu0 %v134_v55  ;;  %v45_v18 = vld [vmem:[%s742_s1 + $0x68] sm:$0xff]  ;;  %v76_v21 = vld [vmem:[%s742_s1 + $0x160] sm:$0xff] }
  0x14   :  { %392 = vmatprep.subr.bf16.mxu1 %v150_v59  ;;  %v31_v22 = vld [vmem:[%s741_s0] sm:$0xff] }
  0x16   :  { %371 = vmatpush3.bf16.msra.mxu0 %v126_v3 }
  0x17   :  { %393 = vmatpush3.bf16.msra.mxu1 %v142_v4  ;;  %372 = vmatprep.subr.bf16.mxu0 %v135_v5 }
  0x18   :  { %13 = vsyncpa [#allocation3], 0  ;;  %394 = vmatprep.subr.bf16.mxu1 %v151_v9  ;;  %v152_v23 = vpack.c.bf16 %v93_v15, %v92_v14  ;;  %v77_v24 = vld [vmem:[%s742_s1 + $0x168] sm:$0xff]  ;;  %v62_v25 = vld [vmem:[%s742_s1 + $0xf0] sm:$0xff]  ;;  %v104_v27 = vrot.slane %v31_v22, %v103_v13  ;;  %v97_v28 = vcombine.high %v31_v22, %v31_v22  ;;  %v128_v31 = vpack.c.bf16 %v45_v18, %v44_v17 }
  0x19   :  { %v63_v26 = vld [vmem:[%s742_s1 + $0xf8] sm:$0xff]  ;;  %v94_v29 = vld [vmem:[%s742_s1 + $0x1f0] sm:$0xff]  ;;  %v144_v34 = vpack.c.bf16 %v77_v24, %v76_v21  ;;  %v268_v48 = vld [vmem:[%s747_s6] sm:$0xff]  ;;  %v455_v51 = vmov 0.0   ;;  %vm456_vm0 = vmmov 0   ;;  %v248_v58 = vsub.s32 0, %v629_v0 }
  0x1a   :  { %v95_v30 = vld [vmem:[%s742_s1 + $0x1f8] sm:$0xff]  ;;  %373 = vmatpush3.bf16.msra.mxu0 %v127_v16  ;;  %v112_v32 = vcombine.high %v104_v27, %v104_v27  ;;  %v111_v33 = vrot.slane %v97_v28, %v103_v13  ;;  %v137_v35 = vpack.c.bf16 %v63_v26, %v62_v25  ;;  %v46_v36 = vld [vmem:[%s742_s1 + $0x70] sm:$0xff]  ;;  %v118_v46 = vpack.c.bf16 %v104_v27, %v104_v27  ;;  %v269_v49 = vld [vmem:[%s747_s6 + $0x8] sm:$0xff] }
  0x1b   :  { %395 = vmatpush3.bf16.msra.mxu1 %v143_v19  ;;  %374 = vmatprep.subr.bf16.mxu0 %v136_v20  ;;  %v47_v37 = vld [vmem:[%s742_s1 + $0x78] sm:$0xff]  ;;  %v153_v38 = vpack.c.bf16 %v95_v30, %v94_v29  ;;  %v78_v39 = vld [vmem:[%s742_s1 + $0x170] sm:$0xff]  ;;  %v273_v50 = vpack.c.bf16 %v269_v49, %v268_v48  ;;  %v242_v55 = vld [vmem:[%s746_s5] sm:$0x1]  ;;  %vm282_vm1 = vcmask 261120   ;;  %vm334_vm2 = vcmask 254976  }
  0x1c   :  { %396 = vmatprep.subr.bf16.mxu1 %v152_v23  ;;  %v79_v40 = vld [vmem:[%s742_s1 + $0x178] sm:$0xff]  ;;  %v119_v41 = vpack.c.bf16 %v112_v32, %v112_v32  ;;  %v113_v42 = vcombine.high %v111_v33, %v111_v33  ;;  %v129_v43 = vpack.c.bf16 %v47_v37, %v46_v36  ;;  %v120_v47 = vpack.c.bf16 %v111_v33, %v111_v33  ;;  %v270_v52 = vld [vmem:[%s747_s6 + $0x10] sm:$0xff]  ;;  %v356_v5 = vld [vmem:[%s745_s4] ss:$0 sm:$0xff] }
  0x1d   :  { %v145_v45 = vpack.c.bf16 %v79_v40, %v78_v39  ;;  %v271_v53 = vld [vmem:[%s747_s6 + $0x18] sm:$0xff]  ;;  %v243_v56 = vadd.f32 1e-05, %v242_v55  ;;  %v357_v0 = vld [vmem:[%s743_s2] ss:$0 sm:$0xff]  ;;  %s457_s2 = smov [#allocation2]  }
  0x1e   :  { %375 = vmatpush3.bf16.msra.mxu0 %v128_v31  ;;  %186 = vmatprep.mubr.bf16.mxu0 %v119_v41  ;;  %v121_v44 = vpack.c.bf16 %v113_v42, %v113_v42  ;;  %v274_v54 = vpack.c.bf16 %v271_v53, %v270_v52  ;;  %v358_v11 = vld [vmem:[%s744_s3] ss:$0 sm:$0xff]  ;;  %s348_s3 = sshll.u32 %s457_s2, 4  ;;  %s349_s3 = int_to_ptr.vmem [resolvable:$true] %s348_s3 }
  0x1f   :  { %397 = vmatpush3.bf16.msra.mxu1 %v144_v34  ;;  %376 = vmatprep.subr.bf16.mxu0 %v137_v35  ;;  %422 = vrsqrt.f32 %v243_v56  ;;  %v359_v15 = vld [vmem:[%s748_s7] ss:$0 sm:$0xff]  ;;  %s430_s7 = scalar_lea.vmem %s349_s3, 32  ;;  %p435_p1 = scmp.lt.s32.totalorder %s349_s3, %s349_s3 }
  0x20   :  { %398 = vmatprep.subr.bf16.mxu1 %v153_v38  ;;  %226 = vmatprep.mubr.bf16.mxu1 %v121_v44  ;;  %p431_p0 = scmp.ne.s32.totalorder %s349_s3, %s430_s7  ;;  %p436_p2 = scmp.lt.s32.totalorder %s430_s7, %s430_s7 }
  0x22   :  { %377 = vmatpush3.bf16.msra.mxu0 %v129_v43  ;;  %p437_p3 = por %p436_p2, %p435_p1 }
  0x23   :  { %399 = vmatpush3.bf16.msra.mxu1 %v145_v45  ;;  %409 = vmatprep.subr.bf16.mxu0 %v455_v51 }
  0x24   :  { %p438_p4 = pnand %p437_p3, %p431_p0 }
  0x25   :  { %187 = vmatmul.mubr.bf16.vlgmr.msra.gmra.mrb[0].mxu0 %v118_v46 }
  0x26   :  { %227 = vmatmul.mubr.bf16.vlgmr.msra.gmra.mrb[0].mxu1 %v120_v47  ;;  %410 = vmatpush3.bf16.msra.mxu0 %v273_v50 }
  0x27   :  { %411 = vmatprep.subr.bf16.mxu0 %v455_v51  ;;  %413 = vmatprep.mubr.msk.bf16.mxu0 %vm456_vm0, %v455_v51 }
  0x29   :  { %v423_v61 = vpop.eup %422 }
  0x2a   :  { %412 = vmatpush3.bf16.msra.mxu0 %v274_v54  ;;  %v249_v8 = vrot.slane %v423_v61, %v248_v58 }
  0xf8   :  { %v378_v57 = vpop.f32.mrb[0].mxu0 }
  0xf9   :  { %v400_v59 = vpop.f32.mrb[0].mxu1  ;;  %v379_v60 = vpop.f32.mrb[1].mxu0 }
  0xfa   :  { %v380_v62 = vadd.f32 %v379_v60, %v378_v57  ;;  %v401_v63 = vpop.f32.mrb[1].mxu1  ;;  %v381_v1 = vpop.f32.mrb[2].mxu0 }
  0xfb   :  { %v402_v2 = vadd.f32 %v401_v63, %v400_v59  ;;  %v403_v3 = vpop.f32.mrb[2].mxu1  ;;  %v382_v4 = vpop.f32.mrb[3].mxu0 }
  0xfc   :  { %v404_v6 = vpop.f32.mrb[3].mxu1 }
  0xfd   :  { %v229_v7 = vadd.f32 %v402_v2, %v380_v62 }
  0xff   :  { %v241_v9 = vsub.f32 %v229_v7, %v356_v5 }
 0x101   :  { %v251_v10 = vmul.f32 %v249_v8, %v241_v9 }
 0x103   :  { %v259_v12 = vmul.f32 %v357_v0, %v251_v10 }
 0x105   :  { %v267_v13 = vadd.f32 %v358_v11, %v259_v12 }
 0x107   :  { %v272_v14 = vpack.c.bf16 %v267_v13, %v267_v13 }
 0x109   :  { %414 = vmatmul.mubr.msk.bf16.vlgmr.msra.gmra.mrb[4].mxu0 %vm282_vm1, %v272_v14 }
 0x1dc   :  { %v320_v16 = vpop.f32.mrb[4].mxu0 }
 0x1dd   :  { %v321_v17 = vadd.f32 %v359_v15, %v320_v16  ;;  %v415_v18 = vpop.f32.mrb[5].mxu0 }
 0x1de   :  { %v323_v19 = vpop.f32.mrb[6].mxu0 }
 0x1df   :  { %v361_v20 = vmul.f32 -1.442695, %v321_v17  ;;  %v416_v21 = vpop.f32.mrb[7].mxu0 }
 0x1e1   :  { %424 = vpow2.f32 %v361_v20 }
 0x1eb   :  { %v425_v22 = vpop.eup %424 }
 0x1ec   :  { %v329_v23 = vadd.f32 1.0, %v425_v22 }
 0x1ee   :  { %426 = vrcp.f32 %v329_v23 }
 0x1f8   :  { %v427_v24 = vpop.eup %426 }
 0x1f9   :  { %v332_v25 = vmul.f32 %v427_v24, %v267_v13 }
 0x1fb   :  { %v333_v26 = vmul.f32 %v332_v25, %v332_v25 }
 0x1fd   :  { %v335_v27 = vsel %vm334_vm2, %v333_v26, 0.0 }
 0x1fe   :  { %336 = vadd.xlane.f32.xlu0 %v335_v27 }
 0x28b   :  { %v337_v28 = vpop.xlane.xlu0 %336 }
 0x28c   :  { %v338_v29 = vmax.f32 %v337_v28, 1e-24 }
 0x28e   :  { %428 = vrsqrt.f32 %v338_v29 }
 0x298   :  { %v429_v30 = vpop.eup %428 }
 0x299   :  { %v340_v31 = vmul.f32 %v429_v30, %v332_v25 }
 0x29b   :  { %341 = vst.msk [vmem:[#allocation2] sm:$0x3] %vm334_vm2, %v340_v31 }
 0x29c   :  { %441 = shalt.err (!%p438_p4)
}
 0x29d   :  { %s442_s17 = scalar_lea.hbm %s749_s8, 32 }
 0x29e   :  { %p443_p5 = scmp.ne.s32.totalorder %s749_s8, %s442_s17  ;;  %p446_p6 = scmp.lt.u32.totalorder %s442_s17, %s749_s8 }
 0x2a0   :  { %p448_p7 = pnand %p446_p6, %p443_p5 }
 0x2a2   :  { %451 = shalt.err (!%p448_p7)
}
 0x2a3   :  { %351 = dma.vmem_to_hbm [thread:$0]  %s349_s3, 32, %s749_s8, [#allocation3]  }
 0x2a4   :  { %452 = dma.done.wait [#allocation3], 32  }
 0x2a5   :  { %453 = vsyncadd [#allocation3], 4294967264 }
 0x2a6   :  { %355 = vsyncpa [#allocation3], 1 }

// kernel: overlap_vit_forward.3
= control target key start
LH: loop header
LB: loop body
LE: loop exit
PB: predicated region body
PF: predicated region fallthrough
CT: control target
= control target key end

     0   :  { %s2654_s28 = smov 0   ;;  %s2656_s29 = smov 0   ;;  %s3029_s0 = inlined_call_operand.vmem [shape: f32[2,8,64], index: 0, kind: input, shape index: {}]   ;;  %s3030_s1 = inlined_call_operand.vmem [shape: f32[1,64], index: 1, kind: input, shape index: {}]   ;;  %s3031_s2 = inlined_call_operand.vmem [shape: f32[1,64], index: 2, kind: input, shape index: {}]   ;;  %s3032_s3 = inlined_call_operand.vmem [shape: f32[64,32], index: 3, kind: input, shape index: {}]   ;;  %s3033_s4 = inlined_call_operand.vmem [shape: f32[1,32], index: 4, kind: input, shape index: {}]   ;;  %s3034_s5 = inlined_call_operand.vmem [shape: f32[1,32], index: 5, kind: input, shape index: {}]   ;;  %s3035_s6 = inlined_call_operand.vmem [shape: f32[1,32], index: 6, kind: input, shape index: {}]   ;;  %s3036_s7 = inlined_call_operand.vmem [shape: f32[1,32], index: 7, kind: input, shape index: {}]   ;;  %s3037_s8 = inlined_call_operand.vmem [shape: f32[9,32], index: 8, kind: input, shape index: {}]   ;;  %s3038_s9 = inlined_call_operand.vmem [shape: f32[2,1,32], index: 9, kind: input, shape index: {}]   ;;  %s3039_s10 = inlined_call_operand.vmem [shape: f32[2,1,32], index: 10, kind: input, shape index: {}]   ;;  %s3040_s11 = inlined_call_operand.vmem [shape: f32[2,32,96], index: 11, kind: input, shape index: {}]   ;;  %s3041_s12 = inlined_call_operand.vmem [shape: f32[2,32,32], index: 12, kind: input, shape index: {}]   ;;  %s3042_s13 = inlined_call_operand.vmem [shape: f32[2,1,32], index: 13, kind: input, shape index: {}]   ;;  %s3043_s14 = inlined_call_operand.vmem [shape: f32[2,1,32], index: 14, kind: input, shape index: {}]   ;;  %s3044_s15 = inlined_call_operand.vmem [shape: f32[2,1,32], index: 15, kind: input, shape index: {}]   ;;  %s3045_s16 = inlined_call_operand.vmem [shape: f32[2,32,64], index: 16, kind: input, shape index: {}]   ;;  %s3046_s17 = inlined_call_operand.vmem [shape: f32[2,1,64], index: 17, kind: input, shape index: {}]   ;;  %s3047_s18 = inlined_call_operand.vmem [shape: f32[2,64,32], index: 18, kind: input, shape index: {}]   ;;  %s3048_s19 = inlined_call_operand.vmem [shape: f32[2,1,32], index: 19, kind: input, shape index: {}]   ;;  %s3049_s20 = inlined_call_operand.vmem [shape: f32[1,32], index: 20, kind: input, shape index: {}]   ;;  %s3050_s21 = inlined_call_operand.vmem [shape: f32[1,32], index: 21, kind: input, shape index: {}]   ;;  %s3051_s22 = inlined_call_operand.vmem [shape: f32[2,9,32], index: 22, kind: output, shape index: {}]  }
   0x1   :  { %3058 = sst [smem:[#allocation8_spill]] %s3029_s0  ;;  %s2658_s30 = smov 0  }
   0x2   :  { %3059 = sst [smem:[#allocation9_spill]] %s3030_s1 }
   0x3   :  { %3060 = sst [smem:[#allocation10_spill]] %s3031_s2 }
   0x4   :  { %3061 = sst [smem:[#allocation11_spill]] %s3032_s3  ;;  %s2652_s3 = smov 0  }
   0x5   :  { %3062 = sst [smem:[#allocation12_spill]] %s3033_s4  ;;  %s2660_s4 = smov 0  }
   0x6   :  { %3063 = sst [smem:[#allocation13_spill]] %s3034_s5 }
   0x7   :  { %3064 = sst [smem:[#allocation14_spill]] %s3035_s6 }
   0x8   :  { %3065 = sst [smem:[#allocation15_spill]] %s3036_s7 }
   0x9   :  { %3066 = sst [smem:[#allocation16_spill]] %s3037_s8 }
   0xa   :  { %3067 = sst [smem:[#allocation17_spill]] %s3040_s11 }
   0xb   :  { %3068 = sst [smem:[#allocation18_spill]] %s3041_s12 }
   0xc   :  { %3069 = sst [smem:[#allocation19_spill]] %s3049_s20 }
   0xd   :  { %3070 = sst [smem:[#allocation20_spill]] %s3050_s21 }
   0xe   :  { %3071 = sst [smem:[#allocation21_spill]] %s3051_s22 }
   0xf LB: > { %3072 = sst [smem:[#allocation2_spill]] %s2500_s3  ;;  %s41_s0 = sadd.s32 1, %s2508_s29  ;;  %s2516_s4 = sphi %s2660_s4, %s32_s4   ;;  %s2512_s30 = sphi %s2658_s30, %s3104_s30   ;;  %s2508_s29 = sphi %s2656_s29, %s3103_s29   ;;  %s2504_s28 = sphi %s2654_s28, %s3102_s28   ;;  %s2500_s3 = sphi %s2652_s3, %s3101_s3  }
  0x10   : > { %3073 = sst [smem:[#allocation3_spill]] %s2508_s29  ;;  %s44_s23 = sadd.s32 1, %s2512_s30 }
  0x11   : > { %3074 = sst [smem:[#allocation4_spill]] %s2512_s30  ;;  %p42_p0 = scmp.ge.s32.totalorder %s41_s0, 2 }
  0x12   : > { %3075 = sst [smem:[#allocation5_spill]] %s2516_s4  ;;  %p2165_p1 = scmp.ge.s32.totalorder %s2516_s4, 1 }
  0x13   : > { %p719_p2 = scmp.lt.s32.totalorder %s2516_s4, 5  ;;  %s3106_s0 = smov (%p42_p0, %s41_s0), 0 }
  0x14   : > { %3076 = sst [smem:[#allocation6_spill]] %s3106_s0  ;;  %s3108_s23 = smov (!%p42_p0, %s44_s23), %s2512_s30 }
  0x15   : > { %p720_p3 = pnand %p2165_p1, %p719_p2  ;;  %p46_p4 = scmp.ge.s32.totalorder %s3108_s23, 2 }
  0x16   : > { %p821_p5 = scmp.lt.s32.totalorder (!%p720_p3), %s2504_s28, 1  ;;  %p825_p6 = scmp.lt.s32.totalorder (!%p720_p3), %s2500_s3, 1 }
  0x17   : > { %s3110_s23 = smov (%p46_p4, %s3108_s23), 0  ;;  %723 = sbr.rel (%p720_p3) target bundleno = 3795 (0xed3), region = 108 }
  0x18   : > { %3077 = sst [smem:[#allocation7_spill]] %s3110_s23  ;;  %s3078_s26 = sld [smem:[#allocation8_spill]] (!%p720_p3) }
  0x19   : > { %s3079_s11 = sld [smem:[#allocation17_spill]] (!%p720_p3)  ;;  %s3080_s12 = sld [smem:[#allocation18_spill]] (!%p720_p3) }
  0x1a   : > { %s3081_s29 = sld [smem:[#allocation21_spill]] (!%p720_p3) }
  0x1e   : > { %s3112_s28 = smov (!%p821_p5, %s2504_s28), 1 }
  0x1f   : > { %s2686_s1 = scalar_select %p825_p6, %s2500_s3, 1 }
  0x20   : > { %s2166_s5 = sshll.u32 %s3112_s28, 3  ;;  %s2216_s24 = sshll.u32 %s3112_s28, 4 }
  0x21   : > { %s824_s2 = scalar_lea.vmem %s3078_s26, %s2166_s5  ;;  %s2212_s21 = sshll.u32 %s2686_s1, 5 }
  0x22   : > { %s2703_s7 = scalar_lea.vmem %s3079_s11, %s2212_s21  ;;  %s2708_s22 = scalar_lea.vmem %s3080_s12, %s2212_s21 }
  0x23   : > { %s2725_s0 = scalar_lea.vmem %s3045_s16, %s2212_s21  ;;  %s857_s11 = scalar_lea.vmem %s3046_s17, %s2686_s1 }
  0x24   : > { %s2215_s12 = sshll.u32 %s2686_s1, 6  ;;  %s865_s30 = scalar_lea.vmem %s3048_s19, %s2686_s1 }
  0x25   : > { %s2735_s23 = scalar_lea.vmem %s3047_s18, %s2215_s12  ;;  %s2744_s8 = scalar_lea.vmem %s3081_s29, %s2216_s24 }
  0x26   : > { %s3082_s21 = sld [smem:[#allocation2_spill]] }
  0x2c   : > { %p2177_p7 = scmp.ne.s32.totalorder %s3082_s21, 0 }
  0x2d   : > { %v876_v0 = vld [vmem:[%s824_s2] sm:$0xff] (!%p2177_p7)  ;;  %vm879_vm0 = vcmask (!%p2177_p7), 523264   ;;  %s3083_s4 = sld [smem:[#allocation11_spill]] (!%p2177_p7)  ;;  %v2518_v10 = vmov (!%p2177_p7), 0.0   ;;  %vm2519_vm1 = vmmov (!%p2177_p7), 0   ;;  %s3085_s3 = sld [smem:[#allocation9_spill]] (!%p2177_p7) }
  0x2e   : > { %875 = sbr.rel (%p2177_p7) target bundleno = 891 (0x37b), region = 112  ;;  %v880_v1 = vsel (!%p2177_p7), %vm879_vm0, %v876_v0, 0.0  ;;  %2252 = vmatprep.subr.bf16.mxu0 (!%p2177_p7), %v2518_v10  ;;  %2260 = vmatprep.mubr.msk.bf16.mxu0 (!%p2177_p7), %vm2519_vm1, %v2518_v10  ;;  %s3086_s25 = sld [smem:[#allocation10_spill]] (!%p2177_p7)  ;;  %vm973_vm2 = vcmask (!%p2177_p7), 261120   ;;  %vm1008_vm3 = vcmask (!%p2177_p7), 253952  }
  0x2f   : > { %881 = vadd.xlane.f32.xlu0 (!%p2177_p7), %v880_v1  ;;  %s3087_s21 = sld [smem:[#allocation12_spill]] (!%p2177_p7)  ;;  %s3089_s2 = sld [smem:[#allocation16_spill]] (!%p2177_p7) }
  0x30   : > { %s3090_s6 = sld [smem:[#allocation13_spill]] (!%p2177_p7)  ;;  %s3091_s27 = sld [smem:[#allocation14_spill]] (!%p2177_p7) }
  0x33   : > { %s3084_s5 = smov (!%p2177_p7), %s3083_s4  ;;  %v908_v7 = vld [vmem:[%s3083_s4] sm:$0xff] (!%p2177_p7)  ;;  %s3088_s4 = sld [smem:[#allocation15_spill]] (!%p2177_p7) }
  0x34   : > { %v909_v8 = vld [vmem:[%s3084_s5 + $0x8] sm:$0xff] (!%p2177_p7)  ;;  %v910_v11 = vld [vmem:[%s3084_s5 + $0x10] sm:$0xff] (!%p2177_p7)  ;;  %v911_v12 = vld [vmem:[%s3084_s5 + $0x18] sm:$0xff] (!%p2177_p7) }
  0x35   : > { %v917_v9 = vpack.c.bf16 %v909_v8, %v908_v7  ;;  %v918_v13 = vpack.c.bf16 %v911_v12, %v910_v11  ;;  %v912_v14 = vld [vmem:[%s3084_s5 + $0x20] sm:$0xff]  ;;  %v913_v15 = vld [vmem:[%s3084_s5 + $0x28] sm:$0xff]  ;;  %v914_v17 = vld [vmem:[%s3084_s5 + $0x30] sm:$0xff] }
  0x36   : > { %v919_v16 = vpack.c.bf16 %v913_v15, %v912_v14  ;;  %v915_v18 = vld [vmem:[%s3084_s5 + $0x38] sm:$0xff]  ;;  %v2178_v24 = vld [vmem:[%s3085_s3] ss:$0 sm:$0xff]  ;;  %v1006_v43 = vld [vmem:[%s3089_s2 + $0x8] sm:$0x1] }
  0x37   : > { %2253 = vmatpush3.bf16.msra.mxu0 %v917_v9  ;;  %v920_v19 = vpack.c.bf16 %v915_v18, %v914_v17  ;;  %v2179_v26 = vld [vmem:[%s3086_s25] ss:$0 sm:$0xff] }
  0x38   : > { %2254 = vmatprep.subr.bf16.mxu0 %v2518_v10  ;;  %v2180_v30 = vld [vmem:[%s3087_s21] ss:$0 sm:$0xff] }
  0x39   : > { %v1005_v42 = vld [vmem:[%s3088_s4] sm:$0x1] }
  0x3a   : > { %v1007_v44 = vadd.f32 %v1006_v43, %v1005_v42  ;;  %v2182_v49 = vld [vmem:[%s3090_s6] ss:$0 sm:$0xff] }
  0x3b   : > { %2255 = vmatpush3.bf16.msra.mxu0 %v918_v13  ;;  %v2183_v51 = vld [vmem:[%s3091_s27] ss:$0 sm:$0xff] }
  0x3c   : > { %2256 = vmatprep.subr.bf16.mxu0 %v2518_v10  ;;  %1009 = vst.msk [vmem:[%s2744_s8 + $0x8] sm:$0x1] %vm1008_vm3, %v1007_v44  ;;  %v1002_v53 = vld [vmem:[%s3089_s2] sm:$0xff] }
  0x3f   : > { %2257 = vmatpush3.bf16.msra.mxu0 %v919_v16 }
  0x40   : > { %2258 = vmatprep.subr.bf16.mxu0 %v2518_v10 }
  0x43   : > { %2259 = vmatpush3.bf16.msra.mxu0 %v920_v19 }
  0xbc   : > { %v882_v2 = vpop.xlane.xlu0 %881 }
  0xbd   : > { %v884_v3 = vmul.f32 0.015625, %v882_v2 }
  0xbf   : > { %v885_v4 = vsub.f32 %v876_v0, %v884_v3 }
  0xc1   : > { %v886_v5 = vmul.f32 %v885_v4, %v885_v4 }
  0xc3   : > { %v887_v6 = vsel %vm879_vm0, %v886_v5, 0.0 }
  0xc4   : > { %888 = vadd.xlane.f32.xlu0 %v887_v6 }
 0x151   : > { %v889_v20 = vpop.xlane.xlu0 %888 }
 0x152   : > { %v890_v21 = vmul.f32 0.015625, %v889_v20 }
 0x154   : > { %v891_v22 = vadd.f32 1e-05, %v890_v21 }
 0x156   : > { %2407 = vrsqrt.f32 %v891_v22 }
 0x160   : > { %v2408_v23 = vpop.eup %2407 }
 0x161   : > { %v893_v25 = vmul.f32 %v2408_v23, %v885_v4 }
 0x163   : > { %v900_v27 = vmul.f32 %v2178_v24, %v893_v25 }
 0x165   : > { %v907_v28 = vadd.f32 %v2179_v26, %v900_v27 }
 0x167   : > { %v916_v29 = vpack.c.bf16 %v907_v28, %v907_v28 }
 0x169   : > { %2261 = vmatmul.mubr.msk.bf16.vlgmr.msra.gmra.mrb[0].mxu0 %vm879_vm0, %v916_v29 }
 0x23c   : > { %v965_v31 = vpop.f32.mrb[0].mxu0 }
 0x23d   : > { %v966_v32 = vadd.f32 %v2180_v30, %v965_v31  ;;  %v2262_v33 = vpop.f32.mrb[1].mxu0 }
 0x23e   : > { %v968_v34 = vpop.f32.mrb[2].mxu0 }
 0x23f   : > { %v2263_v35 = vpop.f32.mrb[3].mxu0  ;;  %v974_v36 = vsel %vm973_vm2, %v966_v32, 0.0 }
 0x240   : > { %975 = vadd.xlane.f32.xlu1 %v974_v36 }
 0x2cd   : > { %v976_v37 = vpop.xlane.xlu1 %975 }
 0x2ce   : > { %v978_v38 = vmul.f32 0.03125, %v976_v37 }
 0x2d0   : > { %v979_v39 = vsub.f32 %v966_v32, %v978_v38 }
 0x2d2   : > { %v980_v40 = vmul.f32 %v979_v39, %v979_v39 }
 0x2d4   : > { %v981_v41 = vsel %vm973_vm2, %v980_v40, 0.0 }
 0x2d5   : > { %982 = vadd.xlane.f32.xlu1 %v981_v41 }
 0x362   : > { %v983_v45 = vpop.xlane.xlu1 %982 }
 0x363   : > { %v984_v46 = vmul.f32 0.03125, %v983_v45 }
 0x365   : > { %v985_v47 = vadd.f32 1e-05, %v984_v46 }
 0x367   : > { %2409 = vrsqrt.f32 %v985_v47 }
 0x371   : > { %v2410_v48 = vpop.eup %2409 }
 0x372   : > { %v987_v50 = vmul.f32 %v2410_v48, %v979_v39 }
 0x374   : > { %v994_v52 = vmul.f32 %v2182_v49, %v987_v50 }
 0x376   : > { %v1001_v54 = vadd.f32 %v2183_v51, %v994_v52 }
 0x378   : > { %v1003_v55 = vadd.f32 %v1002_v53, %v1001_v54 }
 0x37a   : > { %1004 = vst.msk [vmem:[%s2744_s8] sm:$0xff] %vm973_vm2, %v1003_v55 }
 0x37b PF: > { %vm1014_vm4 = vcmask 261120   ;;  %v2807_v57 = vld [vmem:[%s2744_s8 + $0x8] sm:$0x1]  ;;  %vm1018_vm5 = vcmask 253952   ;;  %v1059_v6 = vld [vmem:[%s2703_s7] sm:$0xff]  ;;  %v2520_v9 = vmov 0.0   ;;  %s3092_s4 = scalar_lea.vmem %s3038_s9, %s2686_s1  ;;  %s3093_s3 = scalar_lea.vmem %s3039_s10, %s2686_s1 }
 0x37c   : > { %v1019_v59 = vsel %vm1018_vm5, %v2807_v57, 0.0  ;;  %v1060_v7 = vld [vmem:[%s2703_s7 + $0x8] sm:$0xff]  ;;  %2264 = vmatprep.subr.bf16.mxu0 %v2520_v9  ;;  %v1061_v10 = vld [vmem:[%s2703_s7 + $0x10] sm:$0xff]  ;;  %v1062_v11 = vld [vmem:[%s2703_s7 + $0x18] sm:$0xff]  ;;  %2272 = vmatprep.subr.bf16.mxu1 %v2520_v9  ;;  %vm2521_vm6 = vmmov 0   ;;  %s2522_s28 = smov 88  }
 0x37d   : > { %v1069_v8 = vpack.c.bf16 %v1060_v7, %v1059_v6  ;;  %v1070_v12 = vpack.c.bf16 %v1062_v11, %v1061_v10  ;;  %2268 = vmatprep.mubr.msk.bf16.mxu0 %vm2521_vm6, %v2520_v9  ;;  %2274 = vmatprep.mubr.msk.bf16.mxu1 %vm2521_vm6, %v2520_v9  ;;  %v2184_v21 = vld [vmem:[%s3092_s4] ss:$0 sm:$0xff]  ;;  %s2523_s6 = smov 96   ;;  %s2524_s25 = smov 120   ;;  %vm1119_vm7 = vcmask 64512   ;;  %vm1169_vm8 = vcmask 72704  }
 0x37e   : > { %v2185_v25 = vld [vmem:[%s3093_s3] ss:$0 sm:$0xff]  ;;  %s2525_s26 = smov 112   ;;  %s2526_s27 = smov 80   ;;  %vm1173_vm9 = vcmask 65536   ;;  %vm1199_vm10 = vcmask 1043456  }
 0x37f   : > { %2265 = vmatpush3.bf16.msra.mxu0 %v1069_v8  ;;  %s2527_s21 = smov 104   ;;  %s2528_s12 = smov 72   ;;  %vm1200_vm11 = vcmask 1044480   ;;  %vm1648_vm12 = vcmask 130048   ;;  %vm1651_vm13 = vcmask 195584   ;;  %vm1885_vm0 = vcmask 523264  }
 0x380   : > { %2266 = vmatprep.subr.bf16.mxu0 %v2520_v9  ;;  %s2529_s7 = smov 64   ;;  %s2531_s20 = smov 48  }
 0x381   : > { %v2804_v56 = vld [vmem:[%s2744_s8] sm:$0xff]  ;;  %s2532_s4 = smov 40   ;;  %s2533_s24 = smov 56  }
 0x382   : > { %v1015_v58 = vsel %vm1014_vm4, %v2804_v56, 0.0  ;;  %s2534_s29 = smov 8   ;;  %s2535_s3 = smov 16  }
 0x383   : > { %1016 = vadd.xlane.f32.xlu0 %v1015_v58  ;;  %2267 = vmatpush3.bf16.msra.mxu0 %v1070_v12 }
 0x384   : > { %2278 = vmatprep.subr.bf16.mxu0 %v2520_v9 }
 0x387   : > { %1020 = vadd.xlane.f32.xlu0 %v1019_v59 }
 0x410   : > { %v1017_v60 = vpop.xlane.xlu0 %1016 }
 0x411   : > { %v1023_v61 = vmul.f32 0.03125, %v1017_v60 }
 0x413   : > { %v1025_v62 = vsub.f32 %v2804_v56, %v1023_v61 }
 0x414   : > { %v1021_v63 = vpop.xlane.xlu0 %1020 }
 0x415   : > { %v1024_v0 = vmul.f32 0.03125, %v1021_v63  ;;  %v1027_v1 = vmul.f32 %v1025_v62, %v1025_v62 }
 0x417   : > { %v1026_v2 = vsub.f32 %v2807_v57, %v1024_v0  ;;  %v1029_v3 = vsel %vm1014_vm4, %v1027_v1, 0.0 }
 0x418   : > { %1030 = vadd.xlane.f32.xlu1 %v1029_v3 }
 0x419   : > { %v1028_v4 = vmul.f32 %v1026_v2, %v1026_v2 }
 0x41b   : > { %v1032_v5 = vsel %vm1018_vm5, %v1028_v4, 0.0 }
 0x41c   : > { %1033 = vadd.xlane.f32.xlu1 %v1032_v5 }
 0x4a5   : > { %v1031_v13 = vpop.xlane.xlu1 %1030 }
 0x4a6   : > { %v1035_v14 = vmul.f32 0.03125, %v1031_v13 }
 0x4a8   : > { %v1037_v15 = vadd.f32 1e-05, %v1035_v14 }
 0x4a9   : > { %v1034_v16 = vpop.xlane.xlu1 %1033 }
 0x4aa   : > { %2426 = vrsqrt.f32 %v1037_v15  ;;  %v1036_v17 = vmul.f32 0.03125, %v1034_v16 }
 0x4ac   : > { %v1038_v18 = vadd.f32 1e-05, %v1036_v17 }
 0x4ae   : > { %2428 = vrsqrt.f32 %v1038_v18 }
 0x4b4   : > { %v2427_v19 = vpop.eup %2426 }
 0x4b5   : > { %v1041_v20 = vmul.f32 %v2427_v19, %v1025_v62 }
 0x4b7   : > { %v1049_v24 = vmul.f32 %v2184_v21, %v1041_v20 }
 0x4b8   : > { %v2429_v22 = vpop.eup %2428 }
 0x4b9   : > { %v1042_v23 = vmul.f32 %v2429_v22, %v1026_v2  ;;  %v1057_v27 = vadd.f32 %v2185_v25, %v1049_v24 }
 0x4bb   : > { %v1050_v26 = vmul.f32 %v2184_v21, %v1042_v23 }
 0x4bd   : > { %v1058_v28 = vadd.f32 %v2185_v25, %v1050_v26 }
 0x4bf   : > { %v1068_v29 = vpack.c.bf16 %v1058_v28, %v1057_v27 }
 0x4c1   : > { %2269 = vmatmul.mubr.msk.bf16.vlgmr.msra.gmra.mrb[0].mxu0 %vm1014_vm4, %v1068_v29 }
 0x4c2   : > { %2280 = vmatprep.mubr.msk.bf16.mxu0 %vm2521_vm6, %v2520_v9 }
 0x594   : > { %v1108_v30 = vpop.f32.mrb[0].mxu0 }
 0x595   : > { %v2270_v31 = vpop.f32.mrb[1].mxu0 }
 0x596   : > { %v1111_v32 = vpop.f32.mrb[2].mxu0 }
 0x597   : > { %v2842_v33 = vpack.c.bf16 %v1111_v32, %v1108_v30  ;;  %v2271_v34 = vpop.f32.mrb[3].mxu0 }
 0x599   : > { %1249 = vrot.lane.b32.xlu1 %v2842_v33, %s2522_s28  ;;  %1117 = vrot.lane.b32.xlu0 %v2842_v33, %s2523_s6  ;;  %s2536_s28 = smov 24  }
 0x59d   : > { %1247 = vrot.lane.b32.xlu1 %v2842_v33, %s2524_s25  ;;  %1372 = vrot.lane.b32.xlu0 %v2842_v33, %s2525_s26  ;;  %s3094_s25 = scalar_lea.vmem %s3042_s13, %s2686_s1 }
 0x5a1   : > { %1374 = vrot.lane.b32.xlu1 %v2842_v33, %s2526_s27  ;;  %1497 = vrot.lane.b32.xlu0 %v2842_v33, %s2527_s21 }
 0x5a5   : > { %1499 = vrot.lane.b32.xlu1 %v2842_v33, %s2528_s12 }
 0x60b   : > { %v1118_v35 = vpop.permute.xlu0 %1117  ;;  %v1250_v37 = vpop.permute.xlu1 %1249 }
 0x60c   : > { %v1124_v36 = vsel %vm1119_vm7, %v1118_v35, 0  ;;  %v1255_v39 = vsel %vm1119_vm7, %v1250_v37, 0 }
 0x60d   : > { %2273 = vmatpush3.bf16.xpose.msra.mxu1 %v1124_v36 }
 0x60e   : > { %2284 = vmatprep.subr.bf16.mxu1 %v2520_v9 }
 0x60f   : > { %v1248_v38 = vpop.permute.xlu1 %1247  ;;  %v1373_v43 = vpop.permute.xlu0 %1372 }
 0x613   : > { %v1375_v40 = vpop.permute.xlu1 %1374  ;;  %v1498_v45 = vpop.permute.xlu0 %1497 }
 0x614   : > { %2275 = vmatmul.mubr.msk.bf16.vlgmr.msra.gmra.mrb[0].mxu1 %vm1119_vm7, %v2842_v33  ;;  %v1380_v41 = vsel %vm1119_vm7, %v1375_v40, 0 }
 0x615   : > { %2285 = vmatpush3.bf16.xpose.msra.mxu1 %v1255_v39  ;;  %2286 = vmatprep.mubr.msk.bf16.mxu1 %vm2521_vm6, %v2520_v9 }
 0x616   : > { %2296 = vmatprep.subr.bf16.mxu1 %v2520_v9 }
 0x617   : > { %v1500_v42 = vpop.permute.xlu1 %1499 }
 0x618   : > { %v1505_v44 = vsel %vm1119_vm7, %v1500_v42, 0 }
 0x61c   : > { %2287 = vmatmul.mubr.msk.bf16.vlgmr.msra.gmra.mrb[4].mxu1 %vm1119_vm7, %v1248_v38 }
 0x61d   : > { %2297 = vmatpush3.bf16.xpose.msra.mxu1 %v1380_v41  ;;  %2298 = vmatprep.mubr.msk.bf16.mxu1 %vm2521_vm6, %v2520_v9  ;;  %v2530_v41 = vmov 65535  }
 0x61e   : > { %2308 = vmatprep.subr.bf16.mxu1 %v2520_v9  ;;  %v1201_v42 = vsel %vm1199_vm10, 4294967295, %v2530_v41 }
 0x624   : > { %2299 = vmatmul.mubr.msk.bf16.vlgmr.msra.gmra.mrb[8].mxu1 %vm1119_vm7, %v1373_v43 }
 0x625   : > { %2309 = vmatpush3.bf16.xpose.msra.mxu1 %v1505_v44  ;;  %2310 = vmatprep.mubr.msk.bf16.mxu1 %vm2521_vm6, %v2520_v9 }
 0x626   : > { %2320 = vmatprep.subr.bf16.mxu1 %v2520_v9 }
 0x62c   : > { %2311 = vmatmul.mubr.msk.bf16.vlgmr.msra.gmra.mrb[12].mxu1 %vm1119_vm7, %v1498_v45 }
 0x62d   : > { %2324 = vmatprep.mubr.msk.bf16.mxu1 %vm2521_vm6, %v2520_v9 }
 0x6e7   : > { %v1160_v46 = vpop.f32.mrb[0].mxu1 }
 0x6e8   : > { %v1167_v47 = vmul.f32 0.35355338, %v1160_v46  ;;  %v2276_v48 = vpop.f32.mrb[1].mxu1 }
 0x6e9   : > { %v1163_v49 = vpop.f32.mrb[2].mxu1 }
 0x6ea   : > { %v1168_v50 = vmul.f32 0.35355338, %v1163_v49  ;;  %v2277_v51 = vpop.f32.mrb[3].mxu1  ;;  %v1170_v52 = vsel %vm1169_vm8, %v1167_v47, -inf }
 0x6eb   : > { %1171 = vmax.xlane.f32.xlu1 %v1170_v52 }
 0x6ec   : > { %v1174_v53 = vsel %vm1173_vm9, %v1168_v50, -inf }
 0x6ed   : > { %1175 = vmax.xlane.f32.xlu0 %v1174_v53 }
 0x6ef   : > { %v1291_v54 = vpop.f32.mrb[4].mxu1 }
 0x6f0   : > { %v1298_v55 = vmul.f32 0.35355338, %v1291_v54  ;;  %v2288_v58 = vpop.f32.mrb[5].mxu1 }
 0x6f1   : > { %v1294_v59 = vpop.f32.mrb[6].mxu1 }
 0x6f2   : > { %v1299_v60 = vmul.f32 0.35355338, %v1294_v59  ;;  %v2289_v61 = vpop.f32.mrb[7].mxu1  ;;  %v1300_v62 = vsel %vm1169_vm8, %v1298_v55, -inf }
 0x6f3   : > { %1301 = vmax.xlane.f32.xlu0 %v1300_v62 }
 0x6f4   : > { %v1303_v63 = vsel %vm1173_vm9, %v1299_v60, -inf }
 0x6f7   : > { %1304 = vmax.xlane.f32.xlu0 %v1303_v63  ;;  %v1416_v0 = vpop.f32.mrb[8].mxu1 }
 0x6f8   : > { %v1423_v1 = vmul.f32 0.35355338, %v1416_v0  ;;  %v2300_v2 = vpop.f32.mrb[9].mxu1 }
 0x6f9   : > { %v1419_v3 = vpop.f32.mrb[10].mxu1 }
 0x6fa   : > { %v1424_v4 = vmul.f32 0.35355338, %v1419_v3  ;;  %v2301_v5 = vpop.f32.mrb[11].mxu1  ;;  %v1425_v6 = vsel %vm1169_vm8, %v1423_v1, -inf }
 0x6fb   : > { %1426 = vmax.xlane.f32.xlu1 %v1425_v6 }
 0x6fc   : > { %v1428_v7 = vsel %vm1173_vm9, %v1424_v4, -inf }
 0x6fd   : > { %1429 = vmax.xlane.f32.xlu0 %v1428_v7 }
 0x6ff   : > { %v1541_v8 = vpop.f32.mrb[12].mxu1 }
 0x700   : > { %v1548_v10 = vmul.f32 0.35355338, %v1541_v8  ;;  %v2312_v11 = vpop.f32.mrb[13].mxu1 }
 0x701   : > { %v1544_v12 = vpop.f32.mrb[14].mxu1 }
 0x702   : > { %v1549_v13 = vmul.f32 0.35355338, %v1544_v12  ;;  %v2313_v14 = vpop.f32.mrb[15].mxu1  ;;  %v1550_v15 = vsel %vm1169_vm8, %v1548_v10, -inf }
 0x703   : > { %1551 = vmax.xlane.f32.xlu1 %v1550_v15 }
 0x704   : > { %v1553_v16 = vsel %vm1173_vm9, %v1549_v13, -inf }
 0x705   : > { %1554 = vmax.xlane.f32.xlu0 %v1553_v16 }
 0x714   : > { %1194 = vrot.lane.b32.xlu1 %v2842_v33, %s2529_s7  ;;  %s3096_s7 = scalar_lea.vmem %s3044_s15, %s2686_s1 }
 0x778   : > { %v1172_v17 = vpop.xlane.xlu1 %1171 }
 0x779   : > { %v1177_v18 = vsub.f32 %v1167_v47, %v1172_v17  ;;  %v2890_v47 = vsel %vm1200_vm11, %v1201_v42, 0 }
 0x77a   : > { %v1176_v19 = vpop.xlane.xlu0 %1175 }
 0x77b   : > { %v1179_v20 = vmul.f32 1.442695, %v1177_v18  ;;  %v1178_v21 = vsub.f32 %v1168_v50, %v1176_v19 }
 0x77d   : > { %2430 = vpow2.f32 %v1179_v20  ;;  %v1181_v22 = vmul.f32 1.442695, %v1178_v21 }
 0x77f   : > { %2432 = vpow2.f32 %v1181_v22 }
 0x780   : > { %v1302_v23 = vpop.xlane.xlu0 %1301 }
 0x781   : > { %v1306_v24 = vsub.f32 %v1298_v55, %v1302_v23 }
 0x783   : > { %v1308_v25 = vmul.f32 1.442695, %v1306_v24 }
 0x784   : > { %v1305_v26 = vpop.xlane.xlu0 %1304 }
 0x785   : > { %2434 = vpow2.f32 %v1308_v25  ;;  %v1307_v27 = vsub.f32 %v1299_v60, %v1305_v26 }
 0x787   : > { %v2881_v28 = vpop.eup %2430  ;;  %v1310_v29 = vmul.f32 1.442695, %v1307_v27 }
 0x788   : > { %v1427_v30 = vpop.xlane.xlu1 %1426  ;;  %v1183_v31 = vsel %vm1169_vm8, %v2881_v28, 0.0 }
 0x789   : > { %v2433_v32 = vpop.eup %2432  ;;  %2436 = vpow2.f32 %v1310_v29  ;;  %v1431_v34 = vsub.f32 %v1423_v1, %v1427_v30  ;;  %1184 = vadd.xlane.f32.xlu1 %v1183_v31 }
 0x78a   : > { %v1430_v35 = vpop.xlane.xlu0 %1429  ;;  %v1186_v36 = vsel %vm1173_vm9, %v2433_v32, 0.0 }
 0x78b   : > { %v1433_v37 = vmul.f32 1.442695, %v1431_v34  ;;  %v1432_v38 = vsub.f32 %v1424_v4, %v1430_v35  ;;  %1187 = vadd.xlane.f32.xlu0 %v1186_v36 }
 0x78d   : > { %2438 = vpow2.f32 %v1433_v37  ;;  %v1435_v39 = vmul.f32 1.442695, %v1432_v38 }
 0x78f   : > { %v2886_v40 = vpop.eup %2434  ;;  %2440 = vpow2.f32 %v1435_v39 }
 0x790   : > { %v1552_v43 = vpop.xlane.xlu1 %1551  ;;  %v1312_v44 = vsel %vm1169_vm8, %v2886_v40, 0.0 }
 0x791   : > { %v1556_v45 = vsub.f32 %v1548_v10, %v1552_v43  ;;  %1313 = vadd.xlane.f32.xlu1 %v1312_v44  ;;  %v1063_v43 = vld [vmem:[%s2708_s22] sm:$0xff]  ;;  %v1064_v44 = vld [vmem:[%s2708_s22 + $0x8] sm:$0xff] }
 0x792   : > { %v1555_v46 = vpop.xlane.xlu0 %1554 }
 0x793   : > { %v2437_v48 = vpop.eup %2436  ;;  %v1558_v49 = vmul.f32 1.442695, %v1556_v45  ;;  %v1557_v50 = vsub.f32 %v1549_v13, %v1555_v46 }
 0x794   : > { %v1195_v51 = vpop.permute.xlu1 %1194  ;;  %v1315_v52 = vsel %vm1173_vm9, %v2437_v48, 0.0 }
 0x795   : > { %2442 = vpow2.f32 %v1558_v49  ;;  %v1560_v53 = vmul.f32 1.442695, %v1557_v50  ;;  %v1204_v54 = vand.u32 %v2890_v47, %v1195_v51  ;;  %1316 = vadd.xlane.f32.xlu0 %v1315_v52  ;;  %v1065_v49 = vld [vmem:[%s2708_s22 + $0x10] sm:$0xff]  ;;  %v1066_v50 = vld [vmem:[%s2708_s22 + $0x18] sm:$0xff] }
 0x796   : > { %v1656_v52 = vpack.c.bf16 %v1066_v50, %v1065_v49 }
 0x797   : > { %v2439_v55 = vpop.eup %2438  ;;  %2444 = vpow2.f32 %v1560_v53  ;;  %2279 = vmatpush3.bf16.msra.mxu0 %v1204_v54 }
 0x798   : > { %v1437_v58 = vsel %vm1169_vm8, %v2439_v55, 0.0  ;;  %2290 = vmatprep.subr.bf16.mxu0 %v2520_v9 }
 0x799   : > { %v2441_v59 = vpop.eup %2440  ;;  %1438 = vadd.xlane.f32.xlu1 %v1437_v58 }
 0x79a   : > { %v1440_v60 = vsel %vm1173_vm9, %v2441_v59, 0.0 }
 0x79b   : > { %1441 = vadd.xlane.f32.xlu0 %v1440_v60 }
 0x79f   : > { %v2897_v61 = vpop.eup %2442 }
 0x7a0   : > { %v1562_v62 = vsel %vm1169_vm8, %v2897_v61, 0.0 }
 0x7a1   : > { %v2445_v63 = vpop.eup %2444  ;;  %1563 = vadd.xlane.f32.xlu0 %v1562_v62 }
 0x7a2   : > { %v1565_v0 = vsel %vm1173_vm9, %v2445_v63, 0.0 }
 0x7a5   : > { %1566 = vadd.xlane.f32.xlu0 %v1565_v0 }
 0x7aa   : > { %1448 = vrot.lane.b32.xlu1 %v2842_v33, %s2531_s20 }
 0x7ae   : > { %1573 = vrot.lane.b32.xlu1 %v2842_v33, %s2532_s4 }
 0x7bb   : > { %1323 = vrot.lane.b32.xlu0 %v2842_v33, %s2533_s24  ;;  %s3097_s24 = sld [smem:[#allocation2_spill]] }
 0x7c1   : > { %p2207_p8 = scmp.ne.s32.totalorder %s3097_s24, 1 }
 0x7c2   : > { %s3099_s22 = sld [smem:[#allocation20_spill]] (!%p2207_p8) }
 0x816   : > { %v1185_v1 = vpop.xlane.xlu1 %1184 }
 0x817   : > { %2446 = vrcp.f32 %v1185_v1 }
 0x818   : > { %v1188_v2 = vpop.xlane.xlu0 %1187 }
 0x819   : > { %2448 = vrcp.f32 %v1188_v2 }
 0x81e   : > { %v1314_v10 = vpop.xlane.xlu1 %1313 }
 0x821   : > { %v2447_v3 = vpop.eup %2446 }
 0x822   : > { %v1191_v5 = vmul.f32 %v2447_v3, %v2881_v28  ;;  %v1317_v7 = vpop.xlane.xlu0 %1316 }
 0x823   : > { %v2449_v4 = vpop.eup %2448  ;;  %2450 = vrcp.f32 %v1317_v7 }
 0x824   : > { %v1192_v6 = vmul.f32 %v2449_v4, %v2433_v32  ;;  %2452 = vrcp.f32 %v1314_v10 }
 0x826   : > { %v1193_v8 = vpack.c.bf16 %v1192_v6, %v1191_v5  ;;  %v1439_v12 = vpop.xlane.xlu1 %1438 }
 0x828   : > { %2281 = vmatmul.mubr.msk.bf16.vlgmr.msra.gmra.mrb[4].mxu0 %vm1169_vm8, %v1193_v8  ;;  %v1442_v11 = vpop.xlane.xlu0 %1441 }
 0x829   : > { %2292 = vmatprep.mubr.msk.bf16.mxu0 %vm2521_vm6, %v2520_v9  ;;  %2454 = vrcp.f32 %v1442_v11 }
 0x82a   : > { %2456 = vrcp.f32 %v1439_v12  ;;  %v1449_v20 = vpop.permute.xlu1 %1448 }
 0x82b   : > { %v1454_v23 = vand.u32 %v1449_v20, %v2890_v47 }
 0x82d   : > { %v2451_v14 = vpop.eup %2450 }
 0x82e   : > { %v1564_v33 = vpop.xlane.xlu0 %1563  ;;  %v2453_v15 = vpop.eup %2452  ;;  %v1321_v16 = vmul.f32 %v2451_v14, %v2437_v48 }
 0x82f   : > { %v1320_v19 = vmul.f32 %v2453_v15, %v2886_v40  ;;  %v1574_v27 = vpop.permute.xlu1 %1573  ;;  %v2195_v15 = vld [vmem:[%s3094_s25] ss:$0 sm:$0xff] }
 0x830   : > { %v1579_v30 = vand.u32 %v1574_v27, %v2890_v47 }
 0x831   : > { %v1322_v21 = vpack.c.bf16 %v1321_v16, %v1320_v19 }
 0x832   : > { %v1567_v13 = vpop.xlane.xlu0 %1566 }
 0x833   : > { %2458 = vrcp.f32 %v1567_v13  ;;  %v2455_v22 = vpop.eup %2454 }
 0x834   : > { %2460 = vrcp.f32 %v1564_v33  ;;  %v2457_v24 = vpop.eup %2456  ;;  %v1446_v25 = vmul.f32 %v2455_v22, %v2441_v59 }
 0x835   : > { %v1445_v26 = vmul.f32 %v2457_v24, %v2439_v55 }
 0x836   : > { %v1324_v17 = vpop.permute.xlu0 %1323 }
 0x837   : > { %v1329_v18 = vand.u32 %v1324_v17, %v2890_v47  ;;  %v1447_v28 = vpack.c.bf16 %v1446_v25, %v1445_v26  ;;  %v1655_v47 = vpack.c.bf16 %v1064_v44, %v1063_v43 }
 0x839   : > { %2291 = vmatpush3.bf16.msra.mxu0 %v1329_v18  ;;  %2321 = vmatpush3.bf16.msra.mxu1 %v1655_v47 }
 0x83a   : > { %2302 = vmatprep.subr.bf16.mxu0 %v2520_v9  ;;  %2322 = vmatprep.subr.bf16.mxu1 %v2520_v9 }
 0x83c   : > { %2293 = vmatmul.mubr.msk.bf16.vlgmr.msra.gmra.mrb[8].mxu0 %vm1169_vm8, %v1322_v21 }
 0x83d   : > { %2303 = vmatpush3.bf16.msra.mxu0 %v1454_v23  ;;  %2304 = vmatprep.mubr.msk.bf16.mxu0 %vm2521_vm6, %v2520_v9  ;;  %v2459_v29 = vpop.eup %2458 }
 0x83e   : > { %2314 = vmatprep.subr.bf16.mxu0 %v2520_v9  ;;  %v2461_v31 = vpop.eup %2460  ;;  %v1571_v32 = vmul.f32 %v2459_v29, %v2445_v63  ;;  %2323 = vmatpush3.bf16.msra.mxu1 %v1656_v52 }
 0x83f   : > { %v1570_v34 = vmul.f32 %v2461_v31, %v2897_v61  ;;  %2336 = vmatprep.subr.bf16.mxu1 %v2520_v9 }
 0x841   : > { %v1572_v35 = vpack.c.bf16 %v1571_v32, %v1570_v34 }
 0x844   : > { %2305 = vmatmul.mubr.msk.bf16.vlgmr.msra.gmra.mrb[12].mxu0 %vm1169_vm8, %v1447_v28 }
 0x845   : > { %2315 = vmatpush3.bf16.msra.mxu0 %v1579_v30  ;;  %2316 = vmatprep.mubr.msk.bf16.mxu0 %vm2521_vm6, %v2520_v9 }
 0x846   : > { %2328 = vmatprep.subr.bf16.mxu0 %v2520_v9 }
 0x84c   : > { %2317 = vmatmul.mubr.msk.bf16.vlgmr.msra.gmra.mrb[16].mxu0 %vm1169_vm8, %v1572_v35  ;;  %v1753_v35 = vld [vmem:[%s2725_s0] sm:$0xff] }
 0x84d   : > { %2332 = vmatprep.mubr.msk.bf16.mxu0 %vm2521_vm6, %v2520_v9 }
 0x8fb   : > { %v1240_v36 = vpop.f32.mrb[4].mxu0 }
 0x8fc   : > { %v2282_v37 = vpop.f32.mrb[5].mxu0 }
 0x8fd   : > { %v1243_v38 = vpop.f32.mrb[6].mxu0 }
 0x8fe   : > { %v2283_v39 = vpop.f32.mrb[7].mxu0 }
 0x8ff   : > { %v1756_v39 = vld [vmem:[%s2725_s0 + $0x18] sm:$0xff] }
 0x90f   : > { %v1365_v40 = vpop.f32.mrb[8].mxu0 }
 0x910   : > { %v2294_v41 = vpop.f32.mrb[9].mxu0 }
 0x911   : > { %v1368_v42 = vpop.f32.mrb[10].mxu0 }
 0x912   : > { %v2411_v45 = vpack.i.bf16 %v1368_v42, %v1365_v40  ;;  %v2295_v46 = vpop.f32.mrb[11].mxu0 }
 0x914   : > { %2412 = vrot.lane.b32.xlu1 %v2411_v45, %s2534_s29  ;;  %s3098_s29 = sld [smem:[#allocation19_spill]] (!%p2207_p8) }
 0x917   : > { %v1490_v48 = vpop.f32.mrb[12].mxu0 }
 0x918   : > { %v2306_v51 = vpop.f32.mrb[13].mxu0 }
 0x919   : > { %v1493_v53 = vpop.f32.mrb[14].mxu0 }
 0x91a   : > { %v2416_v54 = vpack.i.bf16 %v1493_v53, %v1490_v48  ;;  %v2307_v55 = vpop.f32.mrb[15].mxu0  ;;  %v2198_v53 = vld [vmem:[%s3096_s7] ss:$0 sm:$0xff] }
 0x91c   : > { %2417 = vrot.lane.b32.xlu1 %v2416_v54, %s2535_s3 }
 0x91f   : > { %v1615_v58 = vpop.f32.mrb[16].mxu0 }
 0x920   : > { %v2318_v59 = vpop.f32.mrb[17].mxu0 }
 0x921   : > { %v1618_v60 = vpop.f32.mrb[18].mxu0 }
 0x922   : > { %v2421_v61 = vpack.i.bf16 %v1618_v60, %v1615_v58  ;;  %v2319_v62 = vpop.f32.mrb[19].mxu0  ;;  %v1865_v60 = vld [vmem:[%s2735_s23] sm:$0xff] }
 0x924   : > { %2422 = vrot.lane.b32.xlu1 %v2421_v61, %s2536_s28  ;;  %v1866_v61 = vld [vmem:[%s2735_s23 + $0x8] sm:$0xff] }
 0x925   : > { %v1874_v62 = vpack.c.bf16 %v1866_v61, %v1865_v60 }
 0x986   : > { %v2413_v63 = vpop.permute.xlu1 %2412 }
 0x987   : > { %v2415_v1 = vunpack.i.h.bf16 %v2413_v63  ;;  %v2414_v2 = vunpack.i.l.bf16 %v2413_v63  ;;  %v1867_v63 = vld [vmem:[%s2735_s23 + $0x10] sm:$0xff] }
 0x989   : > { %v1647_v6 = vsel %vm1119_vm7, %v1243_v38, %v2415_v1  ;;  %v1646_v7 = vsel %vm1119_vm7, %v1240_v36, %v2414_v2  ;;  %v1754_v36 = vld [vmem:[%s2725_s0 + $0x8] sm:$0xff]  ;;  %v1755_v38 = vld [vmem:[%s2725_s0 + $0x10] sm:$0xff]  ;;  %s3095_s0 = scalar_lea.vmem %s3043_s14, %s2686_s1  ;;  %v1869_v2 = vld [vmem:[%s2735_s23 + $0x20] sm:$0xff] }
 0x98a   : > { %v1758_v37 = vpack.c.bf16 %v1754_v36, %v1753_v35  ;;  %v1759_v40 = vpack.c.bf16 %v1756_v39, %v1755_v38  ;;  %v2197_v49 = vld [vmem:[%s3095_s0] ss:$0 sm:$0xff] }
 0x98c   : > { %2329 = vmatpush3.bf16.msra.mxu0 %v1758_v37 }
 0x98d   : > { %2330 = vmatprep.subr.bf16.mxu0 %v2520_v9 }
 0x98e   : > { %v2418_v0 = vpop.permute.xlu1 %2417 }
 0x98f   : > { %v2420_v3 = vunpack.i.h.bf16 %v2418_v0  ;;  %v2419_v4 = vunpack.i.l.bf16 %v2418_v0  ;;  %v1868_v0 = vld [vmem:[%s2735_s23 + $0x18] sm:$0xff] }
 0x990   : > { %2331 = vmatpush3.bf16.msra.mxu0 %v1759_v40  ;;  %v1875_v1 = vpack.c.bf16 %v1868_v0, %v1867_v63 }
 0x991   : > { %v1650_v11 = vsel %vm1648_vm12, %v1647_v6, %v2420_v3  ;;  %v1649_v33 = vsel %vm1648_vm12, %v1646_v7, %v2419_v4  ;;  %v1870_v3 = vld [vmem:[%s2735_s23 + $0x28] sm:$0xff]  ;;  %v1872_v6 = vld [vmem:[%s2735_s23 + $0x38] sm:$0xff] }
 0x992   : > { %v1876_v4 = vpack.c.bf16 %v1870_v3, %v1869_v2 }
 0x996   : > { %v2423_v5 = vpop.permute.xlu1 %2422 }
 0x997   : > { %v2425_v8 = vunpack.i.h.bf16 %v2423_v5  ;;  %v2424_v10 = vunpack.i.l.bf16 %v2423_v5  ;;  %v1871_v5 = vld [vmem:[%s2735_s23 + $0x30] sm:$0xff] }
 0x998   : > { %v1877_v7 = vpack.c.bf16 %v1872_v6, %v1871_v5 }
 0x999   : > { %v1653_v12 = vsel %vm1651_vm13, %v1650_v11, %v2425_v8  ;;  %v1652_v13 = vsel %vm1651_vm13, %v1649_v33, %v2424_v10  ;;  %v2199_v8 = vld [vmem:[%s857_s11] ss:$0 sm:$0xff] }
 0x99a   : > { %v1654_v14 = vpack.c.bf16 %v1653_v12, %v1652_v13 }
 0x99c   : > { %2325 = vmatmul.mubr.msk.bf16.vlgmr.msra.gmra.mrb[16].mxu1 %vm1014_vm4, %v1654_v14 }
 0x99d   : > { %2344 = vmatprep.mubr.msk.bf16.mxu1 %vm2521_vm6, %v2520_v9  ;;  %2337 = vmatpush3.bf16.msra.mxu1 %v1874_v62 }
 0x99e   : > { %2338 = vmatprep.subr.bf16.mxu1 %v2520_v9 }
 0x9a1   : > { %2339 = vmatpush3.bf16.msra.mxu1 %v1875_v1 }
 0x9a2   : > { %2340 = vmatprep.subr.bf16.mxu1 %v2520_v9 }
 0x9a5   : > { %2341 = vmatpush3.bf16.msra.mxu1 %v1876_v4  ;;  %v2205_v4 = vld [vmem:[%s865_s30] ss:$0 sm:$0xff] }
 0x9a6   : > { %2342 = vmatprep.subr.bf16.mxu1 %v2520_v9 }
 0x9a9   : > { %2343 = vmatpush3.bf16.msra.mxu1 %v1877_v7 }
 0xa6f   : > { %v1700_v16 = vpop.f32.mrb[16].mxu1 }
 0xa70   : > { %v1701_v17 = vadd.f32 %v2195_v15, %v1700_v16  ;;  %v2326_v18 = vpop.f32.mrb[17].mxu1 }
 0xa71   : > { %v1703_v19 = vpop.f32.mrb[18].mxu1 }
 0xa72   : > { %v2943_v20 = vadd.f32 %v1701_v17, %v2804_v56  ;;  %v1704_v21 = vadd.f32 %v2195_v15, %v1703_v19  ;;  %v2327_v22 = vpop.f32.mrb[19].mxu1 }
 0xa74   : > { %v2946_v23 = vadd.f32 %v1704_v21, %v2807_v57  ;;  %v1711_v24 = vsel %vm1014_vm4, %v2943_v20, 0.0 }
 0xa75   : > { %1712 = vadd.xlane.f32.xlu0 %v1711_v24 }
 0xa76   : > { %v1714_v25 = vsel %vm1018_vm5, %v2946_v23, 0.0 }
 0xa77   : > { %1715 = vadd.xlane.f32.xlu1 %v1714_v25 }
 0xb02   : > { %v1713_v26 = vpop.xlane.xlu0 %1712 }
 0xb03   : > { %v1717_v27 = vmul.f32 0.03125, %v1713_v26 }
 0xb04   : > { %v1716_v56 = vpop.xlane.xlu1 %1715 }
 0xb05   : > { %v1719_v28 = vsub.f32 %v2943_v20, %v1717_v27  ;;  %v1718_v29 = vmul.f32 0.03125, %v1716_v56 }
 0xb07   : > { %v1720_v57 = vsub.f32 %v2946_v23, %v1718_v29  ;;  %v1721_v30 = vmul.f32 %v1719_v28, %v1719_v28 }
 0xb09   : > { %v1723_v31 = vsel %vm1014_vm4, %v1721_v30, 0.0  ;;  %v1722_v32 = vmul.f32 %v1720_v57, %v1720_v57 }
 0xb0a   : > { %1724 = vadd.xlane.f32.xlu0 %v1723_v31 }
 0xb0b   : > { %v1726_v34 = vsel %vm1018_vm5, %v1722_v32, 0.0 }
 0xb0e   : > { %1727 = vadd.xlane.f32.xlu0 %v1726_v34 }
 0xb97   : > { %v1725_v41 = vpop.xlane.xlu0 %1724 }
 0xb98   : > { %v1729_v42 = vmul.f32 0.03125, %v1725_v41 }
 0xb9a   : > { %v1731_v43 = vadd.f32 1e-05, %v1729_v42 }
 0xb9b   : > { %v1728_v44 = vpop.xlane.xlu0 %1727 }
 0xb9c   : > { %2462 = vrsqrt.f32 %v1731_v43  ;;  %v1730_v45 = vmul.f32 0.03125, %v1728_v44 }
 0xb9e   : > { %v1732_v46 = vadd.f32 1e-05, %v1730_v45 }
 0xba0   : > { %2464 = vrsqrt.f32 %v1732_v46 }
 0xba6   : > { %v2463_v47 = vpop.eup %2462 }
 0xba7   : > { %v1735_v48 = vmul.f32 %v2463_v47, %v1719_v28 }
 0xba9   : > { %v1743_v51 = vmul.f32 %v2197_v49, %v1735_v48 }
 0xbaa   : > { %v2465_v50 = vpop.eup %2464 }
 0xbab   : > { %v1736_v52 = vmul.f32 %v2465_v50, %v1720_v57  ;;  %v1751_v55 = vadd.f32 %v2198_v53, %v1743_v51 }
 0xbad   : > { %v1744_v54 = vmul.f32 %v2197_v49, %v1736_v52 }
 0xbaf   : > { %v1752_v58 = vadd.f32 %v2198_v53, %v1744_v54 }
 0xbb1   : > { %v1757_v59 = vpack.c.bf16 %v1752_v58, %v1751_v55 }
 0xbb3   : > { %2333 = vmatmul.mubr.msk.bf16.vlgmr.msra.gmra.mrb[20].mxu0 %vm1014_vm4, %v1757_v59 }
 0xc86   : > { %v1804_v10 = vpop.f32.mrb[20].mxu0 }
 0xc87   : > { %v1805_v11 = vadd.f32 %v2199_v8, %v1804_v10  ;;  %v2334_v33 = vpop.f32.mrb[21].mxu0 }
 0xc88   : > { %v1807_v12 = vpop.f32.mrb[22].mxu0 }
 0xc89   : > { %v1813_v13 = vmul.f32 0.70710677, %v1805_v11  ;;  %v1808_v14 = vadd.f32 %v2199_v8, %v1807_v12  ;;  %v2335_v15 = vpop.f32.mrb[23].mxu0  ;;  %v1811_v62 = vmul.f32 0.5, %v1805_v11 }
 0xc8b   : > { %v1815_v16 = vand.u32 2147483647, %v1813_v13  ;;  %v1814_v17 = vmul.f32 0.70710677, %v1808_v14  ;;  %vm1855_vm14 = vcmp.ge.f32.partialorder %v1813_v13, 0.0  ;;  %v1812_v63 = vmul.f32 0.5, %v1808_v14 }
 0xc8d   : > { %v1817_v18 = vmul.f32 0.3275911, %v1815_v16  ;;  %v1816_v9 = vand.u32 2147483647, %v1814_v17  ;;  %v1843_v24 = vmul.f32 %v1815_v16, %v1815_v16  ;;  %vm1856_vm15 = vcmp.ge.f32.partialorder %v1814_v17, 0.0 }
 0xc8f   : > { %v1819_v19 = vadd.f32 1.0, %v1817_v18  ;;  %v1818_v21 = vmul.f32 0.3275911, %v1816_v9  ;;  %v1844_v25 = vmul.f32 %v1816_v9, %v1816_v9  ;;  %v1845_v27 = vsub.f32 0.0, %v1843_v24 }
 0xc91   : > { %2466 = vrcp.f32 %v1819_v19  ;;  %v1820_v22 = vadd.f32 1.0, %v1818_v21  ;;  %v1846_v57 = vsub.f32 0.0, %v1844_v25  ;;  %v1847_v30 = vmul.f32 1.442695, %v1845_v27 }
 0xc93   : > { %2468 = vrcp.f32 %v1820_v22  ;;  %v1849_v36 = vmul.f32 1.442695, %v1846_v57  ;;  %v2208_v57 = vld [vmem:[%s3098_s29] ss:$0 sm:$0xff] (!%p2207_p8) }
 0xc94   : > { %2470 = vpow2.f32 %v1847_v30 }
 0xc95   : > { %2472 = vpow2.f32 %v1849_v36 }
 0xc9b   : > { %v2467_v26 = vpop.eup %2466 }
 0xc9c   : > { %v1825_v56 = vmul.f32 1.0614054, %v2467_v26 }
 0xc9d   : > { %v2469_v28 = vpop.eup %2468 }
 0xc9e   : > { %v2201_v29 = vadd.f32 -1.4531521, %v1825_v56  ;;  %v1826_v31 = vmul.f32 1.0614054, %v2469_v28  ;;  %v2471_v47 = vpop.eup %2470 }
 0xc9f   : > { %v2473_v51 = vpop.eup %2472 }
 0xca0   : > { %v1829_v32 = vmul.f32 %v2467_v26, %v2201_v29  ;;  %v2202_v34 = vadd.f32 -1.4531521, %v1826_v31  ;;  %v2209_v31 = vld [vmem:[%s3099_s22] ss:$0 sm:$0xff] (!%p2207_p8) }
 0xca2   : > { %v1831_v35 = vadd.f32 1.4214138, %v1829_v32  ;;  %v1830_v37 = vmul.f32 %v2469_v28, %v2202_v34 }
 0xca4   : > { %v1833_v38 = vmul.f32 %v2467_v26, %v1831_v35  ;;  %v1832_v39 = vadd.f32 1.4214138, %v1830_v37 }
 0xca6   : > { %v2203_v40 = vadd.f32 -0.28449672, %v1833_v38  ;;  %v1834_v41 = vmul.f32 %v2469_v28, %v1832_v39 }
 0xca8   : > { %v1837_v42 = vmul.f32 %v2467_v26, %v2203_v40  ;;  %v2204_v43 = vadd.f32 -0.28449672, %v1834_v41 }
 0xcaa   : > { %v1839_v44 = vadd.f32 0.2548296, %v1837_v42  ;;  %v1838_v45 = vmul.f32 %v2469_v28, %v2204_v43 }
 0xcac   : > { %v1841_v46 = vmul.f32 %v2467_v26, %v1839_v44  ;;  %v1840_v48 = vadd.f32 0.2548296, %v1838_v45 }
 0xcae   : > { %v1851_v49 = vmul.f32 %v2471_v47, %v1841_v46  ;;  %v1842_v50 = vmul.f32 %v2469_v28, %v1840_v48 }
 0xcb0   : > { %v1853_v52 = vsub.f32 1.0, %v1851_v49  ;;  %v1852_v53 = vmul.f32 %v2473_v51, %v1842_v50 }
 0xcb2   : > { %v1857_v54 = vsub.f32 0.0, %v1853_v52  ;;  %v1854_v55 = vsub.f32 1.0, %v1852_v53 }
 0xcb4   : > { %v1859_v58 = vsel %vm1855_vm14, %v1853_v52, %v1857_v54  ;;  %v1858_v59 = vsub.f32 0.0, %v1854_v55 }
 0xcb5   : > { %v1861_v60 = vadd.f32 1.0, %v1859_v58 }
 0xcb6   : > { %v1860_v61 = vsel %vm1856_vm15, %v1854_v55, %v1858_v59 }
 0xcb7   : > { %v1862_v0 = vadd.f32 1.0, %v1860_v61  ;;  %v1863_v1 = vmul.f32 %v1861_v60, %v1811_v62 }
 0xcb9   : > { %v1864_v2 = vmul.f32 %v1862_v0, %v1812_v63 }
 0xcbb   : > { %v1873_v3 = vpack.c.bf16 %v1864_v2, %v1863_v1 }
 0xcbd   : > { %2345 = vmatmul.mubr.msk.bf16.vlgmr.msra.gmra.mrb[20].mxu1 %vm1885_vm0, %v1873_v3 }
 0xd90   : > { %v1923_v5 = vpop.f32.mrb[20].mxu1 }
 0xd91   : > { %v1924_v6 = vadd.f32 %v2205_v4, %v1923_v5  ;;  %v2346_v7 = vpop.f32.mrb[21].mxu1  ;;  %1937 = sbr.rel (%p2207_p8) target bundleno = 3795 (0xed3), region = 116 }
 0xd92   : > { %v1926_v8 = vpop.f32.mrb[22].mxu1 }
 0xd93   : > { %v1930_v10 = vadd.f32 %v1924_v6, %v2943_v20  ;;  %v1927_v11 = vadd.f32 %v2205_v4, %v1926_v8  ;;  %v2347_v33 = vpop.f32.mrb[23].mxu1 }
 0xd95   : > { %1932 = vst.msk [vmem:[%s2744_s8] sm:$0xff] %vm1014_vm4, %v1930_v10  ;;  %v1931_v12 = vadd.f32 %v1927_v11, %v2946_v23  ;;  %v1940_v13 = vsel (!%p2207_p8), %vm1014_vm4, %v1930_v10, 0.0 }
 0xd96   : > { %1941 = vadd.xlane.f32.xlu0 (!%p2207_p8), %v1940_v13 }
 0xd97   : > { %1933 = vst.msk [vmem:[%s2744_s8 + $0x8] sm:$0x1] %vm1018_vm5, %v1931_v12  ;;  %v1943_v14 = vsel (!%p2207_p8), %vm1018_vm5, %v1931_v12, 0.0 }
 0xd9a   : > { %1944 = vadd.xlane.f32.xlu0 %v1943_v14 }
 0xe23   : > { %v1942_v15 = vpop.xlane.xlu0 %1941 }
 0xe24   : > { %v1946_v16 = vmul.f32 0.03125, %v1942_v15 }
 0xe26   : > { %v1948_v20 = vsub.f32 %v1930_v10, %v1946_v16 }
 0xe27   : > { %v1945_v17 = vpop.xlane.xlu0 %1944 }
 0xe28   : > { %v1947_v18 = vmul.f32 0.03125, %v1945_v17  ;;  %v1950_v9 = vmul.f32 %v1948_v20, %v1948_v20 }
 0xe2a   : > { %v1949_v19 = vsub.f32 %v1931_v12, %v1947_v18  ;;  %v1952_v23 = vsel %vm1014_vm4, %v1950_v9, 0.0 }
 0xe2b   : > { %1953 = vadd.xlane.f32.xlu1 %v1952_v23 }
 0xe2c   : > { %v1951_v21 = vmul.f32 %v1949_v19, %v1949_v19 }
 0xe2e   : > { %v1955_v22 = vsel %vm1018_vm5, %v1951_v21, 0.0 }
 0xe2f   : > { %1956 = vadd.xlane.f32.xlu1 %v1955_v22 }
 0xeb8   : > { %v1954_v24 = vpop.xlane.xlu1 %1953 }
 0xeb9   : > { %v1958_v25 = vmul.f32 0.03125, %v1954_v24 }
 0xebb   : > { %v1960_v26 = vadd.f32 1e-05, %v1958_v25 }
 0xebc   : > { %v1957_v27 = vpop.xlane.xlu1 %1956 }
 0xebd   : > { %2474 = vrsqrt.f32 %v1960_v26  ;;  %v1959_v56 = vmul.f32 0.03125, %v1957_v27 }
 0xebf   : > { %v1961_v28 = vadd.f32 1e-05, %v1959_v56 }
 0xec1   : > { %2476 = vrsqrt.f32 %v1961_v28 }
 0xec7   : > { %v2475_v29 = vpop.eup %2474 }
 0xec8   : > { %v1964_v30 = vmul.f32 %v2475_v29, %v1948_v20 }
 0xeca   : > { %v1972_v32 = vmul.f32 %v2208_v57, %v1964_v30 }
 0xecb   : > { %v2477_v34 = vpop.eup %2476 }
 0xecc   : > { %v1980_v35 = vadd.f32 %v2209_v31, %v1972_v32  ;;  %v1965_v36 = vmul.f32 %v2477_v34, %v1949_v19 }
 0xece   : > { %1982 = vst.msk [vmem:[%s2744_s8] sm:$0xff] %vm1014_vm4, %v1980_v35  ;;  %v1973_v37 = vmul.f32 %v2208_v57, %v1965_v36 }
 0xed0   : > { %v1981_v38 = vadd.f32 %v2209_v31, %v1973_v37 }
 0xed2   : > { %1983 = vst.msk [vmem:[%s2744_s8 + $0x8] sm:$0x1] %vm1018_vm5, %v1981_v38 }
 0xed3 PF: > { %s3100_s6 = sld [smem:[#allocation5_spill]]  ;;  %s3101_s3 = sld [smem:[#allocation3_spill]] }
 0xed4   : > { %s3102_s28 = sld [smem:[#allocation4_spill]]  ;;  %s3103_s29 = sld [smem:[#allocation6_spill]] }
 0xed5   : > { %s3104_s30 = sld [smem:[#allocation7_spill]] }
 0xed9   : > { %s32_s4 = sadd.s32 1, %s3100_s6  }
 0xeda   : > { %p29_p9 = scmp.ge.s32.totalorder %s32_s4, 6  }
 0xedc   :  { %31 = sbr.rel (!%p29_p9) target bundleno = 15 (0xf), region = 179 }

// kernel: overlap_vit_forward.4
= control target key start
LH: loop header
LB: loop body
LE: loop exit
PB: predicated region body
PF: predicated region fallthrough
CT: control target
= control target key end

     0   :  { %s2512_s0 = inlined_call_operand.vmem [shape: f32[2,4,32], index: 0, kind: input, shape index: {}]   ;;  %s2513_s1 = inlined_call_operand.vmem [shape: f32[2,4,32], index: 1, kind: input, shape index: {}]   ;;  %s2514_s2 = inlined_call_operand.vmem [shape: f32[32,96], index: 2, kind: input, shape index: {}]   ;;  %s2515_s3 = inlined_call_operand.vmem [shape: f32[1,96], index: 3, kind: input, shape index: {}]   ;;  %s2516_s4 = inlined_call_operand.vmem [shape: f32[32,32], index: 4, kind: input, shape index: {}]   ;;  %s2517_s5 = inlined_call_operand.vmem [shape: f32[1,32], index: 5, kind: input, shape index: {}]   ;;  %s2518_s6 = inlined_call_operand.vmem [shape: f32[1,32], index: 6, kind: input, shape index: {}]   ;;  %s2519_s7 = inlined_call_operand.vmem [shape: f32[1,32], index: 7, kind: input, shape index: {}]   ;;  %s2520_s8 = inlined_call_operand.vmem [shape: f32[32,64], index: 8, kind: input, shape index: {}]   ;;  %s2521_s9 = inlined_call_operand.vmem [shape: f32[1,64], index: 9, kind: input, shape index: {}]   ;;  %s2522_s10 = inlined_call_operand.vmem [shape: f32[64,32], index: 10, kind: input, shape index: {}]   ;;  %s2523_s11 = inlined_call_operand.vmem [shape: f32[1,32], index: 11, kind: input, shape index: {}]   ;;  %s2524_s12 = inlined_call_operand.vmem [shape: f32[1,32], index: 12, kind: input, shape index: {}]   ;;  %s2525_s13 = inlined_call_operand.vmem [shape: f32[1,32], index: 13, kind: input, shape index: {}]   ;;  %s2526_s14 = inlined_call_operand.vmem [shape: f32[32,64], index: 14, kind: input, shape index: {}]   ;;  %s2527_s15 = inlined_call_operand.vmem [shape: f32[32,64], index: 15, kind: input, shape index: {}]   ;;  %s2528_s16 = inlined_call_operand.vmem [shape: f32[64,8], index: 16, kind: input, shape index: {}]   ;;  %s2529_s17 = inlined_call_operand.vmem [shape: f32[1,8], index: 17, kind: input, shape index: {}]   ;;  %s2530_s18 = inlined_call_operand.vmem [shape: f32[8,64], index: 18, kind: input, shape index: {}]   ;;  %s2531_s19 = inlined_call_operand.vmem [shape: f32[2,8,64], index: 19, kind: output, shape index: {}]  }
   0x1   :  { %2533 = sst [smem:[#allocation2_spill]] %s2512_s0  ;;  %s2223_s0 = smov 0  }
   0x2   :  { %2534 = sst [smem:[#allocation3_spill]] %s2513_s1 }
   0x3   :  { %2535 = sst [smem:[#allocation4_spill]] %s2514_s2 }
   0x4   :  { %2536 = sst [smem:[#allocation5_spill]] %s2515_s3 }
   0x5 LB: > { %s1831_s30 = sadd.s32 4294967295, %s2103_s0   ;;  %p1835_p0 = scmp.ge.s32.totalorder %s2103_s0, 1  ;;  %s2103_s0 = sphi %s2223_s0, %s29_s0  }
   0x6   : > { %p545_p1 = scmp.lt.s32.totalorder %s2103_s0, 3 }
   0x8   : > { %p546_p2 = pnand %p1835_p0, %p545_p1 }
   0x9   : > { %s2537_s1 = sld [smem:[#allocation4_spill]] (!%p546_p2)  ;;  %p603_p3 = scmp.lt.s32.totalorder (!%p546_p2), %s1831_s30, 1  ;;  %v2105_v3 = vmov (!%p546_p2), 0.0   ;;  %vm2106_vm0 = vmmov (!%p546_p2), 0   ;;  %vm636_vm1 = vcmask (!%p546_p2), 261120   ;;  %vm684_vm2 = vcmask (!%p546_p2), 64512  }
   0xa   : > { %549 = sbr.rel (%p546_p2) target bundleno = 4288 (0x10c0), region = 96  ;;  %1913 = vmatprep.subr.bf16.mxu0 (!%p546_p2), %v2105_v3  ;;  %1917 = vmatprep.mubr.msk.bf16.mxu0 (!%p546_p2), %vm2106_vm0, %v2105_v3  ;;  %s2538_s29 = sld [smem:[#allocation3_spill]] (!%p546_p2)  ;;  %vm732_vm3 = vcmask (!%p546_p2), 27648   ;;  %vm751_vm4 = vcmask (!%p546_p2), 1041408   ;;  %vm747_vm5 = vcmask (!%p546_p2), 31744   ;;  %vm1141_vm6 = vcmask (!%p546_p2), 130048  }
   0xb   : > { %1921 = vmatprep.subr.bf16.mxu1 (!%p546_p2), %v2105_v3  ;;  %1923 = vmatprep.mubr.msk.bf16.mxu1 (!%p546_p2), %vm2106_vm0, %v2105_v3  ;;  %s2539_s2 = sld [smem:[#allocation5_spill]] (!%p546_p2)  ;;  %s2107_s23 = smov (!%p546_p2), 120   ;;  %vm1143_vm7 = vcmask (!%p546_p2), 195584   ;;  %vm1200_vm8 = vcmask (!%p546_p2), 257024   ;;  %vm1307_vm9 = vcmask (!%p546_p2), 523264   ;;  %vm1484_vm10 = vcmask (!%p546_p2), 519168  }
   0xc   : > { %s2108_s24 = smov (!%p546_p2), 96   ;;  %s2109_s25 = smov (!%p546_p2), 80   ;;  %vm1554_vm11 = vcmask (!%p546_p2), 60416   ;;  %vm1601_vm12 = vcmask (!%p546_p2), 1043456  }
   0xd   : > { %s2110_s3 = smov (!%p546_p2), 88   ;;  %s2111_s27 = smov (!%p546_p2), 72  }
   0xe   : > { %s2112_s28 = smov (!%p546_p2), 112   ;;  %s2115_s21 = smov (!%p546_p2), 64  }
   0xf   : > { %v617_v0 = vld [vmem:[%s2537_s1] sm:$0xff] (!%p546_p2)  ;;  %v618_v1 = vld [vmem:[%s2537_s1 + $0x8] sm:$0xff] (!%p546_p2)  ;;  %v619_v2 = vld [vmem:[%s2537_s1 + $0x10] sm:$0xff] (!%p546_p2)  ;;  %s2116_s22 = smov (!%p546_p2), 40  }
  0x10   : > { %v628_v4 = vpack.c.bf16 (!%p546_p2), %v618_v1, %v617_v0  ;;  %v620_v5 = vld [vmem:[%s2537_s1 + $0x18] sm:$0xff] (!%p546_p2) }
  0x11   : > { %s2542_s30 = smov (!%p603_p3, %s1831_s30), 1  ;;  %v629_v6 = vpack.c.bf16 %v620_v5, %v619_v2  ;;  %v1839_v9 = vld [vmem:[%s2539_s2] ss:$0 sm:$0xff]  ;;  %s2117_s2 = smov 48  }
  0x12   : > { %1914 = vmatpush3.bf16.msra.mxu0 %v628_v4  ;;  %s1836_s26 = sshll.u32 %s2542_s30, 2 }
  0x13   : > { %1915 = vmatprep.subr.bf16.mxu0 %v2105_v3  ;;  %s610_s20 = scalar_lea.vmem %s2538_s29, %s1836_s26  ;;  %s2113_s29 = smov 104  }
  0x14   : > { %v2258_v7 = vld [vmem:[%s610_s20] sm:$0xf]  ;;  %s2114_s20 = smov 56  }
  0x15   : > { %v627_v8 = vpack.c.bf16 %v2258_v7, %v2258_v7 }
  0x16   : > { %1916 = vmatpush3.bf16.msra.mxu0 %v629_v6 }
  0x17   : > { %1927 = vmatprep.subr.bf16.mxu0 %v2105_v3 }
  0x19   : > { %1918 = vmatmul.mubr.msk.bf16.vlgmr.msra.gmra.mrb[0].mxu0 %vm636_vm1, %v627_v8 }
  0x1a   : > { %1929 = vmatprep.mubr.msk.bf16.mxu0 %vm2106_vm0, %v2105_v3 }
  0xec   : > { %v674_v10 = vpop.f32.mrb[0].mxu0 }
  0xed   : > { %v675_v11 = vadd.f32 %v1839_v9, %v674_v10  ;;  %v1919_v12 = vpop.f32.mrb[1].mxu0 }
  0xee   : > { %v677_v13 = vpop.f32.mrb[2].mxu0 }
  0xef   : > { %v2269_v14 = vpack.c.bf16 %v675_v11, %v675_v11  ;;  %v1920_v15 = vpop.f32.mrb[3].mxu0 }
  0xf1   : > { %795 = vrot.lane.b32.xlu1 %v2269_v14, %s2107_s23  ;;  %682 = vrot.lane.b32.xlu0 %v2269_v14, %s2108_s24  ;;  %s2118_s23 = smov 8   ;;  %s2540_s24 = sld [smem:[#allocation2_spill]] }
  0xf5   : > { %908 = vrot.lane.b32.xlu1 %v2269_v14, %s2109_s25  ;;  %797 = vrot.lane.b32.xlu0 %v2269_v14, %s2110_s3 }
  0xf7   : > { %s606_s25 = scalar_lea.vmem %s2540_s24, %s1836_s26 }
  0xf9   : > { %1019 = vrot.lane.b32.xlu1 %v2269_v14, %s2111_s27  ;;  %906 = vrot.lane.b32.xlu0 %v2269_v14, %s2112_s28 }
  0xfd   : > { %1017 = vrot.lane.b32.xlu0 %v2269_v14, %s2113_s29 }
 0x163   : > { %v683_v16 = vpop.permute.xlu0 %682  ;;  %v796_v19 = vpop.permute.xlu1 %795 }
 0x164   : > { %v689_v17 = vsel %vm684_vm2, %v683_v16, 0 }
 0x165   : > { %1922 = vmatpush3.bf16.xpose.msra.mxu1 %v689_v17 }
 0x166   : > { %1933 = vmatprep.subr.bf16.mxu1 %v2105_v3 }
 0x167   : > { %v798_v18 = vpop.permute.xlu0 %797  ;;  %v909_v21 = vpop.permute.xlu1 %908 }
 0x168   : > { %v803_v20 = vsel %vm684_vm2, %v798_v18, 0  ;;  %v914_v22 = vsel %vm684_vm2, %v909_v21, 0 }
 0x16b   : > { %v1020_v23 = vpop.permute.xlu1 %1019  ;;  %v907_v24 = vpop.permute.xlu0 %906 }
 0x16c   : > { %1924 = vmatmul.mubr.msk.bf16.vlgmr.msra.gmra.mrb[0].mxu1 %vm684_vm2, %v2269_v14  ;;  %v1025_v25 = vsel %vm684_vm2, %v1020_v23, 0 }
 0x16d   : > { %1934 = vmatpush3.bf16.xpose.msra.mxu1 %v803_v20  ;;  %1935 = vmatprep.mubr.msk.bf16.mxu1 %vm2106_vm0, %v2105_v3 }
 0x16e   : > { %1945 = vmatprep.subr.bf16.mxu1 %v2105_v3 }
 0x16f   : > { %v1018_v26 = vpop.permute.xlu0 %1017 }
 0x174   : > { %1936 = vmatmul.mubr.msk.bf16.vlgmr.msra.gmra.mrb[4].mxu1 %vm684_vm2, %v796_v19 }
 0x175   : > { %1946 = vmatpush3.bf16.xpose.msra.mxu1 %v914_v22  ;;  %1947 = vmatprep.mubr.msk.bf16.mxu1 %vm2106_vm0, %v2105_v3 }
 0x176   : > { %1957 = vmatprep.subr.bf16.mxu1 %v2105_v3 }
 0x17c   : > { %1948 = vmatmul.mubr.msk.bf16.vlgmr.msra.gmra.mrb[8].mxu1 %vm684_vm2, %v907_v24 }
 0x17d   : > { %1958 = vmatpush3.bf16.xpose.msra.mxu1 %v1025_v25  ;;  %1959 = vmatprep.mubr.msk.bf16.mxu1 %vm2106_vm0, %v2105_v3 }
 0x17e   : > { %1969 = vmatprep.subr.bf16.mxu1 %v2105_v3 }
 0x184   : > { %1960 = vmatmul.mubr.msk.bf16.vlgmr.msra.gmra.mrb[12].mxu1 %vm684_vm2, %v1018_v26 }
 0x185   : > { %1973 = vmatprep.mubr.msk.bf16.mxu1 %vm2106_vm0, %v2105_v3 }
 0x23f   : > { %v725_v27 = vpop.f32.mrb[0].mxu1 }
 0x240   : > { %v731_v28 = vmul.f32 0.35355338, %v725_v27  ;;  %v1925_v29 = vpop.f32.mrb[1].mxu1 }
 0x241   : > { %v728_v30 = vpop.f32.mrb[2].mxu1 }
 0x242   : > { %v1926_v31 = vpop.f32.mrb[3].mxu1  ;;  %v733_v32 = vsel %vm732_vm3, %v731_v28, -inf }
 0x243   : > { %734 = vmax.xlane.f32.xlu1 %v733_v32 }
 0x247   : > { %v839_v33 = vpop.f32.mrb[4].mxu1 }
 0x248   : > { %v845_v34 = vmul.f32 0.35355338, %v839_v33  ;;  %v1937_v35 = vpop.f32.mrb[5].mxu1 }
 0x249   : > { %v842_v36 = vpop.f32.mrb[6].mxu1 }
 0x24a   : > { %v1938_v37 = vpop.f32.mrb[7].mxu1  ;;  %v846_v38 = vsel %vm732_vm3, %v845_v34, -inf }
 0x24b   : > { %847 = vmax.xlane.f32.xlu0 %v846_v38 }
 0x24f   : > { %v950_v39 = vpop.f32.mrb[8].mxu1 }
 0x250   : > { %v956_v40 = vmul.f32 0.35355338, %v950_v39  ;;  %v1949_v41 = vpop.f32.mrb[9].mxu1 }
 0x251   : > { %v953_v42 = vpop.f32.mrb[10].mxu1  ;;  %v622_v41 = vld [vmem:[%s2516_s4] sm:$0xff] }
 0x252   : > { %v1950_v43 = vpop.f32.mrb[11].mxu1  ;;  %v957_v44 = vsel %vm732_vm3, %v956_v40, -inf  ;;  %v623_v42 = vld [vmem:[%s2516_s4 + $0x8] sm:$0xff] }
 0x253   : > { %958 = vmax.xlane.f32.xlu0 %v957_v44  ;;  %v1146_v43 = vpack.c.bf16 %v623_v42, %v622_v41  ;;  %v624_v44 = vld [vmem:[%s2516_s4 + $0x10] sm:$0xff] }
 0x255   : > { %1970 = vmatpush3.bf16.msra.mxu1 %v1146_v43 }
 0x256   : > { %1971 = vmatprep.subr.bf16.mxu1 %v2105_v3 }
 0x257   : > { %v1061_v45 = vpop.f32.mrb[12].mxu1 }
 0x258   : > { %v1067_v46 = vmul.f32 0.35355338, %v1061_v45  ;;  %v1961_v47 = vpop.f32.mrb[13].mxu1  ;;  %v625_v45 = vld [vmem:[%s2516_s4 + $0x18] sm:$0xff] }
 0x259   : > { %v1064_v48 = vpop.f32.mrb[14].mxu1 }
 0x25a   : > { %v1962_v49 = vpop.f32.mrb[15].mxu1  ;;  %v1068_v50 = vsel %vm732_vm3, %v1067_v46, -inf }
 0x25b   : > { %1069 = vmax.xlane.f32.xlu1 %v1068_v50 }
 0x2d0   : > { %v735_v51 = vpop.xlane.xlu1 %734 }
 0x2d1   : > { %v736_v52 = vsub.f32 %v731_v28, %v735_v51 }
 0x2d3   : > { %v737_v53 = vmul.f32 1.442695, %v736_v52 }
 0x2d5   : > { %2067 = vpow2.f32 %v737_v53 }
 0x2d8   : > { %v848_v54 = vpop.xlane.xlu0 %847 }
 0x2d9   : > { %v849_v55 = vsub.f32 %v845_v34, %v848_v54 }
 0x2db   : > { %v850_v56 = vmul.f32 1.442695, %v849_v55 }
 0x2dd   : > { %2069 = vpow2.f32 %v850_v56 }
 0x2df   : > { %v2068_v57 = vpop.eup %2067 }
 0x2e0   : > { %v959_v58 = vpop.xlane.xlu0 %958  ;;  %v739_v59 = vsel %vm732_vm3, %v2068_v57, 0.0 }
 0x2e1   : > { %v960_v60 = vsub.f32 %v956_v40, %v959_v58  ;;  %740 = vadd.xlane.f32.xlu0 %v739_v59 }
 0x2e3   : > { %v961_v61 = vmul.f32 1.442695, %v960_v60 }
 0x2e5   : > { %2071 = vpow2.f32 %v961_v61 }
 0x2e7   : > { %v2070_v62 = vpop.eup %2069 }
 0x2e8   : > { %v852_v63 = vsel %vm732_vm3, %v2070_v62, 0.0  ;;  %v1070_v2 = vpop.xlane.xlu1 %1069 }
 0x2e9   : > { %853 = vadd.xlane.f32.xlu1 %v852_v63  ;;  %v1071_v4 = vsub.f32 %v1067_v46, %v1070_v2  ;;  %v1147_v46 = vpack.c.bf16 %v625_v45, %v624_v44 }
 0x2eb   : > { %v1072_v5 = vmul.f32 1.442695, %v1071_v4  ;;  %1972 = vmatpush3.bf16.msra.mxu1 %v1147_v46 }
 0x2ec   : > { %1985 = vmatprep.subr.bf16.mxu1 %v2105_v3 }
 0x2ed   : > { %2073 = vpow2.f32 %v1072_v5 }
 0x2ef   : > { %v2072_v0 = vpop.eup %2071 }
 0x2f0   : > { %v963_v1 = vsel %vm732_vm3, %v2072_v0, 0.0 }
 0x2f1   : > { %964 = vadd.xlane.f32.xlu0 %v963_v1 }
 0x2f7   : > { %v2074_v6 = vpop.eup %2073 }
 0x2f8   : > { %v1074_v8 = vsel %vm732_vm3, %v2074_v6, 0.0 }
 0x2fa   : > { %858 = vrot.lane.b32.xlu1 %v2269_v14, %s2114_s20 }
 0x307   : > { %745 = vrot.lane.b32.xlu0 %v2269_v14, %s2115_s21 }
 0x30b   : > { %1080 = vrot.lane.b32.xlu0 %v2269_v14, %s2116_s22  ;;  %s2119_s22 = smov 16  }
 0x31e   : > { %1075 = vadd.xlane.f32.xlu1 %v1074_v8 }
 0x32f   : > { %969 = vrot.lane.b32.xlu1 %v2269_v14, %s2117_s2  ;;  %s2120_s2 = smov 24  }
 0x36e   : > { %v741_v9 = vpop.xlane.xlu0 %740 }
 0x36f   : > { %2075 = vrcp.f32 %v741_v9 }
 0x376   : > { %v854_v10 = vpop.xlane.xlu1 %853 }
 0x377   : > { %2077 = vrcp.f32 %v854_v10 }
 0x379   : > { %v2076_v11 = vpop.eup %2075 }
 0x37a   : > { %v743_v13 = vmul.f32 %v2076_v11, %v2068_v57  ;;  %v859_v17 = vpop.permute.xlu1 %858 }
 0x37b   : > { %v864_v14 = vsel %vm751_vm4, %v859_v17, 0  ;;  %v1232_v17 = vld [vmem:[%s2520_s8 + $0x18] sm:$0xff] }
 0x37c   : > { %v744_v18 = vpack.c.bf16 %v743_v13, %v743_v13  ;;  %v1229_v13 = vld [vmem:[%s2520_s8] sm:$0xff] }
 0x37e   : > { %v965_v12 = vpop.xlane.xlu0 %964 }
 0x37f   : > { %2079 = vrcp.f32 %v965_v12 }
 0x381   : > { %v2078_v19 = vpop.eup %2077 }
 0x382   : > { %v746_v15 = vpop.permute.xlu0 %745  ;;  %v856_v20 = vmul.f32 %v2078_v19, %v2070_v62  ;;  %v1849_v62 = vld [vmem:[%s2517_s5] ss:$0 sm:$0xff] }
 0x383   : > { %v753_v16 = vsel %vm751_vm4, %v746_v15, 0  ;;  %v1230_v15 = vld [vmem:[%s2520_s8 + $0x8] sm:$0xff]  ;;  %v1287_v19 = vld [vmem:[%s2522_s10] sm:$0xff] }
 0x384   : > { %1928 = vmatpush3.bf16.msra.mxu0 %v753_v16  ;;  %v857_v21 = vpack.c.bf16 %v856_v20, %v856_v20  ;;  %v1234_v16 = vpack.c.bf16 %v1230_v15, %v1229_v13  ;;  %v1289_v20 = vld [vmem:[%s2522_s10 + $0x10] sm:$0xff]  ;;  %v1382_v13 = vld [vmem:[%s2526_s14] sm:$0xff]  ;;  %v1383_v15 = vld [vmem:[%s2526_s14 + $0x8] sm:$0xff] }
 0x385   : > { %1939 = vmatprep.subr.bf16.mxu0 %v2105_v3 }
 0x386   : > { %v1081_v27 = vpop.permute.xlu0 %1080 }
 0x387   : > { %1930 = vmatmul.mubr.msk.bf16.vlgmr.msra.gmra.mrb[4].mxu0 %vm747_vm5, %v744_v18  ;;  %v1086_v29 = vsel %vm751_vm4, %v1081_v27, 0 }
 0x388   : > { %1940 = vmatpush3.bf16.msra.mxu0 %v864_v14  ;;  %1941 = vmatprep.mubr.msk.bf16.mxu0 %vm2106_vm0, %v2105_v3  ;;  %v1288_v14 = vld [vmem:[%s2522_s10 + $0x8] sm:$0xff] }
 0x389   : > { %1951 = vmatprep.subr.bf16.mxu0 %v2105_v3  ;;  %v2080_v22 = vpop.eup %2079 }
 0x38a   : > { %v967_v24 = vmul.f32 %v2080_v22, %v2072_v0  ;;  %v1290_v22 = vld [vmem:[%s2522_s10 + $0x18] sm:$0xff] }
 0x38c   : > { %v968_v28 = vpack.c.bf16 %v967_v24, %v967_v24 }
 0x38f   : > { %1942 = vmatmul.mubr.msk.bf16.vlgmr.msra.gmra.mrb[8].mxu0 %vm747_vm5, %v857_v21  ;;  %v1296_v21 = vpack.c.bf16 %v1288_v14, %v1287_v19  ;;  %v1385_v19 = vld [vmem:[%s2526_s14 + $0x18] sm:$0xff] }
 0x390   : > { %1953 = vmatprep.mubr.msk.bf16.mxu0 %vm2106_vm0, %v2105_v3 }
 0x3ab   : > { %v1076_v23 = vpop.xlane.xlu1 %1075 }
 0x3ac   : > { %2081 = vrcp.f32 %v1076_v23  ;;  %v1297_v23 = vpack.c.bf16 %v1290_v22, %v1289_v20  ;;  %v1381_v20 = vld [vmem:[%s606_s25] sm:$0xf] }
 0x3af   : > { %v970_v25 = vpop.permute.xlu1 %969 }
 0x3b0   : > { %v975_v26 = vsel %vm751_vm4, %v970_v25, 0 }
 0x3b1   : > { %1952 = vmatpush3.bf16.msra.mxu0 %v975_v26 }
 0x3b2   : > { %1963 = vmatprep.subr.bf16.mxu0 %v2105_v3 }
 0x3b4   : > { %1954 = vmatmul.mubr.msk.bf16.vlgmr.msra.gmra.mrb[12].mxu0 %vm747_vm5, %v968_v28  ;;  %v1851_v28 = vld [vmem:[%s2518_s6] ss:$0 sm:$0xff] }
 0x3b5   : > { %1964 = vmatpush3.bf16.msra.mxu0 %v1086_v29  ;;  %1965 = vmatprep.mubr.msk.bf16.mxu0 %vm2106_vm0, %v2105_v3 }
 0x3b6   : > { %v2082_v30 = vpop.eup %2081  ;;  %1977 = vmatprep.subr.bf16.mxu0 %v2105_v3 }
 0x3b7   : > { %v1078_v31 = vmul.f32 %v2082_v30, %v2074_v6  ;;  %v1852_v30 = vld [vmem:[%s2519_s7] ss:$0 sm:$0xff] }
 0x3b9   : > { %v1079_v32 = vpack.c.bf16 %v1078_v31, %v1078_v31 }
 0x3bc   : > { %1966 = vmatmul.mubr.msk.bf16.vlgmr.msra.gmra.mrb[16].mxu0 %vm747_vm5, %v1079_v32 }
 0x3bd   : > { %1981 = vmatprep.mubr.msk.bf16.mxu0 %vm2106_vm0, %v2105_v3  ;;  %1978 = vmatpush3.bf16.msra.mxu0 %v1234_v16 }
 0x3be   : > { %1979 = vmatprep.subr.bf16.mxu0 %v2105_v3 }
 0x45a   : > { %v789_v33 = vpop.f32.mrb[4].mxu0 }
 0x45b   : > { %v1931_v34 = vpop.f32.mrb[5].mxu0 }
 0x45c   : > { %v792_v35 = vpop.f32.mrb[6].mxu0  ;;  %v1291_v34 = vld [vmem:[%s2522_s10 + $0x20] sm:$0xff] }
 0x45d   : > { %v1932_v36 = vpop.f32.mrb[7].mxu0  ;;  %v1292_v35 = vld [vmem:[%s2522_s10 + $0x28] sm:$0xff] }
 0x45e   : > { %v1298_v36 = vpack.c.bf16 %v1292_v35, %v1291_v34  ;;  %v1495_v35 = vld [vmem:[%s2528_s16 + $0x20] sm:$0xff] }
 0x462   : > { %v900_v37 = vpop.f32.mrb[8].mxu0 }
 0x463   : > { %1129 = vrot.lane.b32.xlu1 %v900_v37, %s2118_s23  ;;  %v1943_v38 = vpop.f32.mrb[9].mxu0  ;;  %v1293_v37 = vld [vmem:[%s2522_s10 + $0x30] sm:$0xff] }
 0x464   : > { %v903_v39 = vpop.f32.mrb[10].mxu0  ;;  %v1294_v38 = vld [vmem:[%s2522_s10 + $0x38] sm:$0xff] }
 0x465   : > { %v1944_v40 = vpop.f32.mrb[11].mxu0  ;;  %v1299_v39 = vpack.c.bf16 %v1294_v38, %v1293_v37  ;;  %v1497_v38 = vld [vmem:[%s2528_s16 + $0x30] sm:$0xff] }
 0x466   : > { %v1853_v40 = vld [vmem:[%s2521_s9] ss:$0 sm:$0xff] }
 0x487   : > { %v1011_v47 = vpop.f32.mrb[12].mxu0 }
 0x488   : > { %1133 = vrot.lane.b32.xlu0 %v1011_v47, %s2119_s22  ;;  %v1955_v48 = vpop.f32.mrb[13].mxu0 }
 0x489   : > { %v1014_v49 = vpop.f32.mrb[14].mxu0  ;;  %v1855_v48 = vld [vmem:[%s2523_s11] ss:$0 sm:$0xff] }
 0x48a   : > { %v1956_v50 = vpop.f32.mrb[15].mxu0 }
 0x48f   : > { %v1122_v51 = vpop.f32.mrb[16].mxu0 }
 0x490   : > { %1137 = vrot.lane.b32.xlu1 %v1122_v51, %s2120_s2  ;;  %v1967_v52 = vpop.f32.mrb[17].mxu0  ;;  %s1838_s2 = sshll.u32 %s2542_s30, 3 }
 0x491   : > { %v1125_v53 = vpop.f32.mrb[18].mxu0  ;;  %s614_s25 = scalar_lea.vmem %s2531_s19, %s1838_s2 }
 0x492   : > { %v1968_v54 = vpop.f32.mrb[19].mxu0 }
 0x4d5   : > { %v1130_v55 = vpop.permute.xlu1 %1129 }
 0x4d6   : > { %v1140_v57 = vsel %vm684_vm2, %v789_v33, %v1130_v55 }
 0x4fa   : > { %v1134_v56 = vpop.permute.xlu0 %1133 }
 0x4fb   : > { %v1142_v58 = vsel %vm1141_vm6, %v1140_v57, %v1134_v56 }
 0x502   : > { %v1138_v59 = vpop.permute.xlu1 %1137 }
 0x503   : > { %v1144_v60 = vsel %vm1143_vm7, %v1142_v58, %v1138_v59 }
 0x504   : > { %v1145_v61 = vpack.c.bf16 %v1144_v60, %v1144_v60 }
 0x506   : > { %1974 = vmatmul.mubr.msk.bf16.vlgmr.msra.gmra.mrb[16].mxu1 %vm636_vm1, %v1145_v61  ;;  %v1389_v61 = vld [vmem:[%s2527_s15] sm:$0xff] }
 0x507   : > { %1993 = vmatprep.mubr.msk.bf16.mxu1 %vm2106_vm0, %v2105_v3  ;;  %1986 = vmatpush3.bf16.msra.mxu1 %v1296_v21  ;;  %v1386_v21 = vpack.c.bf16 %v1381_v20, %v1381_v20 }
 0x508   : > { %1987 = vmatprep.subr.bf16.mxu1 %v2105_v3 }
 0x50b   : > { %1988 = vmatpush3.bf16.msra.mxu1 %v1297_v23 }
 0x50c   : > { %1989 = vmatprep.subr.bf16.mxu1 %v2105_v3 }
 0x50f   : > { %1990 = vmatpush3.bf16.msra.mxu1 %v1298_v36  ;;  %v1496_v36 = vld [vmem:[%s2528_s16 + $0x28] sm:$0xff] }
 0x510   : > { %1991 = vmatprep.subr.bf16.mxu1 %v2105_v3  ;;  %v1502_v37 = vpack.c.bf16 %v1496_v36, %v1495_v35 }
 0x513   : > { %1992 = vmatpush3.bf16.msra.mxu1 %v1299_v39  ;;  %v1498_v39 = vld [vmem:[%s2528_s16 + $0x38] sm:$0xff] }
 0x514   : > { %2013 = vmatprep.subr.bf16.mxu1 %v2105_v3 }
 0x5d9   : > { %v1191_v63 = vpop.f32.mrb[16].mxu1 }
 0x5da   : > { %v1192_v0 = vadd.f32 %v1849_v62, %v1191_v63  ;;  %v1975_v1 = vpop.f32.mrb[17].mxu1  ;;  %v1390_v62 = vld [vmem:[%s2527_s15 + $0x8] sm:$0xff] }
 0x5db   : > { %v1194_v2 = vpop.f32.mrb[18].mxu1  ;;  %v1394_v63 = vpack.c.bf16 %v1390_v62, %v1389_v61  ;;  %v1392_v1 = vld [vmem:[%s2527_s15 + $0x18] sm:$0xff] }
 0x5dc   : > { %v1976_v4 = vpop.f32.mrb[19].mxu1  ;;  %v1197_v5 = vadd.f32 %v1192_v0, %v2258_v7  ;;  %v1231_v7 = vld [vmem:[%s2520_s8 + $0x10] sm:$0xff] }
 0x5dd   : > { %v1235_v18 = vpack.c.bf16 %v1232_v17, %v1231_v7  ;;  %v1391_v0 = vld [vmem:[%s2527_s15 + $0x10] sm:$0xff]  ;;  %v1387_v7 = vpack.c.bf16 %v1383_v15, %v1382_v13 }
 0x5de   : > { %v1201_v6 = vsel %vm1200_vm8, %v1197_v5, 0.0  ;;  %v1395_v2 = vpack.c.bf16 %v1392_v1, %v1391_v0 }
 0x5df   : > { %1202 = vadd.xlane.f32.xlu0 %v1201_v6  ;;  %1980 = vmatpush3.bf16.msra.mxu0 %v1235_v18  ;;  %v1384_v18 = vld [vmem:[%s2526_s14 + $0x10] sm:$0xff] }
 0x5e0   : > { %1997 = vmatprep.subr.bf16.mxu0 %v2105_v3  ;;  %v1388_v14 = vpack.c.bf16 %v1385_v19, %v1384_v18 }
 0x66c   : > { %v1203_v8 = vpop.xlane.xlu0 %1202 }
 0x66d   : > { %v1205_v9 = vmul.f32 0.03125, %v1203_v8 }
 0x66f   : > { %v1206_v10 = vsub.f32 %v1197_v5, %v1205_v9  ;;  %v1857_v9 = vld [vmem:[%s2524_s12] ss:$0 sm:$0xff] }
 0x671   : > { %v1207_v11 = vmul.f32 %v1206_v10, %v1206_v10 }
 0x673   : > { %v1208_v12 = vsel %vm1200_vm8, %v1207_v11, 0.0  ;;  %v1858_v11 = vld [vmem:[%s2525_s13] ss:$0 sm:$0xff] }
 0x674   : > { %1209 = vadd.xlane.f32.xlu1 %v1208_v12 }
 0x701   : > { %v1210_v24 = vpop.xlane.xlu1 %1209 }
 0x702   : > { %v1211_v25 = vmul.f32 0.03125, %v1210_v24 }
 0x704   : > { %v1212_v26 = vadd.f32 1e-05, %v1211_v25 }
 0x706   : > { %2083 = vrsqrt.f32 %v1212_v26 }
 0x710   : > { %v2084_v27 = vpop.eup %2083 }
 0x711   : > { %v1214_v29 = vmul.f32 %v2084_v27, %v1206_v10 }
 0x713   : > { %v1221_v31 = vmul.f32 %v1851_v28, %v1214_v29  ;;  %v1491_v29 = vld [vmem:[%s2528_s16] sm:$0xff] }
 0x715   : > { %v1228_v32 = vadd.f32 %v1852_v30, %v1221_v31  ;;  %v1492_v30 = vld [vmem:[%s2528_s16 + $0x8] sm:$0xff] }
 0x716   : > { %v1500_v31 = vpack.c.bf16 %v1492_v30, %v1491_v29 }
 0x717   : > { %v1233_v33 = vpack.c.bf16 %v1228_v32, %v1228_v32 }
 0x719   : > { %1982 = vmatmul.mubr.msk.bf16.vlgmr.msra.gmra.mrb[20].mxu0 %vm636_vm1, %v1233_v33  ;;  %v1494_v33 = vld [vmem:[%s2528_s16 + $0x18] sm:$0xff] }
 0x71a   : > { %2001 = vmatprep.mubr.msk.bf16.mxu0 %vm2106_vm0, %v2105_v3  ;;  %1998 = vmatpush3.bf16.msra.mxu0 %v1394_v63  ;;  %v2122_v63 = vmov 0  }
 0x71b   : > { %1999 = vmatprep.subr.bf16.mxu0 %v2105_v3 }
 0x71e   : > { %2000 = vmatpush3.bf16.msra.mxu0 %v1395_v2 }
 0x71f   : > { %2005 = vmatprep.subr.bf16.mxu0 %v2105_v3 }
 0x7ec   : > { %v1280_v41 = vpop.f32.mrb[20].mxu0 }
 0x7ed   : > { %v1281_v42 = vadd.f32 %v1853_v40, %v1280_v41  ;;  %v1983_v43 = vpop.f32.mrb[21].mxu0  ;;  %v1503_v40 = vpack.c.bf16 %v1498_v39, %v1497_v38 }
 0x7ee   : > { %v1283_v44 = vpop.f32.mrb[22].mxu0 }
 0x7ef   : > { %v1286_v45 = vmax.f32 %v1281_v42, 0.0  ;;  %v1984_v46 = vpop.f32.mrb[23].mxu0 }
 0x7f0   : > { %v1861_v46 = vld [vmem:[%s2529_s17] ss:$0 sm:$0xff] }
 0x7f1   : > { %v1295_v47 = vpack.c.bf16 %v1286_v45, %v1286_v45 }
 0x7f3   : > { %1994 = vmatmul.mubr.msk.bf16.vlgmr.msra.gmra.mrb[20].mxu1 %vm1307_vm9, %v1295_v47 }
 0x7f4   : > { %2021 = vmatprep.mubr.msk.bf16.mxu1 %vm2106_vm0, %v2105_v3  ;;  %2014 = vmatpush3.bf16.msra.mxu1 %v1500_v31 }
 0x7f5   : > { %2015 = vmatprep.subr.bf16.mxu1 %v2105_v3 }
 0x8c6   : > { %v1345_v49 = vpop.f32.mrb[20].mxu1 }
 0x8c7   : > { %v1346_v50 = vadd.f32 %v1855_v48, %v1345_v49  ;;  %v1995_v51 = vpop.f32.mrb[21].mxu1 }
 0x8c8   : > { %v1348_v52 = vpop.f32.mrb[22].mxu1 }
 0x8c9   : > { %v1996_v53 = vpop.f32.mrb[23].mxu1  ;;  %v1351_v54 = vadd.f32 %v1346_v50, %v1228_v32  ;;  %v1493_v32 = vld [vmem:[%s2528_s16 + $0x10] sm:$0xff] }
 0x8ca   : > { %v1501_v34 = vpack.c.bf16 %v1494_v33, %v1493_v32 }
 0x8cb   : > { %v1354_v55 = vsel %vm1200_vm8, %v1351_v54, 0.0 }
 0x8cc   : > { %1355 = vadd.xlane.f32.xlu0 %v1354_v55  ;;  %2016 = vmatpush3.bf16.msra.mxu1 %v1501_v34 }
 0x8cd   : > { %2017 = vmatprep.subr.bf16.mxu1 %v2105_v3 }
 0x8d0   : > { %2018 = vmatpush3.bf16.msra.mxu1 %v1502_v37 }
 0x8d1   : > { %2019 = vmatprep.subr.bf16.mxu1 %v2105_v3 }
 0x8d4   : > { %2020 = vmatpush3.bf16.msra.mxu1 %v1503_v40 }
 0x959   : > { %v1356_v56 = vpop.xlane.xlu0 %1355 }
 0x95a   : > { %v1357_v57 = vmul.f32 0.03125, %v1356_v56 }
 0x95c   : > { %v1358_v58 = vsub.f32 %v1351_v54, %v1357_v57 }
 0x95e   : > { %v1359_v59 = vmul.f32 %v1358_v58, %v1358_v58 }
 0x960   : > { %v1360_v60 = vsel %vm1200_vm8, %v1359_v59, 0.0 }
 0x961   : > { %1361 = vadd.xlane.f32.xlu0 %v1360_v60 }
 0x9ee   : > { %v1362_v4 = vpop.xlane.xlu0 %1361 }
 0x9ef   : > { %v1363_v5 = vmul.f32 0.03125, %v1362_v4 }
 0x9f1   : > { %v1364_v6 = vadd.f32 1e-05, %v1363_v5 }
 0x9f3   : > { %2085 = vrsqrt.f32 %v1364_v6 }
 0x9fd   : > { %v2086_v8 = vpop.eup %2085 }
 0x9fe   : > { %v1366_v10 = vmul.f32 %v2086_v8, %v1358_v58  ;;  %v2121_v58 = vmov 1.0  }
 0xa00   : > { %v1373_v12 = vmul.f32 %v1857_v9, %v1366_v10 }
 0xa02   : > { %v1380_v16 = vadd.f32 %v1858_v11, %v1373_v12  ;;  %v1737_v11 = vld [vmem:[%s2530_s18] sm:$0xff] }
 0xa04   : > { %v1393_v17 = vpack.c.bf16 %v1380_v16, %v1380_v16 }
 0xa06   : > { %2002 = vmatmul.mubr.msk.bf16.vlgmr.msra.gmra.mrb[24].mxu0 %vm636_vm1, %v1393_v17 }
 0xa07   : > { %2006 = vmatpush3.bf16.msra.mxu0 %v1387_v7  ;;  %2009 = vmatprep.mubr.msk.bf16.mxu0 %vm2106_vm0, %v2105_v3 }
 0xa08   : > { %2007 = vmatprep.subr.bf16.mxu0 %v2105_v3 }
 0xa0b   : > { %2008 = vmatpush3.bf16.msra.mxu0 %v1388_v14 }
 0xa0c   : > { %2025 = vmatprep.subr.mxu0 %v2105_v3 }
 0xa12   : > { %2010 = vmatmul.mubr.msk.bf16.vlgmr.msra.gmra.mrb[24].mxu0 %vm636_vm1, %v1386_v21 }
 0xa13   : > { %2027 = vmatprep.mubr.msk.f32.mxu0 %vm2106_vm0, %v2105_v3  ;;  %2026 = vmatpush3.msk.msra.mxu0 %vm1601_vm12, %v2121_v58 }
 0xa14   : > { %2030 = vmatprep.subr.bf16.mxu0 %v2105_v3 }
 0xae5   : > { %v1476_v22 = vpop.f32.mrb[24].mxu0 }
 0xae6   : > { %v1482_v23 = vmax.f32 %v1476_v22, 0.0  ;;  %v2011_v24 = vpop.f32.mrb[25].mxu0 }
 0xae7   : > { %v1479_v25 = vpop.f32.mrb[26].mxu0 }
 0xae8   : > { %v2012_v26 = vpop.f32.mrb[27].mxu0  ;;  %v1483_v27 = vmul.f32 %v1482_v23, %v1482_v23 }
 0xaea   : > { %v1485_v28 = vsel %vm1484_vm10, %v1483_v27, 0.0 }
 0xaeb   : > { %1486 = vadd.xlane.f32.xlu1 %v1485_v28 }
 0xb78   : > { %v1487_v41 = vpop.xlane.xlu1 %1486 }
 0xb79   : > { %v1488_v42 = vmax.f32 %v1487_v41, 1e-24 }
 0xb7b   : > { %2087 = vrsqrt.f32 %v1488_v42 }
 0xb85   : > { %v2088_v43 = vpop.eup %2087 }
 0xb86   : > { %v1490_v44 = vmul.f32 %v2088_v43, %v1482_v23 }
 0xb88   : > { %v1499_v45 = vpack.c.bf16 %v1490_v44, %v1490_v44 }
 0xb8a   : > { %2022 = vmatmul.mubr.msk.bf16.vlgmr.msra.gmra.mrb[24].mxu1 %vm1307_vm9, %v1499_v45  ;;  %v1695_v1 = vsel %vm751_vm4, %v1499_v45, 0 }
 0xc5d   : > { %v1548_v47 = vpop.f32.mrb[24].mxu1 }
 0xc5e   : > { %v1549_v48 = vadd.f32 %v1861_v46, %v1548_v47  ;;  %v2023_v49 = vpop.f32.mrb[25].mxu1 }
 0xc5f   : > { %v1551_v50 = vpop.f32.mrb[26].mxu1 }
 0xc60   : > { %v2024_v51 = vpop.f32.mrb[27].mxu1  ;;  %v1555_v52 = vsel %vm1554_vm11, %v1549_v48, -inf }
 0xc61   : > { %1556 = vmax.xlane.f32.xlu0 %v1555_v52 }
 0xcee   : > { %v1557_v53 = vpop.xlane.xlu0 %1556 }
 0xcef   : > { %v1558_v54 = vsub.f32 %v1549_v48, %v1557_v53 }
 0xcf1   : > { %v1559_v55 = vmul.f32 1.442695, %v1558_v54 }
 0xcf3   : > { %2089 = vpow2.f32 %v1559_v55 }
 0xcfd   : > { %v2090_v56 = vpop.eup %2089 }
 0xcfe   : > { %v1561_v57 = vsel %vm1554_vm11, %v2090_v56, 0.0 }
 0xcff   : > { %1562 = vadd.xlane.f32.xlu1 %v1561_v57 }
 0xd8c   : > { %v1563_v59 = vpop.xlane.xlu1 %1562 }
 0xd8d   : > { %2091 = vrcp.f32 %v1563_v59 }
 0xd97   : > { %v2092_v60 = vpop.eup %2091 }
 0xd98   : > { %v1565_v61 = vmul.f32 %v2092_v60, %v2090_v56 }
 0xd9a   : > { %1566 = vxpose.xlu0.b32.start.end [1/1] (short) (narrow) %v1565_v61, 8  ;;  %v1675_v62 = vpack.c.bf16 %v1565_v61, %v1565_v61 }
 0xd9c   : > { %1676 = vxpose.xlu1.c.b16.start.end [1/1] (short) (narrow) %v1675_v62, 16 }
 0xdc3   : > { %2066 = vset.pattern.permute.xlu0 %v2122_v63 }
 0xe02   : > { %v1684_v2 = vpop.trf.xlu1 }
 0xe1a   : > { %v1582_v0 = vpop.trf.xlu0 }
 0xe1b   : > { %2028 = vmatmul.mubr.msk.f32.vlgmr.msra.gmra.mrb[28].mxu0 %vm747_vm5, %v1582_v0 }
 0xe1c   : > { %2031 = vmatpush3.bf16.msra.mxu0 %v1695_v1  ;;  %2032 = vmatprep.mubr.msk.bf16.mxu0 %vm2106_vm0, %v2105_v3 }
 0xe1f   : > { %2033 = vmatmul.mubr.msk.bf16.vlgmr.msra.gmra.mrb[32].mxu0 %vm747_vm5, %v1684_v2 }
 0xeee   : > { %v1671_v4 = vpop.f32.mrb[28].mxu0 }
 0xeef   : > { %1740 = vperm.xlu0 %2066, %v1671_v4   ;;  %v2029_v5 = vpop.f32.mrb[29].mxu0 }
 0xef2   : > { %v1731_v6 = vpop.f32.mrb[32].mxu0 }
 0xef3   : > { %v2034_v8 = vpop.f32.mrb[33].mxu0 }
 0xef4   : > { %v1734_v9 = vpop.f32.mrb[34].mxu0 }
 0xef5   : > { %v2035_v10 = vpop.f32.mrb[35].mxu0 }
 0xf6e   : > { %v1741_v12 = vpop.permute.xlu0 %1740 }
 0xf6f   : > { %v1743_v13 = vmul.f32 %v1741_v12, %v1737_v11 }
 0xf71   : > { %v1744_v15 = vsub.f32 %v1731_v6, %v1743_v13 }
 0xf73   : > { %v1745_v16 = vmul.f32 %v1744_v15, %v1744_v15 }
 0xf75   : > { %v1746_v3 = vsel %vm1307_vm9, %v1745_v16, 0.0 }
 0xf76   : > { %1747 = vadd.xlane.f32.xlu1 %v1746_v3 }
0x1003   : > { %v1748_v7 = vpop.xlane.xlu1 %1747 }
0x1004   : > { %v1749_v17 = vmax.f32 %v1748_v7, 1e-24 }
0x1006   : > { %2093 = vrsqrt.f32 %v1749_v17 }
0x1010   : > { %v2094_v18 = vpop.eup %2093 }
0x1011   : > { %v1751_v19 = vmul.f32 %v2094_v18, %v1744_v15 }
0x1013   : > { %v1752_v14 = vmul.f32 %v1751_v19, %v1751_v19 }
0x1015   : > { %v1753_v20 = vsel %vm1307_vm9, %v1752_v14, 0.0 }
0x1016   : > { %1754 = vadd.xlane.f32.xlu1 %v1753_v20 }
0x10a3   : > { %v1755_v21 = vpop.xlane.xlu1 %1754 }
0x10a4   : > { %v1756_v22 = vrot.slane %v1755_v21, 4 }
0x10a6   : > { %v1757_v23 = vadd.f32 %v1756_v22, %v1755_v21 }
0x10a8   : > { %v1758_v24 = vrot.slane %v1757_v23, 2 }
0x10aa   : > { %v1759_v25 = vadd.f32 %v1758_v24, %v1757_v23 }
0x10ac   : > { %v1760_v26 = vrot.slane %v1759_v25, 1 }
0x10ae   : > { %v1761_v27 = vadd.f32 %v1760_v26, %v1759_v25 }
0x10b0   : > { %v1762_v28 = vmax.f32 %v1761_v27, 1e-24 }
0x10b2   : > { %2095 = vrsqrt.f32 %v1762_v28 }
0x10bc   : > { %v2096_v29 = vpop.eup %2095 }
0x10bd   : > { %v1764_v30 = vmul.f32 %v2096_v29, %v1751_v19 }
0x10bf   : > { %1765 = vst.msk [vmem:[%s614_s25] sm:$0xff] %vm1307_vm9, %v1764_v30 }
0x10c0 PF: > { %s29_s0 = sadd.s32 1, %s2103_s0  }
0x10c1   : > { %p26_p4 = scmp.ge.s32.totalorder %s29_s0, 4  }
0x10c3   :  { %28 = sbr.rel (!%p26_p4) target bundleno = 5 (0x5), region = 129 }

</bundles_post_ra>
